<compile_context>
chip_gen: v7x
topology: tpu7x:2x2x1
jax: 0.10.0
libtpu: 0.0.40
codegen_flags: <defaults>
</compile_context>

<pallas_src>
import functools

import jax
import jax.numpy as jnp
from jax.experimental import pallas as pl
from jax.experimental.pallas import tpu as pltpu


def _decoder_kernel(x_ref, w_ref, b_ref, o_ref, *, nb, w):
    # x_ref: (NB, C, H, W) f32  raw NCHW input block (H-pool fused here)
    # w_ref: (V+1, C)     f32  VMEM-resident across grid steps
    # b_ref: (V+1, 1)     f32  VMEM-resident across grid steps
    # o_ref: (NB, V+1, W) f32
    # --- Fused AdaptiveMaxPool2d((1, None)): max over H (XLU reduce has slack) ---
    pooled = []
    for b in range(nb):
        xb = x_ref[b]                       # (C, H, W)
        pooled.append(jnp.max(xb, axis=1))  # (C, W)
    # Fold batch into the lane axis -> one wide MXU RHS per grid step.
    pooled_flat = pooled[0] if nb == 1 else jnp.concatenate(pooled, axis=-1)  # (C, NB*W)

    # 1x1 conv == matmul; logits emitted directly in (V+1, NB*W) orientation.
    logits = jnp.dot(
        w_ref[...], pooled_flat, preferred_element_type=jnp.float32
    ) + b_ref[...]                          # (V+1, NB*W)

    # log_softmax over the vocab axis (PyTorch dim=1 after squeeze), f32 math.
    m = jnp.max(logits, axis=0, keepdims=True)
    shifted = logits - m
    lse = jnp.log(jnp.sum(jnp.exp(shifted), axis=0, keepdims=True))
    logp = shifted - lse                    # (V+1, NB*W)

    for b in range(nb):
        o_ref[b] = logp[:, b * w:(b + 1) * w].astype(o_ref.dtype)


def decoder_forward(x_nchw, conv_w, conv_b):
    """x_nchw: (N, 256, H, W), conv_w: (V+1, 256, 1, 1), conv_b: (V+1,).
    Returns (N, V+1, W) float32 log-probabilities (matches PyTorch Decoder.forward)."""
    N, C, H, W = x_nchw.shape
    Vp1 = conv_w.shape[0]

    # Keep >=2 parallel grid steps when the batch allows it (v7x has 2 TCs);
    # otherwise one batch per step.  Remaining batches in a step are folded
    # into the lane axis inside the kernel.
    if N >= 2 and N % 2 == 0:
        grid_steps = 2
    else:
        grid_steps = N
    nb = N // grid_steps

    w_mat = conv_w.reshape(Vp1, C).astype(jnp.float32)   # (V+1, C)
    b_mat = conv_b.reshape(Vp1, 1).astype(jnp.float32)   # (V+1, 1)

    kernel = functools.partial(_decoder_kernel, nb=nb, w=W)

    out = pl.pallas_call(
        kernel,
        out_shape=jax.ShapeDtypeStruct((N, Vp1, W), jnp.float32),
        grid_spec=pltpu.PrefetchScalarGridSpec(
            num_scalar_prefetch=0,
            grid=(grid_steps,),
            in_specs=[
                pl.BlockSpec((nb, C, H, W), lambda g: (g, 0, 0, 0)),
                pl.BlockSpec((Vp1, C), lambda g: (0, 0)),   # VMEM-resident
                pl.BlockSpec((Vp1, 1), lambda g: (0, 0)),   # VMEM-resident
            ],
            out_specs=pl.BlockSpec((nb, Vp1, W), lambda g: (g, 0, 0)),
        ),
        compiler_params=pltpu.CompilerParams(
            dimension_semantics=("parallel",),
        ),
    )(x_nchw, w_mat, b_mat)

    return out  # already (N, V+1, W) -- no wrapper-side transpose


if __name__ == "__main__":
    # Small shapes consistent with the module: in_channels is fixed to 256 by
    # the Conv2d; batch=2, H=8, W=16, vocab_size=31 -> out channels = 32.
    N, C, H, W = 2, 256, 8, 16
    vocab_size = 31
    Vp1 = vocab_size + 1

    key = jax.random.PRNGKey(0)
    kx, kw, kb = jax.random.split(key, 3)

    x = jax.random.normal(kx, (N, C, H, W), dtype=jnp.float32)
    conv_w = jax.random.normal(kw, (Vp1, C, 1, 1), dtype=jnp.float32) * 0.02
    conv_b = jax.random.normal(kb, (Vp1,), dtype=jnp.float32) * 0.01

    out = decoder_forward(x, conv_w, conv_b)
    jax.block_until_ready(out)

    # Pure-JAX f32 reference of the same math (high-precision einsum).
    pooled_ref = jnp.max(x, axis=2)                               # (N, C, W)
    logits_ref = jnp.einsum(
        "ncw,vc->nvw", pooled_ref, conv_w.reshape(Vp1, C),
        precision=jax.lax.Precision.HIGHEST,
    ) + conv_b[None, :, None]
    ref = jax.nn.log_softmax(logits_ref, axis=1)

    assert out.shape == (N, Vp1, W)
    assert jnp.max(jnp.abs(out - ref)) < 2e-2

    print("KERNEL_OK")
</pallas_src>

<mosaic_0001>
module attributes {stable_mosaic.version = 11 : i64} {
  func.func @_decoder_kernel(%arg0: i32, %arg1: memref<1x256x8x16xf32, #tpu.memory_space<vmem>>, %arg2: memref<32x256xf32, #tpu.memory_space<vmem>>, %arg3: memref<32x1xf32, #tpu.memory_space<vmem>>, %arg4: memref<1x32x16xf32, #tpu.memory_space<vmem>>) attributes {dimension_semantics = [#tpu.dimension_semantics<parallel>], iteration_bounds = array<i64: 2>, scalar_prefetch = 0 : i64, scratch_operands = 0 : i64, tpu.core_type = #tpu.core_type<tc>, window_params = [{transform_indices = @transform_0, window_bounds = array<i64: 1, 256, 8, 16>}, {pipeline_mode = #tpu.pipeline_mode<synchronous>, transform_indices = @transform_1, window_bounds = array<i64: 32, 256>}, {pipeline_mode = #tpu.pipeline_mode<synchronous>, transform_indices = @transform_2, window_bounds = array<i64: 32, 1>}, {transform_indices = @transform_3, window_bounds = array<i64: 1, 32, 16>}]} {
    %c0 = arith.constant 0 : index
    %c0_0 = arith.constant 0 : index
    %c0_1 = arith.constant 0 : index
    %c0_2 = arith.constant 0 : index
    %0 = vector.load %arg1[%c0, %c0_0, %c0_1, %c0_2] : memref<1x256x8x16xf32, #tpu.memory_space<vmem>>, vector<1x256x8x16xf32>
    %1 = vector.shape_cast %0 : vector<1x256x8x16xf32> to vector<256x8x16xf32>
    %cst = arith.constant dense<0xFF800000> : vector<256x16xf32>
    %2 = vector.multi_reduction <maximumf>, %1, %cst [1] : vector<256x8x16xf32> to vector<256x16xf32>
    %c0_3 = arith.constant 0 : index
    %c0_4 = arith.constant 0 : index
    %3 = vector.load %arg2[%c0_3, %c0_4] : memref<32x256xf32, #tpu.memory_space<vmem>>, vector<32x256xf32>
    %cst_5 = arith.constant dense<0.000000e+00> : vector<32x16xf32>
    %4 = tpu.matmul %3, %2, %cst_5 {dimension_numbers = #tpu.dot_dimension_numbers<[1], [0], [0], [1], [0, 0, 1, 1], [], []>} : vector<32x256xf32>, vector<256x16xf32>, vector<32x16xf32> -> vector<32x16xf32>
    %c0_6 = arith.constant 0 : index
    %c0_7 = arith.constant 0 : index
    %5 = vector.load %arg3[%c0_6, %c0_7] : memref<32x1xf32, #tpu.memory_space<vmem>>, vector<32x1xf32>
    %6 = vector.broadcast %5 : vector<32x1xf32> to vector<32x16xf32>
    %7 = arith.addf %4, %6 : vector<32x16xf32>
    %cst_8 = arith.constant dense<0xFF800000> : vector<16xf32>
    %8 = vector.multi_reduction <maximumf>, %7, %cst_8 [0] : vector<32x16xf32> to vector<16xf32>
    %9 = vector.shape_cast %8 : vector<16xf32> to vector<1x16xf32>
    %10 = vector.broadcast %9 : vector<1x16xf32> to vector<32x16xf32>
    %11 = arith.subf %7, %10 : vector<32x16xf32>
    %12 = math.exp %11 : vector<32x16xf32>
    %cst_9 = arith.constant dense<0.000000e+00> : vector<16xf32>
    %13 = vector.multi_reduction <add>, %12, %cst_9 [0] : vector<32x16xf32> to vector<16xf32>
    %14 = vector.shape_cast %13 : vector<16xf32> to vector<1x16xf32>
    %15 = math.log %14 : vector<1x16xf32>
    %16 = vector.broadcast %15 : vector<1x16xf32> to vector<32x16xf32>
    %17 = arith.subf %11, %16 : vector<32x16xf32>
    %c0_10 = arith.constant 0 : index
    %c0_11 = arith.constant 0 : index
    %c0_12 = arith.constant 0 : index
    %18 = vector.load %arg4[%c0_10, %c0_11, %c0_12] : memref<1x32x16xf32, #tpu.memory_space<vmem>>, vector<1x32x16xf32>
    %19 = vector.shape_cast %18 : vector<1x32x16xf32> to vector<32x16xf32>
    %20 = vector.shape_cast %17 : vector<32x16xf32> to vector<1x32x16xf32>
    tpu.vector_store %arg4[%c0_10, %c0_11, %c0_12], %20 {strides = array<i32>} : memref<1x32x16xf32, #tpu.memory_space<vmem>>, vector<1x32x16xf32>,
    return
  }
  func.func @transform_0(%arg0: i32) -> (i32, i32, i32, i32) {
    %c0_i32 = arith.constant 0 : i32
    %c0_i32_0 = arith.constant 0 : i32
    %c0_i32_1 = arith.constant 0 : i32
    %c0_i32_2 = arith.constant 0 : i32
    return %arg0, %c0_i32, %c0_i32_0, %c0_i32_1 : i32, i32, i32, i32
  }
  func.func @transform_1(%arg0: i32) -> (i32, i32) {
    %c0_i32 = arith.constant 0 : i32
    %c0_i32_0 = arith.constant 0 : i32
    %c0_i32_1 = arith.constant 0 : i32
    return %c0_i32, %c0_i32_0 : i32, i32
  }
  func.func @transform_2(%arg0: i32) -> (i32, i32) {
    %c0_i32 = arith.constant 0 : i32
    %c0_i32_0 = arith.constant 0 : i32
    %c0_i32_1 = arith.constant 0 : i32
    return %c0_i32, %c0_i32_0 : i32, i32
  }
  func.func @transform_3(%arg0: i32) -> (i32, i32, i32) {
    %c0_i32 = arith.constant 0 : i32
    %c0_i32_0 = arith.constant 0 : i32
    %c0_i32_1 = arith.constant 0 : i32
    return %arg0, %c0_i32, %c0_i32_0 : i32, i32, i32
  }
}

</mosaic_0001>

<bundles_post_ra>
// kernel: tpu_custom_call.1
= control target key start
LH: loop header
LB: loop body
LE: loop exit
PB: predicated region body
PF: predicated region fallthrough
CT: control target
= control target key end

     0   :  { %s3114_s12 = smov 0   ;;  %s4197_s0 = inlined_call_operand.vmem [shape: f32[2,256,8,16], index: 0, kind: input, shape index: {}]   ;;  %s4198_s1 = inlined_call_operand.vmem [shape: f32[32,256], index: 1, kind: input, shape index: {}]   ;;  %s4199_s2 = inlined_call_operand.vmem [shape: f32[32,1], index: 2, kind: input, shape index: {}]   ;;  %s4200_s3 = inlined_call_operand.vmem [shape: f32[2,32,16], index: 3, kind: output, shape index: {}]  }
   0x1 LB: > { %s2959_s13 = sadd.s32 4294967295, %s3091_s12   ;;  %p2963_p0 = scmp.ge.s32.totalorder %s3091_s12, 1  ;;  %s3091_s12 = sphi %s3114_s12, %s13_s12  }
   0x2   : > { %p137_p1 = scmp.lt.s32.totalorder %s3091_s12, 3 }
   0x4   : > { %p138_p2 = pnand %p2963_p0, %p137_p1 }
   0x5   : > { %p161_p3 = scmp.lt.s32.totalorder (!%p138_p2), %s2959_s13, 1  ;;  %vm427_vm0 = vcmask (!%p138_p2), 130048   ;;  %vm2508_vm1 = vcmask (!%p138_p2), 1041409   ;;  %vm2510_vm2 = vcmask (!%p138_p2), 1042434   ;;  %vm2512_vm3 = vcmask (!%p138_p2), 1043459  }
   0x6   : > { %141 = sbr.rel (%p138_p2) target bundleno = 824 (0x338), region = 32  ;;  %vm2514_vm4 = vcmask (!%p138_p2), 1044484   ;;  %vm2516_vm5 = vcmask (!%p138_p2), 1045509   ;;  %vm2518_vm6 = vcmask (!%p138_p2), 1046534   ;;  %vm2520_vm7 = vcmask (!%p138_p2), 1047559  }
   0xd   : > { %s4202_s13 = smov (!%p161_p3, %s2959_s13), 1 }
   0xe   : > { %s2970_s14 = sshll.u32 %s4202_s13, 11 }
   0xf   : > { %s3128_s17 = scalar_lea.vmem %s4197_s0, %s2970_s14 }
  0x10   : > { %v299_v0 = vld [vmem:[%s3128_s17 + $0x400] sm:$0xff]  ;;  %v300_v1 = vld [vmem:[%s3128_s17 + $0x408] sm:$0xff]  ;;  %v301_v2 = vld [vmem:[%s3128_s17 + $0x410] sm:$0xff] }
  0x11   : > { %v302_v3 = vld [vmem:[%s3128_s17 + $0x418] sm:$0xff]  ;;  %v303_v4 = vld [vmem:[%s3128_s17 + $0x420] sm:$0xff]  ;;  %v304_v5 = vld [vmem:[%s3128_s17 + $0x428] sm:$0xff]  ;;  %v1324_v6 = vsel %vm427_vm0, %v299_v0, -inf  ;;  %v1331_v7 = vsel %vm427_vm0, %v300_v1, -inf  ;;  %v1338_v8 = vsel %vm427_vm0, %v301_v2, -inf }
  0x12   : > { %v305_v9 = vld [vmem:[%s3128_s17 + $0x430] sm:$0xff]  ;;  %v306_v10 = vld [vmem:[%s3128_s17 + $0x438] sm:$0xff]  ;;  %v1325_v11 = vrot.slane %v1324_v6, 4  ;;  %v1332_v12 = vrot.slane %v1331_v7, 4  ;;  %v1339_v13 = vrot.slane %v1338_v8, 4  ;;  %v1345_v14 = vsel %vm427_vm0, %v302_v3, -inf }
  0x13   : > { %v1352_v15 = vsel %vm427_vm0, %v303_v4, -inf  ;;  %v1359_v16 = vsel %vm427_vm0, %v304_v5, -inf  ;;  %v1346_v20 = vrot.slane %v1345_v14, 4  ;;  %v1366_v23 = vsel %vm427_vm0, %v305_v9, -inf  ;;  %v307_v45 = vld [vmem:[%s3128_s17 + $0x440] sm:$0xff]  ;;  %v308_v46 = vld [vmem:[%s3128_s17 + $0x448] sm:$0xff] }
  0x14   : > { %v1326_v17 = vmax.f32 %v1324_v6, %v1325_v11  ;;  %v1333_v18 = vmax.f32 %v1331_v7, %v1332_v12  ;;  %v1340_v19 = vmax.f32 %v1338_v8, %v1339_v13  ;;  %v1353_v21 = vrot.slane %v1352_v15, 4  ;;  %v309_v47 = vld [vmem:[%s3128_s17 + $0x450] sm:$0xff]  ;;  %v310_v56 = vld [vmem:[%s3128_s17 + $0x458] sm:$0xff]  ;;  %v311_v61 = vld [vmem:[%s3128_s17 + $0x460] sm:$0xff] }
  0x15   : > { %v1360_v22 = vrot.slane %v1359_v16, 4  ;;  %v1373_v24 = vsel %vm427_vm0, %v306_v10, -inf  ;;  %v1347_v28 = vmax.f32 %v1345_v14, %v1346_v20  ;;  %v1367_v31 = vrot.slane %v1366_v23, 4  ;;  %v312_v2 = vld [vmem:[%s3128_s17 + $0x468] sm:$0xff]  ;;  %v313_v7 = vld [vmem:[%s3128_s17 + $0x470] sm:$0xff]  ;;  %v314_v8 = vld [vmem:[%s3128_s17 + $0x478] sm:$0xff] }
  0x16   : > { %v1327_v25 = vrot.slane %v1326_v17, 2  ;;  %v1334_v26 = vrot.slane %v1333_v18, 2  ;;  %v1341_v27 = vrot.slane %v1340_v19, 2  ;;  %v1354_v29 = vmax.f32 %v1352_v15, %v1353_v21 }
  0x17   : > { %v1361_v30 = vmax.f32 %v1359_v16, %v1360_v22  ;;  %v1374_v32 = vrot.slane %v1373_v24, 4  ;;  %v1348_v36 = vrot.slane %v1347_v28, 2  ;;  %v1368_v39 = vmax.f32 %v1366_v23, %v1367_v31 }
  0x18   : > { %v1328_v33 = vmax.f32 %v1326_v17, %v1327_v25  ;;  %v1335_v34 = vmax.f32 %v1333_v18, %v1334_v26  ;;  %v1342_v35 = vmax.f32 %v1340_v19, %v1341_v27  ;;  %v1355_v37 = vrot.slane %v1354_v29, 2 }
  0x19   : > { %v1362_v38 = vrot.slane %v1361_v30, 2  ;;  %v1375_v40 = vmax.f32 %v1373_v24, %v1374_v32  ;;  %v1349_v44 = vmax.f32 %v1347_v28, %v1348_v36  ;;  %v1369_v50 = vrot.slane %v1368_v39, 2 }
  0x1a   : > { %v1329_v41 = vrot.slane %v1328_v33, 1  ;;  %v1336_v42 = vrot.slane %v1335_v34, 1  ;;  %v1343_v43 = vrot.slane %v1342_v35, 1  ;;  %v1356_v48 = vmax.f32 %v1354_v29, %v1355_v37 }
  0x1b   : > { %v1363_v49 = vmax.f32 %v1361_v30, %v1362_v38  ;;  %v1376_v51 = vrot.slane %v1375_v40, 2  ;;  %v1350_v55 = vrot.slane %v1349_v44, 1  ;;  %v1370_v59 = vmax.f32 %v1368_v39, %v1369_v50 }
  0x1c   : > { %v3149_v52 = vmax.f32 %v1328_v33, %v1329_v41  ;;  %v3151_v53 = vmax.f32 %v1335_v34, %v1336_v42  ;;  %v3153_v54 = vmax.f32 %v1342_v35, %v1343_v43  ;;  %v1357_v57 = vrot.slane %v1356_v48, 1 }
  0x1d   : > { %v1364_v58 = vrot.slane %v1363_v49, 1  ;;  %v1377_v60 = vmax.f32 %v1375_v40, %v1376_v51  ;;  %v3157_v62 = vmax.f32 %v1349_v44, %v1350_v55  ;;  %v1380_v63 = vsel %vm427_vm0, %v307_v45, -inf }
  0x1e   : > { %v1387_v0 = vsel %vm427_vm0, %v308_v46, -inf  ;;  %v1394_v1 = vsel %vm427_vm0, %v309_v47, -inf  ;;  %v3163_v3 = vmax.f32 %v1356_v48, %v1357_v57  ;;  %v1371_v5 = vrot.slane %v1370_v59, 1 }
  0x1f   : > { %v3165_v4 = vmax.f32 %v1363_v49, %v1364_v58  ;;  %v1378_v6 = vrot.slane %v1377_v60, 1  ;;  %v1381_v9 = vrot.slane %v1380_v63, 4  ;;  %v1388_v10 = vrot.slane %v1387_v0, 4  ;;  %v171_v49 = vld [vmem:[%s3128_s17] sm:$0xff] }
  0x20   : > { %v1395_v11 = vrot.slane %v1394_v1, 4  ;;  %v1401_v12 = vsel %vm427_vm0, %v310_v56, -inf  ;;  %v3170_v13 = vmax.f32 %v1370_v59, %v1371_v5  ;;  %v1408_v16 = vsel %vm427_vm0, %v311_v61, -inf  ;;  %v172_v61 = vld [vmem:[%s3128_s17 + $0x8] sm:$0xff] }
  0x21   : > { %v3172_v14 = vmax.f32 %v1377_v60, %v1378_v6  ;;  %v1402_v15 = vrot.slane %v1401_v12, 4  ;;  %v1382_v17 = vmax.f32 %v1380_v63, %v1381_v9  ;;  %v1389_v18 = vmax.f32 %v1387_v0, %v1388_v10 }
  0x22   : > { %v1396_v19 = vmax.f32 %v1394_v1, %v1395_v11  ;;  %v1409_v20 = vrot.slane %v1408_v16, 4  ;;  %v1415_v22 = vsel %vm427_vm0, %v312_v2, -inf  ;;  %v1422_v23 = vsel %vm427_vm0, %v313_v7, -inf  ;;  %v173_v11 = vld [vmem:[%s3128_s17 + $0x10] sm:$0xff] }
  0x23   : > { %v1403_v21 = vmax.f32 %v1401_v12, %v1402_v15  ;;  %v1429_v24 = vsel %vm427_vm0, %v314_v8, -inf  ;;  %v1383_v25 = vrot.slane %v1382_v17, 2  ;;  %v1390_v26 = vrot.slane %v1389_v18, 2  ;;  %v174_v12 = vld [vmem:[%s3128_s17 + $0x18] sm:$0xff] }
  0x24   : > { %v1397_v27 = vrot.slane %v1396_v19, 2  ;;  %v1410_v28 = vmax.f32 %v1408_v16, %v1409_v20  ;;  %v1416_v30 = vrot.slane %v1415_v22, 4  ;;  %v1423_v31 = vrot.slane %v1422_v23, 4 }
  0x25   : > { %v1404_v29 = vrot.slane %v1403_v21, 2  ;;  %v1430_v32 = vrot.slane %v1429_v24, 4  ;;  %v1384_v33 = vmax.f32 %v1382_v17, %v1383_v25  ;;  %v1391_v34 = vmax.f32 %v1389_v18, %v1390_v26  ;;  %v176_v26 = vld [vmem:[%s3128_s17 + $0x28] sm:$0xff] }
  0x26   : > { %v1398_v35 = vmax.f32 %v1396_v19, %v1397_v27  ;;  %v1411_v36 = vrot.slane %v1410_v28, 2  ;;  %v1417_v38 = vmax.f32 %v1415_v22, %v1416_v30  ;;  %v1424_v39 = vmax.f32 %v1422_v23, %v1423_v31 }
  0x27   : > { %v1405_v37 = vmax.f32 %v1403_v21, %v1404_v29  ;;  %v1431_v40 = vmax.f32 %v1429_v24, %v1430_v32  ;;  %v1385_v41 = vrot.slane %v1384_v33, 1  ;;  %v1392_v42 = vrot.slane %v1391_v34, 1 }
  0x28   : > { %v1399_v43 = vrot.slane %v1398_v35, 1  ;;  %v1412_v44 = vmax.f32 %v1410_v28, %v1411_v36  ;;  %v1418_v46 = vrot.slane %v1417_v38, 2  ;;  %v1425_v47 = vrot.slane %v1424_v39, 2 }
  0x29   : > { %v1406_v45 = vrot.slane %v1405_v37, 1  ;;  %v1432_v48 = vrot.slane %v1431_v40, 2  ;;  %v1386_v50 = vmax.f32 %v1384_v33, %v1385_v41  ;;  %v1393_v51 = vmax.f32 %v1391_v34, %v1392_v42  ;;  %v177_v33 = vld [vmem:[%s3128_s17 + $0x30] sm:$0xff]  ;;  %v178_v34 = vld [vmem:[%s3128_s17 + $0x38] sm:$0xff] }
  0x2a   : > { %v1400_v55 = vmax.f32 %v1398_v35, %v1399_v43  ;;  %v1413_v56 = vrot.slane %v1412_v44, 1  ;;  %v1419_v58 = vmax.f32 %v1417_v38, %v1418_v46  ;;  %v1426_v59 = vmax.f32 %v1424_v39, %v1425_v47 }
  0x2b   : > { %v1407_v57 = vmax.f32 %v1405_v37, %v1406_v45  ;;  %v1433_v60 = vmax.f32 %v1431_v40, %v1432_v48  ;;  %v2627_v0 = vsel %vm2508_vm1, %v3151_v53, %v3149_v52  ;;  %v2634_v1 = vsel %vm2508_vm1, %v1393_v51, %v1386_v50  ;;  %v179_v45 = vld [vmem:[%s3128_s17 + $0x40] sm:$0xff] }
  0x2c   : > { %v1414_v63 = vmax.f32 %v1412_v44, %v1413_v56  ;;  %v428_v2 = vsel %vm427_vm0, %v171_v49, -inf  ;;  %v1420_v5 = vrot.slane %v1419_v58, 1  ;;  %v1427_v6 = vrot.slane %v1426_v59, 1 }
  0x2d   : > { %v1434_v7 = vrot.slane %v1433_v60, 1  ;;  %v2628_v8 = vsel %vm2510_vm2, %v3153_v54, %v2627_v0  ;;  %v2635_v10 = vsel %vm2510_vm2, %v1400_v55, %v2634_v1  ;;  %v429_v15 = vrot.slane %v428_v2, 4 }
  0x2e   : > { %v2629_v9 = vsel %vm2512_vm3, %v3157_v62, %v2628_v8  ;;  %v435_v52 = vsel %vm427_vm0, %v172_v61, -inf  ;;  %v1421_v53 = vmax.f32 %v1419_v58, %v1420_v5  ;;  %v1428_v16 = vmax.f32 %v1426_v59, %v1427_v6  ;;  %v175_v62 = vld [vmem:[%s3128_s17 + $0x20] sm:$0xff] }
  0x2f   : > { %v1435_v17 = vmax.f32 %v1433_v60, %v1434_v7  ;;  %v2630_v18 = vsel %vm2514_vm4, %v3163_v3, %v2629_v9  ;;  %v2636_v19 = vsel %vm2512_vm3, %v1407_v57, %v2635_v10  ;;  %v430_v20 = vmax.f32 %v428_v2, %v429_v15  ;;  %v180_v57 = vld [vmem:[%s3128_s17 + $0x48] sm:$0xff]  ;;  %v181_v9 = vld [vmem:[%s3128_s17 + $0x50] sm:$0xff]  ;;  %v182_v10 = vld [vmem:[%s3128_s17 + $0x58] sm:$0xff] }
  0x30   : > { %v2631_v54 = vsel %vm2516_vm5, %v3165_v4, %v2630_v18  ;;  %v436_v21 = vrot.slane %v435_v52, 4  ;;  %v2637_v23 = vsel %vm2514_vm4, %v1414_v63, %v2636_v19  ;;  %v442_v24 = vsel %vm427_vm0, %v173_v11, -inf }
  0x31   : > { %v2632_v22 = vsel %vm2518_vm6, %v3170_v13, %v2631_v54  ;;  %v449_v25 = vsel %vm427_vm0, %v174_v12, -inf  ;;  %v2638_v4 = vsel %vm2516_vm5, %v1421_v53, %v2637_v23  ;;  %v431_v27 = vrot.slane %v430_v20, 2  ;;  %v183_v54 = vld [vmem:[%s3128_s17 + $0x60] sm:$0xff] }
  0x32   : > { %v2633_v3 = vsel %vm2520_vm7, %v3172_v14, %v2632_v22  ;;  %v437_v28 = vmax.f32 %v435_v52, %v436_v21  ;;  %v2639_v29 = vsel %vm2518_vm6, %v1428_v16, %v2638_v4  ;;  %v443_v30 = vrot.slane %v442_v24, 4 }
  0x33   : > { %v450_v31 = vrot.slane %v449_v25, 4  ;;  %v456_v13 = vsel %vm427_vm0, %v175_v62, -inf  ;;  %v2640_v32 = vsel %vm2520_vm7, %v1435_v17, %v2639_v29  ;;  %v432_v35 = vmax.f32 %v430_v20, %v431_v27 }
  0x34   : > { %v438_v36 = vrot.slane %v437_v28, 2  ;;  %v457_v37 = vrot.slane %v456_v13, 4  ;;  %v3016_v14 = vpack.c.bf16 %v2640_v32, %v2633_v3  ;;  %v444_v38 = vmax.f32 %v442_v24, %v443_v30  ;;  %v184_v3 = vld [vmem:[%s3128_s17 + $0x68] sm:$0xff]  ;;  %v185_v32 = vld [vmem:[%s3128_s17 + $0x70] sm:$0xff] }
  0x35   : > { %v451_v39 = vmax.f32 %v449_v25, %v450_v31  ;;  %v463_v40 = vsel %vm427_vm0, %v176_v26, -inf  ;;  %v433_v41 = vrot.slane %v432_v35, 1  ;;  %v470_v48 = vsel %vm427_vm0, %v177_v33, -inf  ;;  %v186_v33 = vld [vmem:[%s3128_s17 + $0x78] sm:$0xff] }
  0x36   : > { %v439_v42 = vmax.f32 %v437_v28, %v438_v36  ;;  %v458_v43 = vmax.f32 %v456_v13, %v457_v37  ;;  %v464_v44 = vrot.slane %v463_v40, 4  ;;  %3017 = vmatprep.subr.bf16.mxu0 %v3016_v14  ;;  %3048 = vmatprep.subr.bf16.mxu1 %v3016_v14  ;;  %v445_v46 = vrot.slane %v444_v38, 2 }
  0x37   : > { %v452_v47 = vrot.slane %v451_v39, 2  ;;  %v477_v49 = vsel %vm427_vm0, %v178_v34, -inf  ;;  %v3217_v50 = vmax.f32 %v432_v35, %v433_v41  ;;  %v471_v60 = vrot.slane %v470_v48, 4 }
  0x38   : > { %v440_v51 = vrot.slane %v439_v42, 1  ;;  %v459_v55 = vrot.slane %v458_v43, 2  ;;  %v465_v56 = vmax.f32 %v463_v40, %v464_v44  ;;  %v446_v58 = vmax.f32 %v444_v38, %v445_v46 }
  0x39   : > { %v453_v59 = vmax.f32 %v451_v39, %v452_v47  ;;  %v478_v61 = vrot.slane %v477_v49, 4  ;;  %v484_v2 = vsel %vm427_vm0, %v179_v45, -inf  ;;  %v472_v7 = vmax.f32 %v470_v48, %v471_v60 }
  0x3a   : > { %v3220_v63 = vmax.f32 %v439_v42, %v440_v51  ;;  %v460_v0 = vmax.f32 %v458_v43, %v459_v55  ;;  %v466_v1 = vrot.slane %v465_v56, 2  ;;  %v447_v5 = vrot.slane %v446_v58, 1 }
  0x3b   : > { %v454_v6 = vrot.slane %v453_v59, 1  ;;  %v479_v8 = vmax.f32 %v477_v49, %v478_v61  ;;  %v485_v15 = vrot.slane %v484_v2, 4  ;;  %v491_v52 = vsel %vm427_vm0, %v180_v57, -inf }
  0x3c   : > { %v461_v11 = vrot.slane %v460_v0, 1  ;;  %v467_v12 = vmax.f32 %v465_v56, %v466_v1  ;;  %v448_v53 = vmax.f32 %v446_v58, %v447_v5  ;;  %v473_v17 = vrot.slane %v472_v7, 2 }
  0x3d   : > { %v3226_v16 = vmax.f32 %v453_v59, %v454_v6  ;;  %v480_v18 = vrot.slane %v479_v8, 2  ;;  %v486_v20 = vmax.f32 %v484_v2, %v485_v15  ;;  %v492_v21 = vrot.slane %v491_v52, 4 }
  0x3e   : > { %v3229_v19 = vmax.f32 %v460_v0, %v461_v11  ;;  %v468_v62 = vrot.slane %v467_v12, 1  ;;  %v474_v22 = vmax.f32 %v472_v7, %v473_v17  ;;  %v498_v24 = vsel %vm427_vm0, %v181_v9, -inf  ;;  %v315_v9 = vld [vmem:[%s3128_s17 + $0x480] sm:$0xff] }
  0x3f   : > { %v481_v23 = vmax.f32 %v479_v8, %v480_v18  ;;  %v505_v25 = vsel %vm427_vm0, %v182_v10, -inf  ;;  %v487_v26 = vrot.slane %v486_v20, 2  ;;  %v493_v27 = vmax.f32 %v491_v52, %v492_v21 }
  0x40   : > { %v469_v4 = vmax.f32 %v467_v12, %v468_v62  ;;  %v499_v28 = vrot.slane %v498_v24, 4  ;;  %v475_v29 = vrot.slane %v474_v22, 1  ;;  %v506_v31 = vrot.slane %v505_v25, 4  ;;  %v316_v62 = vld [vmem:[%s3128_s17 + $0x488] sm:$0xff] }
  0x41   : > { %v482_v30 = vrot.slane %v481_v23, 1  ;;  %v512_v13 = vsel %vm427_vm0, %v183_v54, -inf  ;;  %v488_v34 = vmax.f32 %v486_v20, %v487_v26  ;;  %v494_v35 = vrot.slane %v493_v27, 2  ;;  %v317_v26 = vld [vmem:[%s3128_s17 + $0x490] sm:$0xff] }
  0x42   : > { %v500_v36 = vmax.f32 %v498_v24, %v499_v28  ;;  %v513_v37 = vrot.slane %v512_v13, 4  ;;  %v476_v14 = vmax.f32 %v474_v22, %v475_v29  ;;  %v507_v39 = vmax.f32 %v505_v25, %v506_v31 }
  0x43   : > { %v483_v38 = vmax.f32 %v481_v23, %v482_v30  ;;  %v519_v40 = vsel %vm427_vm0, %v184_v3, -inf  ;;  %v489_v41 = vrot.slane %v488_v34, 1  ;;  %v495_v42 = vmax.f32 %v493_v27, %v494_v35 }
  0x44   : > { %v501_v43 = vrot.slane %v500_v36, 2  ;;  %v514_v44 = vmax.f32 %v512_v13, %v513_v37  ;;  %v508_v45 = vrot.slane %v507_v39, 2  ;;  %v520_v46 = vrot.slane %v519_v40, 4  ;;  %v318_v13 = vld [vmem:[%s3128_s17 + $0x498] sm:$0xff] }
  0x45   : > { %v526_v47 = vsel %vm427_vm0, %v185_v32, -inf  ;;  %v533_v48 = vsel %vm427_vm0, %v186_v33, -inf  ;;  %v490_v49 = vmax.f32 %v488_v34, %v489_v41  ;;  %v496_v51 = vrot.slane %v495_v42, 1  ;;  %v320_v34 = vld [vmem:[%s3128_s17 + $0x4a8] sm:$0xff] }
  0x46   : > { %v502_v55 = vmax.f32 %v500_v36, %v501_v43  ;;  %v515_v56 = vrot.slane %v514_v44, 2  ;;  %v509_v57 = vmax.f32 %v507_v39, %v508_v45  ;;  %v521_v58 = vmax.f32 %v519_v40, %v520_v46 }
  0x47   : > { %v527_v59 = vrot.slane %v526_v47, 4  ;;  %v534_v60 = vrot.slane %v533_v48, 4  ;;  %v497_v61 = vmax.f32 %v495_v42, %v496_v51  ;;  %v2509_v2 = vsel %vm2508_vm1, %v3220_v63, %v3217_v50 }
  0x48   : > { %v503_v0 = vrot.slane %v502_v55, 1  ;;  %v516_v1 = vmax.f32 %v514_v44, %v515_v56  ;;  %v510_v5 = vrot.slane %v509_v57, 1  ;;  %v522_v6 = vrot.slane %v521_v58, 2  ;;  %v321_v44 = vld [vmem:[%s3128_s17 + $0x4b0] sm:$0xff] }
  0x49   : > { %v528_v7 = vmax.f32 %v526_v47, %v527_v59  ;;  %v535_v8 = vmax.f32 %v533_v48, %v534_v60  ;;  %v2511_v12 = vsel %vm2510_vm2, %v448_v53, %v2509_v2  ;;  %v2522_v15 = vsel %vm2508_vm1, %v497_v61, %v490_v49 }
  0x4a   : > { %v504_v10 = vmax.f32 %v502_v55, %v503_v0  ;;  %v517_v11 = vrot.slane %v516_v1, 1  ;;  %v511_v52 = vmax.f32 %v509_v57, %v510_v5  ;;  %v523_v17 = vmax.f32 %v521_v58, %v522_v6  ;;  %v322_v57 = vld [vmem:[%s3128_s17 + $0x4b8] sm:$0xff]  ;;  %v323_v5 = vld [vmem:[%s3128_s17 + $0x4c0] sm:$0xff] }
  0x4b   : > { %v529_v18 = vrot.slane %v528_v7, 2  ;;  %v536_v54 = vrot.slane %v535_v8, 2  ;;  %v2513_v50 = vsel %vm2512_vm3, %v3226_v16, %v2511_v12  ;;  %v1436_v21 = vsel %vm427_vm0, %v315_v9, -inf }
  0x4c   : > { %v518_v20 = vmax.f32 %v516_v1, %v517_v11  ;;  %v2523_v63 = vsel %vm2510_vm2, %v504_v10, %v2522_v15  ;;  %v524_v22 = vrot.slane %v523_v17, 1  ;;  %v2515_v24 = vsel %vm2514_vm4, %v3229_v19, %v2513_v50  ;;  %v319_v19 = vld [vmem:[%s3128_s17 + $0x4a0] sm:$0xff] }
  0x4d   : > { %v530_v53 = vmax.f32 %v528_v7, %v529_v18  ;;  %v537_v23 = vmax.f32 %v535_v8, %v536_v54  ;;  %v2517_v25 = vsel %vm2516_vm5, %v469_v4, %v2515_v24  ;;  %v2524_v3 = vsel %vm2512_vm3, %v511_v52, %v2523_v63  ;;  %v324_v52 = vld [vmem:[%s3128_s17 + $0x4c8] sm:$0xff] }
  0x4e   : > { %v1437_v27 = vrot.slane %v1436_v21, 4  ;;  %v1443_v16 = vsel %vm427_vm0, %v316_v62, -inf  ;;  %v525_v28 = vmax.f32 %v523_v17, %v524_v22  ;;  %v2519_v31 = vsel %vm2518_vm6, %v476_v14, %v2517_v25  ;;  %v325_v22 = vld [vmem:[%s3128_s17 + $0x4d0] sm:$0xff] }
  0x4f   : > { %v531_v29 = vrot.slane %v530_v53, 1  ;;  %v538_v30 = vrot.slane %v537_v23, 1  ;;  %v2521_v32 = vsel %vm2520_vm7, %v483_v38, %v2519_v31  ;;  %v2525_v33 = vsel %vm2514_vm4, %v518_v20, %v2524_v3 }
  0x50   : > { %v1438_v4 = vmax.f32 %v1436_v21, %v1437_v27  ;;  %v1444_v35 = vrot.slane %v1443_v16, 4  ;;  %v2526_v39 = vsel %vm2516_vm5, %v525_v28, %v2525_v33  ;;  %v1450_v40 = vsel %vm427_vm0, %v317_v26, -inf  ;;  %v326_v28 = vld [vmem:[%s3128_s17 + $0x4d8] sm:$0xff] }
  0x51   : > { %v532_v36 = vmax.f32 %v530_v53, %v531_v29  ;;  %v539_v37 = vmax.f32 %v537_v23, %v538_v30  ;;  %v1451_v14 = vrot.slane %v1450_v40, 4  ;;  %v1457_v43 = vsel %vm427_vm0, %v318_v13, -inf }
  0x52   : > { %v1439_v41 = vrot.slane %v1438_v4, 2  ;;  %v1445_v42 = vmax.f32 %v1443_v16, %v1444_v35  ;;  %v1458_v45 = vrot.slane %v1457_v43, 4  ;;  %v1464_v46 = vsel %vm427_vm0, %v319_v19, -inf }
  0x53   : > { %v2527_v38 = vsel %vm2518_vm6, %v532_v36, %v2526_v39  ;;  %v1471_v47 = vsel %vm427_vm0, %v320_v34, -inf  ;;  %v1452_v55 = vmax.f32 %v1450_v40, %v1451_v14  ;;  %v1465_v59 = vrot.slane %v1464_v46, 4  ;;  %v328_v40 = vld [vmem:[%s3128_s17 + $0x4e8] sm:$0xff] }
  0x54   : > { %v2528_v48 = vsel %vm2520_vm7, %v539_v37, %v2527_v38  ;;  %v1440_v49 = vmax.f32 %v1438_v4, %v1439_v41  ;;  %v1446_v51 = vrot.slane %v1445_v42, 2  ;;  %v1459_v58 = vmax.f32 %v1457_v43, %v1458_v45  ;;  %v329_v41 = vld [vmem:[%s3128_s17 + $0x4f0] sm:$0xff] }
  0x55   : > { %v3018_v56 = vpack.c.bf16 %v2528_v48, %v2521_v32  ;;  %v1472_v60 = vrot.slane %v1471_v47, 4  ;;  %v1453_v1 = vrot.slane %v1452_v55, 2  ;;  %v1478_v2 = vsel %vm427_vm0, %v321_v44, -inf  ;;  %v327_v32 = vld [vmem:[%s3128_s17 + $0x4e0] sm:$0xff] }
  0x56   : > { %v1441_v61 = vrot.slane %v1440_v49, 1  ;;  %v1447_v0 = vmax.f32 %v1445_v42, %v1446_v51  ;;  %v1460_v6 = vrot.slane %v1459_v58, 2  ;;  %v1466_v7 = vmax.f32 %v1464_v46, %v1465_v59 }
  0x57   : > { %3019 = vmatpush3.bf16.msra.mxu0 %v3018_v56  ;;  %3056 = vmatpush3.bf16.msra.mxu1 %v3018_v56  ;;  %v1473_v8 = vmax.f32 %v1471_v47, %v1472_v60  ;;  %v1479_v9 = vrot.slane %v1478_v2, 4  ;;  %v1454_v12 = vmax.f32 %v1452_v55, %v1453_v1  ;;  %v1485_v15 = vsel %vm427_vm0, %v322_v57, -inf  ;;  %v330_v56 = vld [vmem:[%s3128_s17 + $0x4f8] sm:$0xff] }
  0x58   : > { %v3274_v10 = vmax.f32 %v1440_v49, %v1441_v61  ;;  %v1448_v11 = vrot.slane %v1447_v0, 1  ;;  %v1461_v17 = vmax.f32 %v1459_v58, %v1460_v6  ;;  %v1467_v18 = vrot.slane %v1466_v7, 2 }
  0x59   : > { %v1474_v54 = vrot.slane %v1473_v8, 2  ;;  %v1480_v62 = vmax.f32 %v1478_v2, %v1479_v9  ;;  %v1455_v50 = vrot.slane %v1454_v12, 1  ;;  %v1486_v63 = vrot.slane %v1485_v15, 4 }
  0x5a   : > { %v3278_v20 = vmax.f32 %v1447_v0, %v1448_v11  ;;  %v1492_v21 = vsel %vm427_vm0, %v323_v5, -inf  ;;  %v1462_v53 = vrot.slane %v1461_v17, 1  ;;  %v1468_v23 = vmax.f32 %v1466_v7, %v1467_v18 }
  0x5b   : > { %v1475_v24 = vmax.f32 %v1473_v8, %v1474_v54  ;;  %v1481_v25 = vrot.slane %v1480_v62, 2  ;;  %v3282_v3 = vmax.f32 %v1454_v12, %v1455_v50  ;;  %v1487_v26 = vmax.f32 %v1485_v15, %v1486_v63 }
  0x5c   : > { %v1493_v27 = vrot.slane %v1492_v21, 4  ;;  %v1499_v16 = vsel %vm427_vm0, %v324_v52, -inf  ;;  %v3286_v29 = vmax.f32 %v1461_v17, %v1462_v53  ;;  %v1469_v30 = vrot.slane %v1468_v23, 1 }
  0x5d   : > { %v1476_v31 = vrot.slane %v1475_v24, 1  ;;  %v1482_v13 = vmax.f32 %v1480_v62, %v1481_v25  ;;  %v1488_v33 = vrot.slane %v1487_v26, 2  ;;  %v1500_v34 = vrot.slane %v1499_v16, 4 }
  0x5e   : > { %v1494_v19 = vmax.f32 %v1492_v21, %v1493_v27  ;;  %v1506_v4 = vsel %vm427_vm0, %v325_v22, -inf  ;;  %v1470_v35 = vmax.f32 %v1468_v23, %v1469_v30  ;;  %v1513_v38 = vsel %vm427_vm0, %v326_v28, -inf }
  0x5f   : > { %v1477_v36 = vmax.f32 %v1475_v24, %v1476_v31  ;;  %v1483_v37 = vrot.slane %v1482_v13, 1  ;;  %v1507_v39 = vrot.slane %v1506_v4, 4  ;;  %v1489_v42 = vmax.f32 %v1487_v26, %v1488_v33 }
  0x60   : > { %v1495_v14 = vrot.slane %v1494_v19, 2  ;;  %v1501_v43 = vmax.f32 %v1499_v16, %v1500_v34  ;;  %v1514_v46 = vrot.slane %v1513_v38, 4  ;;  %v1520_v47 = vsel %vm427_vm0, %v327_v32, -inf }
  0x61   : > { %v1484_v44 = vmax.f32 %v1482_v13, %v1483_v37  ;;  %v1508_v45 = vmax.f32 %v1506_v4, %v1507_v39  ;;  %v1490_v48 = vrot.slane %v1489_v42, 1  ;;  %v1521_v55 = vrot.slane %v1520_v47, 4  ;;  %v188_v39 = vld [vmem:[%s3128_s17 + $0x88] sm:$0xff] }
  0x62   : > { %v1496_v49 = vmax.f32 %v1494_v19, %v1495_v14  ;;  %v1502_v51 = vrot.slane %v1501_v43, 2  ;;  %v1515_v58 = vmax.f32 %v1513_v38, %v1514_v46  ;;  %v1527_v59 = vsel %vm427_vm0, %v328_v40, -inf  ;;  %v189_v40 = vld [vmem:[%s3128_s17 + $0x90] sm:$0xff]  ;;  %v191_v46 = vld [vmem:[%s3128_s17 + $0xa0] sm:$0xff] }
  0x63   : > { %v1509_v57 = vrot.slane %v1508_v45, 2  ;;  %v1534_v60 = vsel %vm427_vm0, %v329_v41, -inf  ;;  %v1491_v61 = vmax.f32 %v1489_v42, %v1490_v48  ;;  %v1522_v2 = vmax.f32 %v1520_v47, %v1521_v55  ;;  %v190_v41 = vld [vmem:[%s3128_s17 + $0x98] sm:$0xff]  ;;  %v192_v55 = vld [vmem:[%s3128_s17 + $0xa8] sm:$0xff] }
  0x64   : > { %v1497_v0 = vrot.slane %v1496_v49, 1  ;;  %v1503_v1 = vmax.f32 %v1501_v43, %v1502_v51  ;;  %v1516_v6 = vrot.slane %v1515_v58, 2  ;;  %v1528_v7 = vrot.slane %v1527_v59, 4 }
  0x65   : > { %v1510_v5 = vmax.f32 %v1508_v45, %v1509_v57  ;;  %v1535_v8 = vrot.slane %v1534_v60, 4  ;;  %v1523_v12 = vrot.slane %v1522_v2, 2  ;;  %v1541_v15 = vsel %vm427_vm0, %v330_v56, -inf  ;;  %v193_v56 = vld [vmem:[%s3128_s17 + $0xb0] sm:$0xff] }
  0x66   : > { %v1498_v9 = vmax.f32 %v1496_v49, %v1497_v0  ;;  %v1504_v11 = vrot.slane %v1503_v1, 1  ;;  %v1517_v17 = vmax.f32 %v1515_v58, %v1516_v6  ;;  %v1529_v18 = vmax.f32 %v1527_v59, %v1528_v7 }
  0x67   : > { %v1511_v52 = vrot.slane %v1510_v5, 1  ;;  %v1536_v54 = vmax.f32 %v1534_v60, %v1535_v8  ;;  %v1524_v50 = vmax.f32 %v1522_v2, %v1523_v12  ;;  %v1542_v63 = vrot.slane %v1541_v15, 4 }
  0x68   : > { %v1505_v62 = vmax.f32 %v1503_v1, %v1504_v11  ;;  %v2641_v21 = vsel %vm2508_vm1, %v3278_v20, %v3274_v10  ;;  %v1518_v53 = vrot.slane %v1517_v17, 1  ;;  %v1530_v23 = vrot.slane %v1529_v18, 2  ;;  %v187_v20 = vld [vmem:[%s3128_s17 + $0x80] sm:$0xff] }
  0x69   : > { %v1512_v22 = vmax.f32 %v1510_v5, %v1511_v52  ;;  %v1537_v24 = vrot.slane %v1536_v54, 2  ;;  %v1525_v25 = vrot.slane %v1524_v50, 1  ;;  %v1543_v26 = vmax.f32 %v1541_v15, %v1542_v63 }
  0x6a   : > { %v2642_v27 = vsel %vm2510_vm2, %v3282_v3, %v2641_v21  ;;  %v2648_v16 = vsel %vm2508_vm1, %v1505_v62, %v1498_v9  ;;  %v1519_v28 = vmax.f32 %v1517_v17, %v1518_v53  ;;  %v1531_v30 = vmax.f32 %v1529_v18, %v1530_v23  ;;  %v194_v9 = vld [vmem:[%s3128_s17 + $0xb8] sm:$0xff] }
  0x6b   : > { %v1538_v31 = vmax.f32 %v1536_v54, %v1537_v24  ;;  %v2643_v10 = vsel %vm2512_vm3, %v3286_v29, %v2642_v27  ;;  %v1526_v13 = vmax.f32 %v1524_v50, %v1525_v25  ;;  %v1544_v32 = vrot.slane %v1543_v26, 2  ;;  %v195_v25 = vld [vmem:[%s3128_s17 + $0xc0] sm:$0xff] }
  0x6c   : > { %v2644_v33 = vsel %vm2514_vm4, %v1470_v35, %v2643_v10  ;;  %v2649_v19 = vsel %vm2510_vm2, %v1512_v22, %v2648_v16  ;;  %v1532_v34 = vrot.slane %v1531_v30, 1  ;;  %v540_v35 = vsel %vm427_vm0, %v187_v20, -inf }
  0x6d   : > { %v1539_v3 = vrot.slane %v1538_v31, 1  ;;  %v2645_v4 = vsel %vm2516_vm5, %v1477_v36, %v2644_v33  ;;  %v2650_v37 = vsel %vm2512_vm3, %v1519_v28, %v2649_v19  ;;  %v1545_v29 = vmax.f32 %v1543_v26, %v1544_v32  ;;  %v197_v32 = vld [vmem:[%s3128_s17 + $0xd0] sm:$0xff] }
  0x6e   : > { %v2646_v42 = vsel %vm2518_vm6, %v1484_v44, %v2645_v4  ;;  %v2651_v14 = vsel %vm2514_vm4, %v1526_v13, %v2650_v37  ;;  %v1533_v43 = vmax.f32 %v1531_v30, %v1532_v34  ;;  %v541_v36 = vrot.slane %v540_v35, 4  ;;  %v196_v13 = vld [vmem:[%s3128_s17 + $0xc8] sm:$0xff] }
  0x6f   : > { %v1540_v38 = vmax.f32 %v1538_v31, %v1539_v3  ;;  %v2647_v45 = vsel %vm2520_vm7, %v1491_v61, %v2646_v42  ;;  %v1546_v47 = vrot.slane %v1545_v29, 1  ;;  %v547_v48 = vsel %vm427_vm0, %v188_v39, -inf }
  0x70   : > { %v554_v49 = vsel %vm427_vm0, %v189_v40, -inf  ;;  %v561_v51 = vsel %vm427_vm0, %v190_v41, -inf  ;;  %v2652_v44 = vsel %vm2516_vm5, %v1533_v43, %v2651_v14  ;;  %v542_v57 = vmax.f32 %v540_v35, %v541_v36  ;;  %v198_v41 = vld [vmem:[%s3128_s17 + $0xd8] sm:$0xff]  ;;  %v199_v36 = vld [vmem:[%s3128_s17 + $0xe0] sm:$0xff] }
  0x71   : > { %v548_v58 = vrot.slane %v547_v48, 4  ;;  %v555_v59 = vrot.slane %v554_v49, 4  ;;  %v1547_v60 = vmax.f32 %v1545_v29, %v1546_v47  ;;  %v2653_v61 = vsel %vm2518_vm6, %v1540_v38, %v2652_v44  ;;  %v200_v44 = vld [vmem:[%s3128_s17 + $0xe8] sm:$0xff] }
  0x72   : > { %v562_v0 = vrot.slane %v561_v51, 4  ;;  %v568_v1 = vsel %vm427_vm0, %v191_v46, -inf  ;;  %v543_v2 = vrot.slane %v542_v57, 2  ;;  %v575_v12 = vsel %vm427_vm0, %v192_v55, -inf }
  0x73   : > { %v549_v5 = vmax.f32 %v547_v48, %v548_v58  ;;  %v556_v6 = vmax.f32 %v554_v49, %v555_v59  ;;  %v569_v7 = vrot.slane %v568_v1, 4  ;;  %v2654_v8 = vsel %vm2520_vm7, %v1547_v60, %v2653_v61 }
  0x74   : > { %v563_v11 = vmax.f32 %v561_v51, %v562_v0  ;;  %v582_v15 = vsel %vm427_vm0, %v193_v56, -inf  ;;  %v3020_v52 = vpack.c.bf16 %v2654_v8, %v2647_v45  ;;  %v544_v17 = vmax.f32 %v542_v57, %v543_v2 }
  0x75   : > { %v550_v18 = vrot.slane %v549_v5, 2  ;;  %v557_v54 = vrot.slane %v556_v6, 2  ;;  %v570_v50 = vmax.f32 %v568_v1, %v569_v7  ;;  %v576_v63 = vrot.slane %v575_v12, 4  ;;  %v201_v1 = vld [vmem:[%s3128_s17 + $0xf0] sm:$0xff] }
  0x76   : > { %v564_v62 = vrot.slane %v563_v11, 2  ;;  %v583_v21 = vrot.slane %v582_v15, 4  ;;  %3021 = vmatprep.subr.bf16.mxu0 %v3020_v52  ;;  %3049 = vmatprep.subr.bf16.mxu1 %v3020_v52  ;;  %v545_v22 = vrot.slane %v544_v17, 1  ;;  %v589_v24 = vsel %vm427_vm0, %v194_v9, -inf }
  0x77   : > { %v551_v53 = vmax.f32 %v549_v5, %v550_v18  ;;  %v558_v23 = vmax.f32 %v556_v6, %v557_v54  ;;  %v571_v27 = vrot.slane %v570_v50, 2  ;;  %v577_v16 = vmax.f32 %v575_v12, %v576_v63 }
  0x78   : > { %v565_v26 = vmax.f32 %v563_v11, %v564_v62  ;;  %v584_v28 = vmax.f32 %v582_v15, %v583_v21  ;;  %v3333_v30 = vmax.f32 %v544_v17, %v545_v22  ;;  %v590_v20 = vrot.slane %v589_v24, 4  ;;  %v202_v15 = vld [vmem:[%s3128_s17 + $0xf8] sm:$0xff] }
  0x79   : > { %v552_v31 = vrot.slane %v551_v53, 1  ;;  %v559_v10 = vrot.slane %v558_v23, 1  ;;  %v572_v19 = vmax.f32 %v570_v50, %v571_v27  ;;  %v578_v34 = vrot.slane %v577_v16, 2 }
  0x7a   : > { %v566_v33 = vrot.slane %v565_v26, 1  ;;  %v585_v3 = vrot.slane %v584_v28, 2  ;;  %v591_v39 = vmax.f32 %v589_v24, %v590_v20  ;;  %v596_v40 = vsel %vm427_vm0, %v195_v25, -inf }
  0x7b   : > { %v3337_v4 = vmax.f32 %v551_v53, %v552_v31  ;;  %v3339_v37 = vmax.f32 %v558_v23, %v559_v10  ;;  %v573_v42 = vrot.slane %v572_v19, 1  ;;  %v579_v14 = vmax.f32 %v577_v16, %v578_v34 }
  0x7c   : > { %v3343_v29 = vmax.f32 %v565_v26, %v566_v33  ;;  %v586_v35 = vmax.f32 %v584_v28, %v585_v3  ;;  %v592_v43 = vrot.slane %v591_v39, 2  ;;  %v597_v38 = vrot.slane %v596_v40, 4 }
  0x7d   : > { %v603_v45 = vsel %vm427_vm0, %v196_v13, -inf  ;;  %v610_v46 = vsel %vm427_vm0, %v197_v32, -inf  ;;  %v3348_v47 = vmax.f32 %v572_v19, %v573_v42  ;;  %v580_v48 = vrot.slane %v579_v14, 1 }
  0x7e   : > { %v587_v49 = vrot.slane %v586_v35, 1  ;;  %v604_v51 = vrot.slane %v603_v45, 4  ;;  %v593_v55 = vmax.f32 %v591_v39, %v592_v43  ;;  %v598_v56 = vmax.f32 %v596_v40, %v597_v38 }
  0x7f   : > { %v611_v57 = vrot.slane %v610_v46, 4  ;;  %v617_v58 = vsel %vm427_vm0, %v198_v41, -inf  ;;  %v581_v59 = vmax.f32 %v579_v14, %v580_v48  ;;  %v624_v7 = vsel %vm427_vm0, %v199_v36, -inf  ;;  %v331_v36 = vld [vmem:[%s3128_s17 + $0x500] sm:$0xff] }
  0x80   : > { %v3352_v60 = vmax.f32 %v586_v35, %v587_v49  ;;  %v605_v61 = vmax.f32 %v603_v45, %v604_v51  ;;  %v618_v0 = vrot.slane %v617_v58, 4  ;;  %v594_v2 = vrot.slane %v593_v55, 1 }
  0x81   : > { %v599_v5 = vrot.slane %v598_v56, 2  ;;  %v612_v6 = vmax.f32 %v610_v46, %v611_v57  ;;  %v625_v11 = vrot.slane %v624_v7, 4  ;;  %v631_v12 = vsel %vm427_vm0, %v200_v44, -inf  ;;  %v334_v57 = vld [vmem:[%s3128_s17 + $0x518] sm:$0xff] }
  0x82   : > { %v606_v8 = vrot.slane %v605_v61, 2  ;;  %v619_v9 = vmax.f32 %v617_v58, %v618_v0  ;;  %v595_v52 = vmax.f32 %v593_v55, %v594_v2  ;;  %v632_v54 = vrot.slane %v631_v12, 4 }
  0x83   : > { %v600_v17 = vmax.f32 %v598_v56, %v599_v5  ;;  %v613_v18 = vrot.slane %v612_v6, 2  ;;  %v626_v63 = vmax.f32 %v624_v7, %v625_v11  ;;  %v638_v21 = vsel %vm427_vm0, %v201_v1, -inf  ;;  %v332_v56 = vld [vmem:[%s3128_s17 + $0x508] sm:$0xff] }
  0x84   : > { %v607_v62 = vmax.f32 %v605_v61, %v606_v8  ;;  %v620_v50 = vrot.slane %v619_v9, 2  ;;  %v633_v23 = vmax.f32 %v631_v12, %v632_v54  ;;  %v639_v24 = vrot.slane %v638_v21, 4 }
  0x85   : > { %v601_v22 = vrot.slane %v600_v17, 1  ;;  %v614_v53 = vmax.f32 %v612_v6, %v613_v18  ;;  %v627_v27 = vrot.slane %v626_v63, 2  ;;  %v645_v16 = vsel %vm427_vm0, %v202_v15, -inf  ;;  %v336_v6 = vld [vmem:[%s3128_s17 + $0x528] sm:$0xff]  ;;  %v337_v15 = vld [vmem:[%s3128_s17 + $0x530] sm:$0xff] }
  0x86   : > { %v608_v25 = vrot.slane %v607_v62, 1  ;;  %v621_v26 = vmax.f32 %v619_v9, %v620_v50  ;;  %v634_v10 = vrot.slane %v633_v23, 2  ;;  %v640_v20 = vmax.f32 %v638_v21, %v639_v24 }
  0x87   : > { %v602_v28 = vmax.f32 %v600_v17, %v601_v22  ;;  %v615_v31 = vrot.slane %v614_v53, 1  ;;  %v628_v33 = vmax.f32 %v626_v63, %v627_v27  ;;  %v646_v19 = vrot.slane %v645_v16, 4 }
  0x88   : > { %v609_v13 = vmax.f32 %v607_v62, %v608_v25  ;;  %v622_v32 = vrot.slane %v621_v26, 1  ;;  %v635_v3 = vmax.f32 %v633_v23, %v634_v10  ;;  %v641_v39 = vrot.slane %v640_v20, 2  ;;  %v338_v25 = vld [vmem:[%s3128_s17 + $0x538] sm:$0xff] }
  0x89   : > { %v616_v34 = vmax.f32 %v614_v53, %v615_v31  ;;  %v2529_v40 = vsel %vm2508_vm1, %v3337_v4, %v3333_v30  ;;  %v629_v42 = vrot.slane %v628_v33, 1  ;;  %v647_v14 = vmax.f32 %v645_v16, %v646_v19 }
  0x8a   : > { %v623_v41 = vmax.f32 %v621_v26, %v622_v32  ;;  %v2530_v35 = vsel %vm2510_vm2, %v3339_v37, %v2529_v40  ;;  %v636_v43 = vrot.slane %v635_v3, 1  ;;  %v642_v38 = vmax.f32 %v640_v20, %v641_v39 }
  0x8b   : > { %v2531_v45 = vsel %vm2512_vm3, %v3343_v29, %v2530_v35  ;;  %v2536_v46 = vsel %vm2508_vm1, %v609_v13, %v602_v28  ;;  %v630_v48 = vmax.f32 %v628_v33, %v629_v42  ;;  %v648_v49 = vrot.slane %v647_v14, 2  ;;  %v333_v29 = vld [vmem:[%s3128_s17 + $0x510] sm:$0xff] }
  0x8c   : > { %v2532_v30 = vsel %vm2514_vm4, %v3348_v47, %v2531_v45  ;;  %v2537_v4 = vsel %vm2510_vm2, %v616_v34, %v2536_v46  ;;  %v637_v51 = vmax.f32 %v635_v3, %v636_v43  ;;  %v643_v37 = vrot.slane %v642_v38, 1 }
  0x8d   : > { %v2533_v44 = vsel %vm2516_vm5, %v581_v59, %v2532_v30  ;;  %v2538_v55 = vsel %vm2512_vm3, %v623_v41, %v2537_v4  ;;  %v649_v58 = vmax.f32 %v647_v14, %v648_v49  ;;  %v1548_v0 = vsel %vm427_vm0, %v331_v36, -inf  ;;  %v335_v59 = vld [vmem:[%s3128_s17 + $0x520] sm:$0xff]  ;;  %v341_v49 = vld [vmem:[%s3128_s17 + $0x550] sm:$0xff] }
  0x8e   : > { %v2534_v61 = vsel %vm2518_vm6, %v3352_v60, %v2533_v44  ;;  %v2539_v47 = vsel %vm2514_vm4, %v630_v48, %v2538_v55  ;;  %v644_v1 = vmax.f32 %v642_v38, %v643_v37  ;;  %v1549_v7 = vrot.slane %v1548_v0, 4  ;;  %v339_v41 = vld [vmem:[%s3128_s17 + $0x540] sm:$0xff]  ;;  %v340_v48 = vld [vmem:[%s3128_s17 + $0x548] sm:$0xff] }
  0x8f   : > { %v2535_v2 = vsel %vm2520_vm7, %v595_v52, %v2534_v61  ;;  %v2540_v5 = vsel %vm2516_vm5, %v637_v51, %v2539_v47  ;;  %v650_v8 = vrot.slane %v649_v58, 1  ;;  %v1555_v9 = vsel %vm427_vm0, %v332_v56, -inf }
  0x90   : > { %v1562_v11 = vsel %vm427_vm0, %v333_v29, -inf  ;;  %v1569_v60 = vsel %vm427_vm0, %v334_v57, -inf  ;;  %v2541_v12 = vsel %vm2518_vm6, %v644_v1, %v2540_v5  ;;  %v1550_v17 = vmax.f32 %v1548_v0, %v1549_v7  ;;  %v342_v57 = vld [vmem:[%s3128_s17 + $0x558] sm:$0xff]  ;;  %v343_v1 = vld [vmem:[%s3128_s17 + $0x560] sm:$0xff] }
  0x91   : > { %v1556_v18 = vrot.slane %v1555_v9, 4  ;;  %v1563_v54 = vrot.slane %v1562_v11, 4  ;;  %v651_v52 = vmax.f32 %v649_v58, %v650_v8  ;;  %v1570_v62 = vrot.slane %v1569_v60, 4 }
  0x92   : > { %v1576_v50 = vsel %vm427_vm0, %v335_v59, -inf  ;;  %v1583_v63 = vsel %vm427_vm0, %v336_v6, -inf  ;;  %v1551_v21 = vrot.slane %v1550_v17, 2  ;;  %v1590_v16 = vsel %vm427_vm0, %v337_v15, -inf }
  0x93   : > { %v1557_v22 = vmax.f32 %v1555_v9, %v1556_v18  ;;  %v1564_v53 = vmax.f32 %v1562_v11, %v1563_v54  ;;  %v1577_v23 = vrot.slane %v1576_v50, 4  ;;  %v2542_v24 = vsel %vm2520_vm7, %v651_v52, %v2541_v12  ;;  %v345_v12 = vld [vmem:[%s3128_s17 + $0x570] sm:$0xff] }
  0x94   : > { %v1571_v26 = vmax.f32 %v1569_v60, %v1570_v62  ;;  %v1584_v27 = vrot.slane %v1583_v63, 4  ;;  %v3022_v28 = vpack.c.bf16 %v2542_v24, %v2535_v2  ;;  %v1552_v31 = vmax.f32 %v1550_v17, %v1551_v21  ;;  %v344_v60 = vld [vmem:[%s3128_s17 + $0x568] sm:$0xff]  ;;  %v346_v24 = vld [vmem:[%s3128_s17 + $0x578] sm:$0xff] }
  0x95   : > { %v1558_v10 = vrot.slane %v1557_v22, 2  ;;  %v1565_v20 = vrot.slane %v1564_v53, 2  ;;  %v1578_v32 = vmax.f32 %v1576_v50, %v1577_v23  ;;  %v1591_v19 = vrot.slane %v1590_v16, 4 }
  0x96   : > { %v1572_v13 = vrot.slane %v1571_v26, 2  ;;  %v1585_v33 = vmax.f32 %v1583_v63, %v1584_v27  ;;  %3023 = vmatpush3.bf16.msra.mxu0 %v3022_v28  ;;  %3057 = vmatpush3.bf16.msra.mxu1 %v3022_v28  ;;  %v1553_v34 = vrot.slane %v1552_v31, 1  ;;  %v1597_v40 = vsel %vm427_vm0, %v338_v25, -inf }
  0x97   : > { %v1559_v3 = vmax.f32 %v1557_v22, %v1558_v10  ;;  %v1566_v39 = vmax.f32 %v1564_v53, %v1565_v20  ;;  %v1579_v14 = vrot.slane %v1578_v32, 2  ;;  %v1592_v43 = vmax.f32 %v1590_v16, %v1591_v19 }
  0x98   : > { %v1573_v42 = vmax.f32 %v1571_v26, %v1572_v13  ;;  %v1586_v35 = vrot.slane %v1585_v33, 2  ;;  %v3397_v38 = vmax.f32 %v1552_v31, %v1553_v34  ;;  %v1598_v36 = vrot.slane %v1597_v40, 4 }
  0x99   : > { %v1560_v45 = vrot.slane %v1559_v3, 1  ;;  %v1567_v46 = vrot.slane %v1566_v39, 1  ;;  %v1580_v4 = vmax.f32 %v1578_v32, %v1579_v14  ;;  %v1593_v37 = vrot.slane %v1592_v43, 2 }
  0x9a   : > { %v1574_v30 = vrot.slane %v1573_v42, 1  ;;  %v1587_v51 = vmax.f32 %v1585_v33, %v1586_v35  ;;  %v1599_v56 = vmax.f32 %v1597_v40, %v1598_v36  ;;  %v1604_v29 = vsel %vm427_vm0, %v339_v41, -inf }
  0x9b   : > { %v3401_v44 = vmax.f32 %v1559_v3, %v1560_v45  ;;  %v3403_v55 = vmax.f32 %v1566_v39, %v1567_v46  ;;  %v1581_v61 = vrot.slane %v1580_v4, 1  ;;  %v1594_v0 = vmax.f32 %v1592_v43, %v1593_v37 }
  0x9c   : > { %v3407_v58 = vmax.f32 %v1573_v42, %v1574_v30  ;;  %v1588_v47 = vrot.slane %v1587_v51, 1  ;;  %v1600_v2 = vrot.slane %v1599_v56, 2  ;;  %v1605_v5 = vrot.slane %v1604_v29, 4 }
  0x9d   : > { %v1611_v59 = vsel %vm427_vm0, %v340_v48, -inf  ;;  %v1618_v6 = vsel %vm427_vm0, %v341_v49, -inf  ;;  %v3412_v7 = vmax.f32 %v1580_v4, %v1581_v61  ;;  %v1595_v9 = vrot.slane %v1594_v0, 1 }
  0x9e   : > { %v3414_v8 = vmax.f32 %v1587_v51, %v1588_v47  ;;  %v1612_v11 = vrot.slane %v1611_v59, 4  ;;  %v1601_v15 = vmax.f32 %v1599_v56, %v1600_v2  ;;  %v1606_v17 = vmax.f32 %v1604_v29, %v1605_v5 }
  0x9f   : > { %v1619_v18 = vrot.slane %v1618_v6, 4  ;;  %v1625_v54 = vsel %vm427_vm0, %v342_v57, -inf  ;;  %v3419_v52 = vmax.f32 %v1594_v0, %v1595_v9  ;;  %v1632_v63 = vsel %vm427_vm0, %v343_v1, -inf  ;;  %v203_v1 = vld [vmem:[%s3128_s17 + $0x100] sm:$0xff] }
  0xa0   : > { %v1613_v62 = vmax.f32 %v1611_v59, %v1612_v11  ;;  %v1626_v50 = vrot.slane %v1625_v54, 4  ;;  %v1602_v21 = vrot.slane %v1601_v15, 1  ;;  %v1607_v22 = vrot.slane %v1606_v17, 2 }
  0xa1   : > { %v1620_v53 = vmax.f32 %v1618_v6, %v1619_v18  ;;  %v1633_v23 = vrot.slane %v1632_v63, 4  ;;  %v1639_v27 = vsel %vm427_vm0, %v344_v60, -inf  ;;  %v1646_v16 = vsel %vm427_vm0, %v345_v12, -inf  ;;  %v204_v60 = vld [vmem:[%s3128_s17 + $0x108] sm:$0xff] }
  0xa2   : > { %v1614_v25 = vrot.slane %v1613_v62, 2  ;;  %v1627_v26 = vmax.f32 %v1625_v54, %v1626_v50  ;;  %v1603_v28 = vmax.f32 %v1601_v15, %v1602_v21  ;;  %v1608_v31 = vmax.f32 %v1606_v17, %v1607_v22  ;;  %v205_v17 = vld [vmem:[%s3128_s17 + $0x110] sm:$0xff]  ;;  %v207_v22 = vld [vmem:[%s3128_s17 + $0x120] sm:$0xff] }
  0xa3   : > { %v1621_v10 = vrot.slane %v1620_v53, 2  ;;  %v1634_v20 = vmax.f32 %v1632_v63, %v1633_v23  ;;  %v1640_v33 = vrot.slane %v1639_v27, 4  ;;  %v1647_v19 = vrot.slane %v1646_v16, 4 }
  0xa4   : > { %v1615_v13 = vmax.f32 %v1613_v62, %v1614_v25  ;;  %v1628_v32 = vrot.slane %v1627_v26, 2  ;;  %v1609_v34 = vrot.slane %v1608_v31, 1  ;;  %v1653_v40 = vsel %vm427_vm0, %v346_v24, -inf }
  0xa5   : > { %v1622_v3 = vmax.f32 %v1620_v53, %v1621_v10  ;;  %v1635_v39 = vrot.slane %v1634_v20, 2  ;;  %v1641_v14 = vmax.f32 %v1639_v27, %v1640_v33  ;;  %v1648_v35 = vmax.f32 %v1646_v16, %v1647_v19  ;;  %v208_v53 = vld [vmem:[%s3128_s17 + $0x128] sm:$0xff] }
  0xa6   : > { %v1616_v41 = vrot.slane %v1615_v13, 1  ;;  %v1629_v42 = vmax.f32 %v1627_v26, %v1628_v32  ;;  %v1610_v43 = vmax.f32 %v1608_v31, %v1609_v34  ;;  %v1654_v36 = vrot.slane %v1653_v40, 4 }
  0xa7   : > { %v1623_v45 = vrot.slane %v1622_v3, 1  ;;  %v1636_v46 = vmax.f32 %v1634_v20, %v1635_v39  ;;  %v1642_v30 = vrot.slane %v1641_v14, 2  ;;  %v1649_v4 = vrot.slane %v1648_v35, 2  ;;  %v209_v20 = vld [vmem:[%s3128_s17 + $0x130] sm:$0xff] }
  0xa8   : > { %v1617_v48 = vmax.f32 %v1615_v13, %v1616_v41  ;;  %v1630_v49 = vrot.slane %v1629_v42, 1  ;;  %v1655_v56 = vmax.f32 %v1653_v40, %v1654_v36  ;;  %v2655_v29 = vsel %vm2508_vm1, %v3401_v44, %v3397_v38  ;;  %v210_v41 = vld [vmem:[%s3128_s17 + $0x138] sm:$0xff] }
  0xa9   : > { %v1624_v51 = vmax.f32 %v1622_v3, %v1623_v45  ;;  %v1637_v37 = vrot.slane %v1636_v46, 1  ;;  %v1643_v61 = vmax.f32 %v1641_v14, %v1642_v30  ;;  %v1650_v47 = vmax.f32 %v1648_v35, %v1649_v4 }
  0xaa   : > { %v1631_v57 = vmax.f32 %v1629_v42, %v1630_v49  ;;  %v2656_v0 = vsel %vm2510_vm2, %v3403_v55, %v2655_v29  ;;  %v1656_v5 = vrot.slane %v1655_v56, 2  ;;  %v2662_v6 = vsel %vm2508_vm1, %v1617_v48, %v1610_v43 }
  0xab   : > { %v1638_v2 = vmax.f32 %v1636_v46, %v1637_v37  ;;  %v2657_v59 = vsel %vm2512_vm3, %v3407_v58, %v2656_v0  ;;  %v1644_v9 = vrot.slane %v1643_v61, 1  ;;  %v1651_v11 = vrot.slane %v1650_v47, 1  ;;  %v206_v58 = vld [vmem:[%s3128_s17 + $0x118] sm:$0xff] }
  0xac   : > { %v2658_v38 = vsel %vm2514_vm4, %v3412_v7, %v2657_v59  ;;  %v2663_v44 = vsel %vm2510_vm2, %v1624_v51, %v2662_v6  ;;  %v1657_v12 = vmax.f32 %v1655_v56, %v1656_v5  ;;  %v652_v18 = vsel %vm427_vm0, %v203_v1, -inf }
  0xad   : > { %v2659_v55 = vsel %vm2516_vm5, %v3414_v8, %v2658_v38  ;;  %v2664_v15 = vsel %vm2512_vm3, %v1631_v57, %v2663_v44  ;;  %v1645_v54 = vmax.f32 %v1643_v61, %v1644_v9  ;;  %v1652_v62 = vmax.f32 %v1650_v47, %v1651_v11  ;;  %v211_v57 = vld [vmem:[%s3128_s17 + $0x140] sm:$0xff]  ;;  %v212_v9 = vld [vmem:[%s3128_s17 + $0x148] sm:$0xff]  ;;  %v213_v11 = vld [vmem:[%s3128_s17 + $0x150] sm:$0xff] }
  0xae   : > { %v2660_v50 = vsel %vm2518_vm6, %v3419_v52, %v2659_v55  ;;  %v2665_v7 = vsel %vm2514_vm4, %v1638_v2, %v2664_v15  ;;  %v1658_v63 = vrot.slane %v1657_v12, 1  ;;  %v653_v8 = vrot.slane %v652_v18, 4 }
  0xaf   : > { %v2661_v21 = vsel %vm2520_vm7, %v1603_v28, %v2660_v50  ;;  %v659_v23 = vsel %vm427_vm0, %v204_v60, -inf  ;;  %v2666_v24 = vsel %vm2516_vm5, %v1645_v54, %v2665_v7  ;;  %v666_v26 = vsel %vm427_vm0, %v205_v17, -inf  ;;  %v215_v54 = vld [vmem:[%s3128_s17 + $0x160] sm:$0xff] }
  0xb0   : > { %v660_v25 = vrot.slane %v659_v23, 4  ;;  %v673_v27 = vsel %vm427_vm0, %v206_v58, -inf  ;;  %v1659_v52 = vmax.f32 %v1657_v12, %v1658_v63  ;;  %v2667_v16 = vsel %vm2518_vm6, %v1652_v62, %v2666_v24 }
  0xb1   : > { %v654_v31 = vmax.f32 %v652_v18, %v653_v8  ;;  %v667_v10 = vrot.slane %v666_v26, 4  ;;  %v674_v13 = vrot.slane %v673_v27, 4  ;;  %v680_v32 = vsel %vm427_vm0, %v207_v22, -inf  ;;  %v214_v18 = vld [vmem:[%s3128_s17 + $0x158] sm:$0xff] }
  0xb2   : > { %v661_v28 = vmax.f32 %v659_v23, %v660_v25  ;;  %v687_v33 = vsel %vm427_vm0, %v208_v53, -inf  ;;  %v2668_v19 = vsel %vm2520_vm7, %v1659_v52, %v2667_v16  ;;  %v681_v39 = vrot.slane %v680_v32, 4  ;;  %v216_v23 = vld [vmem:[%s3128_s17 + $0x168] sm:$0xff] }
  0xb3   : > { %v655_v34 = vrot.slane %v654_v31, 2  ;;  %v668_v3 = vmax.f32 %v666_v26, %v667_v10  ;;  %v3024_v40 = vpack.c.bf16 %v2668_v19, %v2661_v21  ;;  %v675_v14 = vmax.f32 %v673_v27, %v674_v13 }
  0xb4   : > { %v662_v42 = vrot.slane %v661_v28, 2  ;;  %v688_v35 = vrot.slane %v687_v33, 4  ;;  %v682_v46 = vmax.f32 %v680_v32, %v681_v39  ;;  %v694_v36 = vsel %vm427_vm0, %v209_v20, -inf  ;;  %v217_v20 = vld [vmem:[%s3128_s17 + $0x170] sm:$0xff] }
  0xb5   : > { %v656_v43 = vmax.f32 %v654_v31, %v655_v34  ;;  %v669_v45 = vrot.slane %v668_v3, 2  ;;  %3025 = vmatprep.subr.bf16.mxu0 %v3024_v40  ;;  %3050 = vmatprep.subr.bf16.mxu1 %v3024_v40  ;;  %v676_v49 = vrot.slane %v675_v14, 2  ;;  %v695_v4 = vrot.slane %v694_v36, 4  ;;  %v218_v40 = vld [vmem:[%s3128_s17 + $0x178] sm:$0xff] }
  0xb6   : > { %v663_v48 = vmax.f32 %v661_v28, %v662_v42  ;;  %v689_v30 = vmax.f32 %v687_v33, %v688_v35  ;;  %v683_v56 = vrot.slane %v682_v46, 2  ;;  %v701_v29 = vsel %vm427_vm0, %v210_v41, -inf }
  0xb7   : > { %v657_v51 = vrot.slane %v656_v43, 1  ;;  %v670_v37 = vmax.f32 %v668_v3, %v669_v45  ;;  %v677_v47 = vmax.f32 %v675_v14, %v676_v49  ;;  %v696_v1 = vmax.f32 %v694_v36, %v695_v4 }
  0xb8   : > { %v664_v61 = vrot.slane %v663_v48, 1  ;;  %v690_v0 = vrot.slane %v689_v30, 2  ;;  %v684_v59 = vmax.f32 %v682_v46, %v683_v56  ;;  %v702_v6 = vrot.slane %v701_v29, 4 }
  0xb9   : > { %v3464_v2 = vmax.f32 %v656_v43, %v657_v51  ;;  %v671_v5 = vrot.slane %v670_v37, 1  ;;  %v678_v44 = vrot.slane %v677_v47, 1  ;;  %v697_v12 = vrot.slane %v696_v1, 2 }
  0xba   : > { %v3468_v38 = vmax.f32 %v663_v48, %v664_v61  ;;  %v691_v60 = vmax.f32 %v689_v30, %v690_v0  ;;  %v685_v15 = vrot.slane %v684_v59, 1  ;;  %v703_v17 = vmax.f32 %v701_v29, %v702_v6 }
  0xbb   : > { %v3470_v55 = vmax.f32 %v670_v37, %v671_v5  ;;  %v708_v58 = vsel %vm427_vm0, %v211_v57, -inf  ;;  %v3475_v62 = vmax.f32 %v677_v47, %v678_v44  ;;  %v698_v7 = vmax.f32 %v696_v1, %v697_v12 }
  0xbc   : > { %v692_v50 = vrot.slane %v691_v60, 1  ;;  %v709_v63 = vrot.slane %v708_v58, 4  ;;  %v3477_v21 = vmax.f32 %v684_v59, %v685_v15  ;;  %v704_v22 = vrot.slane %v703_v17, 2 }
  0xbd   : > { %v715_v53 = vsel %vm427_vm0, %v212_v9, -inf  ;;  %v722_v8 = vsel %vm427_vm0, %v213_v11, -inf  ;;  %v699_v25 = vrot.slane %v698_v7, 1  ;;  %v729_v31 = vsel %vm427_vm0, %v214_v18, -inf  ;;  %v347_v18 = vld [vmem:[%s3128_s17 + $0x580] sm:$0xff] }
  0xbe   : > { %v3482_v24 = vmax.f32 %v691_v60, %v692_v50  ;;  %v710_v26 = vmax.f32 %v708_v58, %v709_v63  ;;  %v716_v27 = vrot.slane %v715_v53, 4  ;;  %v705_v52 = vmax.f32 %v703_v17, %v704_v22 }
  0xbf   : > { %v723_v16 = vrot.slane %v722_v8, 4  ;;  %v736_v10 = vsel %vm427_vm0, %v215_v54, -inf  ;;  %v700_v28 = vmax.f32 %v698_v7, %v699_v25  ;;  %v730_v33 = vrot.slane %v729_v31, 4 }
  0xc0   : > { %v711_v13 = vrot.slane %v710_v26, 2  ;;  %v717_v32 = vmax.f32 %v715_v53, %v716_v27  ;;  %v706_v19 = vrot.slane %v705_v52, 1  ;;  %v737_v3 = vrot.slane %v736_v10, 4 }
  0xc1   : > { %v724_v34 = vmax.f32 %v722_v8, %v723_v16  ;;  %v743_v39 = vsel %vm427_vm0, %v216_v23, -inf  ;;  %v731_v14 = vmax.f32 %v729_v31, %v730_v33  ;;  %v750_v36 = vsel %vm427_vm0, %v217_v20, -inf }
  0xc2   : > { %v712_v41 = vmax.f32 %v710_v26, %v711_v13  ;;  %v718_v42 = vrot.slane %v717_v32, 2  ;;  %v744_v35 = vrot.slane %v743_v39, 4  ;;  %v707_v43 = vmax.f32 %v705_v52, %v706_v19 }
  0xc3   : > { %v725_v45 = vrot.slane %v724_v34, 2  ;;  %v738_v46 = vmax.f32 %v736_v10, %v737_v3  ;;  %v732_v30 = vrot.slane %v731_v14, 2  ;;  %v751_v56 = vrot.slane %v750_v36, 4  ;;  %v349_v10 = vld [vmem:[%s3128_s17 + $0x590] sm:$0xff] }
  0xc4   : > { %v713_v48 = vrot.slane %v712_v41, 1  ;;  %v719_v49 = vmax.f32 %v717_v32, %v718_v42  ;;  %v745_v4 = vmax.f32 %v743_v39, %v744_v35  ;;  %v757_v29 = vsel %vm427_vm0, %v218_v40, -inf  ;;  %v351_v39 = vld [vmem:[%s3128_s17 + $0x5a0] sm:$0xff] }
  0xc5   : > { %v726_v51 = vmax.f32 %v724_v34, %v725_v45  ;;  %v739_v37 = vrot.slane %v738_v46, 2  ;;  %v733_v47 = vmax.f32 %v731_v14, %v732_v30  ;;  %v752_v59 = vmax.f32 %v750_v36, %v751_v56  ;;  %v353_v36 = vld [vmem:[%s3128_s17 + $0x5b0] sm:$0xff] }
  0xc6   : > { %v714_v57 = vmax.f32 %v712_v41, %v713_v48  ;;  %v720_v61 = vrot.slane %v719_v49, 1  ;;  %v746_v0 = vrot.slane %v745_v4, 2  ;;  %v758_v6 = vrot.slane %v757_v29, 4 }
  0xc7   : > { %v727_v1 = vrot.slane %v726_v51, 1  ;;  %v740_v5 = vmax.f32 %v738_v46, %v739_v37  ;;  %v734_v11 = vrot.slane %v733_v47, 1  ;;  %v2543_v60 = vsel %vm2508_vm1, %v3468_v38, %v3464_v2  ;;  %v348_v38 = vld [vmem:[%s3128_s17 + $0x588] sm:$0xff] }
  0xc8   : > { %v721_v9 = vmax.f32 %v719_v49, %v720_v61  ;;  %v747_v44 = vmax.f32 %v745_v4, %v746_v0  ;;  %v753_v17 = vrot.slane %v752_v59, 2  ;;  %v759_v58 = vmax.f32 %v757_v29, %v758_v6 }
  0xc9   : > { %v728_v12 = vmax.f32 %v726_v51, %v727_v1  ;;  %v741_v15 = vrot.slane %v740_v5, 1  ;;  %v735_v54 = vmax.f32 %v733_v47, %v734_v11  ;;  %v2544_v7 = vsel %vm2510_vm2, %v3470_v55, %v2543_v60 }
  0xca   : > { %v748_v50 = vrot.slane %v747_v44, 1  ;;  %v2550_v63 = vsel %vm2508_vm1, %v721_v9, %v714_v57  ;;  %v754_v53 = vmax.f32 %v752_v59, %v753_v17  ;;  %v760_v8 = vrot.slane %v759_v58, 2  ;;  %v354_v57 = vld [vmem:[%s3128_s17 + $0x5b8] sm:$0xff] }
  0xcb   : > { %v742_v22 = vmax.f32 %v740_v5, %v741_v15  ;;  %v2545_v2 = vsel %vm2512_vm3, %v3475_v62, %v2544_v7  ;;  %v2551_v26 = vsel %vm2510_vm2, %v728_v12, %v2550_v63  ;;  %v1660_v27 = vsel %vm427_vm0, %v347_v18, -inf  ;;  %v350_v62 = vld [vmem:[%s3128_s17 + $0x598] sm:$0xff]  ;;  %v355_v12 = vld [vmem:[%s3128_s17 + $0x5c0] sm:$0xff] }
  0xcc   : > { %v749_v23 = vmax.f32 %v747_v44, %v748_v50  ;;  %v2546_v25 = vsel %vm2514_vm4, %v3477_v21, %v2545_v2  ;;  %v755_v55 = vrot.slane %v754_v53, 1  ;;  %v761_v52 = vmax.f32 %v759_v58, %v760_v8 }
  0xcd   : > { %v2547_v16 = vsel %vm2516_vm5, %v3482_v24, %v2546_v25  ;;  %v2552_v31 = vsel %vm2512_vm3, %v735_v54, %v2551_v26  ;;  %v1661_v21 = vrot.slane %v1660_v27, 4  ;;  %v1667_v32 = vsel %vm427_vm0, %v348_v38, -inf  ;;  %v352_v24 = vld [vmem:[%s3128_s17 + $0x5a8] sm:$0xff] }
  0xce   : > { %v2548_v20 = vsel %vm2518_vm6, %v700_v28, %v2547_v16  ;;  %v2553_v13 = vsel %vm2514_vm4, %v742_v22, %v2552_v31  ;;  %v756_v33 = vmax.f32 %v754_v53, %v755_v55  ;;  %v762_v19 = vrot.slane %v761_v52, 1  ;;  %v356_v22 = vld [vmem:[%s3128_s17 + $0x5c8] sm:$0xff] }
  0xcf   : > { %v2549_v34 = vsel %vm2520_vm7, %v707_v43, %v2548_v20  ;;  %v2554_v3 = vsel %vm2516_vm5, %v749_v23, %v2553_v13  ;;  %v1662_v40 = vmax.f32 %v1660_v27, %v1661_v21  ;;  %v1668_v41 = vrot.slane %v1667_v32, 4  ;;  %v357_v23 = vld [vmem:[%s3128_s17 + $0x5d0] sm:$0xff]  ;;  %v359_v20 = vld [vmem:[%s3128_s17 + $0x5e0] sm:$0xff] }
  0xd0   : > { %v1674_v42 = vsel %vm427_vm0, %v349_v10, -inf  ;;  %v1681_v28 = vsel %vm427_vm0, %v350_v62, -inf  ;;  %v763_v14 = vmax.f32 %v761_v52, %v762_v19  ;;  %v2555_v35 = vsel %vm2518_vm6, %v756_v33, %v2554_v3  ;;  %v358_v62 = vld [vmem:[%s3128_s17 + $0x5d8] sm:$0xff] }
  0xd1   : > { %v1675_v45 = vrot.slane %v1674_v42, 4  ;;  %v1682_v46 = vrot.slane %v1681_v28, 4  ;;  %v1663_v48 = vrot.slane %v1662_v40, 2  ;;  %v1669_v49 = vmax.f32 %v1667_v32, %v1668_v41 }
  0xd2   : > { %v1688_v43 = vsel %vm427_vm0, %v351_v39, -inf  ;;  %v1695_v30 = vsel %vm427_vm0, %v352_v24, -inf  ;;  %v2556_v4 = vsel %vm2520_vm7, %v763_v14, %v2555_v35  ;;  %v1702_v6 = vsel %vm427_vm0, %v353_v36, -inf  ;;  %v360_v24 = vld [vmem:[%s3128_s17 + $0x5e8] sm:$0xff]  ;;  %v361_v36 = vld [vmem:[%s3128_s17 + $0x5f0] sm:$0xff] }
  0xd3   : > { %v1676_v51 = vmax.f32 %v1674_v42, %v1675_v45  ;;  %v1683_v37 = vmax.f32 %v1681_v28, %v1682_v46  ;;  %v1689_v56 = vrot.slane %v1688_v43, 4  ;;  %v3026_v29 = vpack.c.bf16 %v2556_v4, %v2549_v34 }
  0xd4   : > { %v1664_v61 = vmax.f32 %v1662_v40, %v1663_v48  ;;  %v1670_v47 = vrot.slane %v1669_v49, 2  ;;  %v1696_v0 = vrot.slane %v1695_v30, 4  ;;  %v1703_v60 = vrot.slane %v1702_v6, 4 }
  0xd5   : > { %v1677_v1 = vrot.slane %v1676_v51, 2  ;;  %v1684_v5 = vrot.slane %v1683_v37, 2  ;;  %v1690_v59 = vmax.f32 %v1688_v43, %v1689_v56  ;;  %3027 = vmatpush3.bf16.msra.mxu0 %v3026_v29  ;;  %3058 = vmatpush3.bf16.msra.mxu1 %v3026_v29  ;;  %v1709_v18 = vsel %vm427_vm0, %v354_v57, -inf  ;;  %v362_v29 = vld [vmem:[%s3128_s17 + $0x5f8] sm:$0xff] }
  0xd6   : > { %v1665_v9 = vrot.slane %v1664_v61, 1  ;;  %v1671_v11 = vmax.f32 %v1669_v49, %v1670_v47  ;;  %v1697_v44 = vmax.f32 %v1695_v30, %v1696_v0  ;;  %v1704_v63 = vmax.f32 %v1702_v6, %v1703_v60 }
  0xd7   : > { %v1678_v15 = vmax.f32 %v1676_v51, %v1677_v1  ;;  %v1685_v17 = vmax.f32 %v1683_v37, %v1684_v5  ;;  %v1691_v58 = vrot.slane %v1690_v59, 2  ;;  %v1710_v38 = vrot.slane %v1709_v18, 4 }
  0xd8   : > { %v3528_v54 = vmax.f32 %v1664_v61, %v1665_v9  ;;  %v1672_v50 = vrot.slane %v1671_v11, 1  ;;  %v1698_v7 = vrot.slane %v1697_v44, 2  ;;  %v1705_v27 = vrot.slane %v1704_v63, 2 }
  0xd9   : > { %v1679_v53 = vrot.slane %v1678_v15, 1  ;;  %v1686_v8 = vrot.slane %v1685_v17, 1  ;;  %v1692_v2 = vmax.f32 %v1690_v59, %v1691_v58  ;;  %v1716_v55 = vsel %vm427_vm0, %v355_v12, -inf }
  0xda   : > { %v3532_v25 = vmax.f32 %v1671_v11, %v1672_v50  ;;  %v1699_v26 = vmax.f32 %v1697_v44, %v1698_v7  ;;  %v1711_v10 = vmax.f32 %v1709_v18, %v1710_v38  ;;  %v1706_v21 = vmax.f32 %v1704_v63, %v1705_v27 }
  0xdb   : > { %v3535_v52 = vmax.f32 %v1678_v15, %v1679_v53  ;;  %v3537_v16 = vmax.f32 %v1685_v17, %v1686_v8  ;;  %v1693_v31 = vrot.slane %v1692_v2, 1  ;;  %v1717_v32 = vrot.slane %v1716_v55, 4 }
  0xdc   : > { %v1700_v13 = vrot.slane %v1699_v26, 1  ;;  %v1723_v33 = vsel %vm427_vm0, %v356_v22, -inf  ;;  %v1712_v34 = vrot.slane %v1711_v10, 2  ;;  %v1730_v39 = vsel %vm427_vm0, %v357_v23, -inf }
  0xdd   : > { %v3542_v19 = vmax.f32 %v1692_v2, %v1693_v31  ;;  %v1724_v3 = vrot.slane %v1723_v33, 4  ;;  %v1707_v41 = vrot.slane %v1706_v21, 1  ;;  %v1718_v42 = vmax.f32 %v1716_v55, %v1717_v32 }
  0xde   : > { %v1701_v40 = vmax.f32 %v1699_v26, %v1700_v13  ;;  %v1731_v28 = vrot.slane %v1730_v39, 4  ;;  %v1713_v14 = vmax.f32 %v1711_v10, %v1712_v34  ;;  %v1737_v45 = vsel %vm427_vm0, %v358_v62, -inf }
  0xdf   : > { %v1725_v35 = vmax.f32 %v1723_v33, %v1724_v3  ;;  %v1744_v46 = vsel %vm427_vm0, %v359_v20, -inf  ;;  %v1708_v48 = vmax.f32 %v1706_v21, %v1707_v41  ;;  %v1719_v49 = vrot.slane %v1718_v42, 2  ;;  %v219_v20 = vld [vmem:[%s3128_s17 + $0x180] sm:$0xff] }
  0xe0   : > { %v1732_v43 = vmax.f32 %v1730_v39, %v1731_v28  ;;  %v1738_v30 = vrot.slane %v1737_v45, 4  ;;  %v1714_v4 = vrot.slane %v1713_v14, 1  ;;  %v1745_v37 = vrot.slane %v1744_v46, 4  ;;  %v220_v39 = vld [vmem:[%s3128_s17 + $0x188] sm:$0xff] }
  0xe1   : > { %v1726_v51 = vrot.slane %v1725_v35, 2  ;;  %v1751_v56 = vsel %vm427_vm0, %v360_v24, -inf  ;;  %v1720_v57 = vmax.f32 %v1718_v42, %v1719_v49  ;;  %v1758_v6 = vsel %vm427_vm0, %v361_v36, -inf  ;;  %v223_v36 = vld [vmem:[%s3128_s17 + $0x1a0] sm:$0xff] }
  0xe2   : > { %v1733_v61 = vrot.slane %v1732_v43, 2  ;;  %v1739_v47 = vmax.f32 %v1737_v45, %v1738_v30  ;;  %v1752_v0 = vrot.slane %v1751_v56, 4  ;;  %v1715_v1 = vmax.f32 %v1713_v14, %v1714_v4  ;;  %v221_v45 = vld [vmem:[%s3128_s17 + $0x190] sm:$0xff] }
  0xe3   : > { %v1727_v5 = vmax.f32 %v1725_v35, %v1726_v51  ;;  %v1746_v59 = vmax.f32 %v1744_v46, %v1745_v37  ;;  %v1721_v9 = vrot.slane %v1720_v57, 1  ;;  %v1759_v17 = vrot.slane %v1758_v6, 4  ;;  %v222_v46 = vld [vmem:[%s3128_s17 + $0x198] sm:$0xff]  ;;  %v224_v37 = vld [vmem:[%s3128_s17 + $0x1a8] sm:$0xff] }
  0xe4   : > { %v1734_v11 = vmax.f32 %v1732_v43, %v1733_v61  ;;  %v1740_v44 = vrot.slane %v1739_v47, 2  ;;  %v1753_v60 = vmax.f32 %v1751_v56, %v1752_v0  ;;  %v1765_v58 = vsel %vm427_vm0, %v362_v29, -inf }
  0xe5   : > { %v1728_v12 = vrot.slane %v1727_v5, 1  ;;  %v1747_v15 = vrot.slane %v1746_v59, 2  ;;  %v1722_v18 = vmax.f32 %v1720_v57, %v1721_v9  ;;  %v1760_v8 = vmax.f32 %v1758_v6, %v1759_v17 }
  0xe6   : > { %v1735_v50 = vrot.slane %v1734_v11, 1  ;;  %v1741_v7 = vmax.f32 %v1739_v47, %v1740_v44  ;;  %v1754_v63 = vrot.slane %v1753_v60, 2  ;;  %v1766_v2 = vrot.slane %v1765_v58, 4 }
  0xe7   : > { %v1729_v22 = vmax.f32 %v1727_v5, %v1728_v12  ;;  %v1748_v53 = vmax.f32 %v1746_v59, %v1747_v15  ;;  %v2669_v27 = vsel %vm2508_vm1, %v3532_v25, %v3528_v54  ;;  %v1761_v31 = vrot.slane %v1760_v8, 2  ;;  %v225_v59 = vld [vmem:[%s3128_s17 + $0x1b0] sm:$0xff] }
  0xe8   : > { %v1736_v38 = vmax.f32 %v1734_v11, %v1735_v50  ;;  %v1742_v23 = vrot.slane %v1741_v7, 1  ;;  %v1755_v26 = vmax.f32 %v1753_v60, %v1754_v63  ;;  %v1767_v10 = vmax.f32 %v1765_v58, %v1766_v2 }
  0xe9   : > { %v1749_v55 = vrot.slane %v1748_v53, 1  ;;  %v2670_v62 = vsel %vm2510_vm2, %v3535_v52, %v2669_v27  ;;  %v2676_v33 = vsel %vm2508_vm1, %v1729_v22, %v1722_v18  ;;  %v1762_v3 = vmax.f32 %v1760_v8, %v1761_v31  ;;  %v226_v18 = vld [vmem:[%s3128_s17 + $0x1b8] sm:$0xff] }
  0xea   : > { %v1743_v13 = vmax.f32 %v1741_v7, %v1742_v23  ;;  %v1756_v21 = vrot.slane %v1755_v26, 1  ;;  %v2671_v32 = vsel %vm2512_vm3, %v3537_v16, %v2670_v62  ;;  %v1768_v54 = vrot.slane %v1767_v10, 2 }
  0xeb   : > { %v1750_v34 = vmax.f32 %v1748_v53, %v1749_v55  ;;  %v2672_v25 = vsel %vm2514_vm4, %v3542_v19, %v2671_v32  ;;  %v2677_v41 = vsel %vm2510_vm2, %v1736_v38, %v2676_v33  ;;  %v764_v42 = vsel %vm427_vm0, %v219_v20, -inf  ;;  %v227_v55 = vld [vmem:[%s3128_s17 + $0x1c0] sm:$0xff] }
  0xec   : > { %v1757_v24 = vmax.f32 %v1755_v26, %v1756_v21  ;;  %v2673_v52 = vsel %vm2516_vm5, %v1701_v40, %v2672_v25  ;;  %v1763_v16 = vrot.slane %v1762_v3, 1  ;;  %v1769_v28 = vmax.f32 %v1767_v10, %v1768_v54 }
  0xed   : > { %v2674_v14 = vsel %vm2518_vm6, %v1708_v48, %v2673_v52  ;;  %v2678_v35 = vsel %vm2512_vm3, %v1743_v13, %v2677_v41  ;;  %v765_v40 = vrot.slane %v764_v42, 4  ;;  %v771_v43 = vsel %vm427_vm0, %v220_v39, -inf }
  0xee   : > { %v2675_v19 = vsel %vm2520_vm7, %v1715_v1, %v2674_v14  ;;  %v2679_v49 = vsel %vm2514_vm4, %v1750_v34, %v2678_v35  ;;  %v1764_v30 = vmax.f32 %v1762_v3, %v1763_v16  ;;  %v1770_v4 = vrot.slane %v1769_v28, 1  ;;  %v228_v34 = vld [vmem:[%s3128_s17 + $0x1c8] sm:$0xff]  ;;  %v229_v16 = vld [vmem:[%s3128_s17 + $0x1d0] sm:$0xff]  ;;  %v231_v14 = vld [vmem:[%s3128_s17 + $0x1e0] sm:$0xff] }
  0xef   : > { %v2680_v51 = vsel %vm2516_vm5, %v1757_v24, %v2679_v49  ;;  %v772_v56 = vrot.slane %v771_v43, 4  ;;  %v766_v48 = vmax.f32 %v764_v42, %v765_v40  ;;  %v778_v29 = vsel %vm427_vm0, %v221_v45, -inf }
  0xf0   : > { %v785_v57 = vsel %vm427_vm0, %v222_v46, -inf  ;;  %v792_v61 = vsel %vm427_vm0, %v223_v36, -inf  ;;  %v1771_v47 = vmax.f32 %v1769_v28, %v1770_v4  ;;  %v2681_v0 = vsel %vm2518_vm6, %v1764_v30, %v2680_v51  ;;  %v230_v28 = vld [vmem:[%s3128_s17 + $0x1d8] sm:$0xff]  ;;  %v232_v30 = vld [vmem:[%s3128_s17 + $0x1e8] sm:$0xff] }
  0xf1   : > { %v773_v1 = vmax.f32 %v771_v43, %v772_v56  ;;  %v779_v5 = vrot.slane %v778_v29, 4  ;;  %v767_v6 = vrot.slane %v766_v48, 2  ;;  %v786_v9 = vrot.slane %v785_v57, 4 }
  0xf2   : > { %v793_v11 = vrot.slane %v792_v61, 4  ;;  %v799_v44 = vsel %vm427_vm0, %v224_v37, -inf  ;;  %v2682_v60 = vsel %vm2520_vm7, %v1771_v47, %v2681_v0  ;;  %v806_v2 = vsel %vm427_vm0, %v225_v59, -inf  ;;  %v233_v47 = vld [vmem:[%s3128_s17 + $0x1f0] sm:$0xff] }
  0xf3   : > { %v774_v12 = vrot.slane %v773_v1, 2  ;;  %v780_v15 = vmax.f32 %v778_v29, %v779_v5  ;;  %v800_v17 = vrot.slane %v799_v44, 4  ;;  %v3028_v58 = vpack.c.bf16 %v2682_v60, %v2675_v19 }
  0xf4   : > { %v768_v50 = vmax.f32 %v766_v48, %v767_v6  ;;  %v787_v7 = vmax.f32 %v785_v57, %v786_v9  ;;  %v794_v63 = vmax.f32 %v792_v61, %v793_v11  ;;  %v807_v27 = vrot.slane %v806_v2, 4 }
  0xf5   : > { %v775_v22 = vmax.f32 %v773_v1, %v774_v12  ;;  %v781_v53 = vrot.slane %v780_v15, 2  ;;  %v801_v8 = vmax.f32 %v799_v44, %v800_v17  ;;  %3029 = vmatprep.subr.bf16.mxu0 %v3028_v58  ;;  %3051 = vmatprep.subr.bf16.mxu1 %v3028_v58  ;;  %v813_v20 = vsel %vm427_vm0, %v226_v18, -inf  ;;  %v234_v58 = vld [vmem:[%s3128_s17 + $0x1f8] sm:$0xff] }
  0xf6   : > { %v769_v38 = vrot.slane %v768_v50, 1  ;;  %v788_v23 = vrot.slane %v787_v7, 2  ;;  %v795_v26 = vrot.slane %v794_v63, 2  ;;  %v808_v33 = vmax.f32 %v806_v2, %v807_v27 }
  0xf7   : > { %v776_v31 = vrot.slane %v775_v22, 1  ;;  %v782_v10 = vmax.f32 %v780_v15, %v781_v53  ;;  %v802_v62 = vrot.slane %v801_v8, 2  ;;  %v814_v39 = vrot.slane %v813_v20, 4 }
  0xf8   : > { %v3589_v13 = vmax.f32 %v768_v50, %v769_v38  ;;  %v789_v21 = vmax.f32 %v787_v7, %v788_v23  ;;  %v796_v32 = vmax.f32 %v794_v63, %v795_v26  ;;  %v809_v41 = vrot.slane %v808_v33, 2 }
  0xf9   : > { %v3592_v3 = vmax.f32 %v775_v22, %v776_v31  ;;  %v783_v54 = vrot.slane %v782_v10, 1  ;;  %v803_v25 = vmax.f32 %v801_v8, %v802_v62  ;;  %v820_v42 = vsel %vm427_vm0, %v227_v55, -inf }
  0xfa   : > { %v790_v24 = vrot.slane %v789_v21, 1  ;;  %v797_v52 = vrot.slane %v796_v32, 1  ;;  %v815_v46 = vmax.f32 %v813_v20, %v814_v39  ;;  %v821_v36 = vrot.slane %v820_v42, 4 }
  0xfb   : > { %v3598_v35 = vmax.f32 %v782_v10, %v783_v54  ;;  %v804_v45 = vrot.slane %v803_v25, 1  ;;  %v810_v40 = vmax.f32 %v808_v33, %v809_v41  ;;  %v827_v43 = vsel %vm427_vm0, %v228_v34, -inf }
  0xfc   : > { %v3600_v19 = vmax.f32 %v789_v21, %v790_v24  ;;  %v3602_v49 = vmax.f32 %v796_v32, %v797_v52  ;;  %v816_v51 = vrot.slane %v815_v46, 2  ;;  %v822_v37 = vmax.f32 %v820_v42, %v821_v36 }
  0xfd   : > { %v3606_v4 = vmax.f32 %v803_v25, %v804_v45  ;;  %v828_v56 = vrot.slane %v827_v43, 4  ;;  %v811_v48 = vrot.slane %v810_v40, 1  ;;  %v834_v29 = vsel %vm427_vm0, %v229_v16, -inf  ;;  %v363_v16 = vld [vmem:[%s3128_s17 + $0x600] sm:$0xff] }
  0xfe   : > { %v841_v57 = vsel %vm427_vm0, %v230_v28, -inf  ;;  %v848_v61 = vsel %vm427_vm0, %v231_v14, -inf  ;;  %v817_v0 = vmax.f32 %v815_v46, %v816_v51  ;;  %v823_v1 = vrot.slane %v822_v37, 2 }
  0xff   : > { %v829_v5 = vmax.f32 %v827_v43, %v828_v56  ;;  %v835_v59 = vrot.slane %v834_v29, 4  ;;  %v3612_v6 = vmax.f32 %v810_v40, %v811_v48  ;;  %v842_v9 = vrot.slane %v841_v57, 4 }
 0x100   : > { %v849_v11 = vrot.slane %v848_v61, 4  ;;  %v855_v44 = vsel %vm427_vm0, %v232_v30, -inf  ;;  %v818_v60 = vrot.slane %v817_v0, 1  ;;  %v824_v12 = vmax.f32 %v822_v37, %v823_v1  ;;  %v364_v37 = vld [vmem:[%s3128_s17 + $0x608] sm:$0xff]  ;;  %v366_v1 = vld [vmem:[%s3128_s17 + $0x618] sm:$0xff] }
 0x101   : > { %v830_v15 = vrot.slane %v829_v5, 2  ;;  %v836_v17 = vmax.f32 %v834_v29, %v835_v59  ;;  %v843_v18 = vmax.f32 %v841_v57, %v842_v9  ;;  %v856_v7 = vrot.slane %v855_v44, 4 }
 0x102   : > { %v850_v50 = vmax.f32 %v848_v61, %v849_v11  ;;  %v862_v63 = vsel %vm427_vm0, %v233_v47, -inf  ;;  %v819_v22 = vmax.f32 %v817_v0, %v818_v60  ;;  %v825_v53 = vrot.slane %v824_v12, 1  ;;  %v365_v0 = vld [vmem:[%s3128_s17 + $0x610] sm:$0xff] }
 0x103   : > { %v831_v8 = vmax.f32 %v829_v5, %v830_v15  ;;  %v837_v2 = vrot.slane %v836_v17, 2  ;;  %v844_v38 = vrot.slane %v843_v18, 2  ;;  %v857_v26 = vmax.f32 %v855_v44, %v856_v7  ;;  %v367_v5 = vld [vmem:[%s3128_s17 + $0x620] sm:$0xff]  ;;  %v368_v15 = vld [vmem:[%s3128_s17 + $0x628] sm:$0xff] }
 0x104   : > { %v851_v23 = vrot.slane %v850_v50, 2  ;;  %v863_v27 = vrot.slane %v862_v63, 4  ;;  %v826_v55 = vmax.f32 %v824_v12, %v825_v53  ;;  %v869_v62 = vsel %vm427_vm0, %v234_v58, -inf }
 0x105   : > { %v832_v31 = vrot.slane %v831_v8, 1  ;;  %v838_v10 = vmax.f32 %v836_v17, %v837_v2  ;;  %v845_v20 = vmax.f32 %v843_v18, %v844_v38  ;;  %v858_v32 = vrot.slane %v857_v26, 2  ;;  %v369_v17 = vld [vmem:[%s3128_s17 + $0x630] sm:$0xff] }
 0x106   : > { %v852_v21 = vmax.f32 %v850_v50, %v851_v23  ;;  %v864_v33 = vmax.f32 %v862_v63, %v863_v27  ;;  %v870_v25 = vrot.slane %v869_v62, 4  ;;  %v2557_v39 = vsel %vm2508_vm1, %v3592_v3, %v3589_v13 }
 0x107   : > { %v833_v34 = vmax.f32 %v831_v8, %v832_v31  ;;  %v839_v54 = vrot.slane %v838_v10, 1  ;;  %v846_v24 = vrot.slane %v845_v20, 1  ;;  %v859_v41 = vmax.f32 %v857_v26, %v858_v32 }
 0x108   : > { %v853_v52 = vrot.slane %v852_v21, 1  ;;  %v865_v42 = vrot.slane %v864_v33, 2  ;;  %v871_v14 = vmax.f32 %v869_v62, %v870_v25  ;;  %v2558_v45 = vsel %vm2510_vm2, %v3598_v35, %v2557_v39 }
 0x109   : > { %v840_v28 = vmax.f32 %v838_v10, %v839_v54  ;;  %v2564_v46 = vsel %vm2508_vm1, %v833_v34, %v826_v55  ;;  %v847_v36 = vmax.f32 %v845_v20, %v846_v24  ;;  %v860_v43 = vrot.slane %v859_v41, 1  ;;  %v370_v55 = vld [vmem:[%s3128_s17 + $0x638] sm:$0xff]  ;;  %v371_v24 = vld [vmem:[%s3128_s17 + $0x640] sm:$0xff] }
 0x10a   : > { %v854_v40 = vmax.f32 %v852_v21, %v853_v52  ;;  %v866_v13 = vmax.f32 %v864_v33, %v865_v42  ;;  %v872_v3 = vrot.slane %v871_v14, 2  ;;  %v2559_v30 = vsel %vm2512_vm3, %v3600_v19, %v2558_v45 }
 0x10b   : > { %v2565_v51 = vsel %vm2510_vm2, %v840_v28, %v2564_v46  ;;  %v1772_v56 = vsel %vm427_vm0, %v363_v16, -inf  ;;  %v861_v48 = vmax.f32 %v859_v41, %v860_v43  ;;  %v2560_v29 = vsel %vm2514_vm4, %v3602_v49, %v2559_v30 }
 0x10c   : > { %v867_v35 = vrot.slane %v866_v13, 1  ;;  %v2566_v57 = vsel %vm2512_vm3, %v847_v36, %v2565_v51  ;;  %v873_v61 = vmax.f32 %v871_v14, %v872_v3  ;;  %v2561_v47 = vsel %vm2516_vm5, %v3606_v4, %v2560_v29  ;;  %v372_v36 = vld [vmem:[%s3128_s17 + $0x648] sm:$0xff] }
 0x10d   : > { %v2567_v19 = vsel %vm2514_vm4, %v854_v40, %v2566_v57  ;;  %v1773_v59 = vrot.slane %v1772_v56, 4  ;;  %v2562_v11 = vsel %vm2518_vm6, %v3612_v6, %v2561_v47  ;;  %v1779_v49 = vsel %vm427_vm0, %v364_v37, -inf  ;;  %v374_v47 = vld [vmem:[%s3128_s17 + $0x658] sm:$0xff] }
 0x10e   : > { %v868_v9 = vmax.f32 %v866_v13, %v867_v35  ;;  %v2568_v44 = vsel %vm2516_vm5, %v861_v48, %v2567_v19  ;;  %v874_v60 = vrot.slane %v873_v61, 1  ;;  %v2563_v12 = vsel %vm2520_vm7, %v819_v22, %v2562_v11  ;;  %v373_v48 = vld [vmem:[%s3128_s17 + $0x650] sm:$0xff] }
 0x10f   : > { %v1774_v4 = vmax.f32 %v1772_v56, %v1773_v59  ;;  %v1780_v58 = vrot.slane %v1779_v49, 4  ;;  %v1786_v50 = vsel %vm427_vm0, %v365_v0, -inf  ;;  %v1793_v7 = vsel %vm427_vm0, %v366_v1, -inf }
 0x110   : > { %v2569_v18 = vsel %vm2518_vm6, %v868_v9, %v2568_v44  ;;  %v1800_v6 = vsel %vm427_vm0, %v367_v5, -inf  ;;  %v875_v63 = vmax.f32 %v873_v61, %v874_v60  ;;  %v1787_v2 = vrot.slane %v1786_v50, 4  ;;  %v376_v60 = vld [vmem:[%s3128_s17 + $0x668] sm:$0xff] }
 0x111   : > { %v1775_v53 = vrot.slane %v1774_v4, 2  ;;  %v1781_v8 = vmax.f32 %v1779_v49, %v1780_v58  ;;  %v1794_v38 = vrot.slane %v1793_v7, 4  ;;  %v1801_v23 = vrot.slane %v1800_v6, 4  ;;  %v375_v49 = vld [vmem:[%s3128_s17 + $0x660] sm:$0xff] }
 0x112   : > { %v1807_v22 = vsel %vm427_vm0, %v368_v15, -inf  ;;  %v1814_v26 = vsel %vm427_vm0, %v369_v17, -inf  ;;  %v2570_v27 = vsel %vm2520_vm7, %v875_v63, %v2569_v18  ;;  %v1788_v62 = vmax.f32 %v1786_v50, %v1787_v2 }
 0x113   : > { %v1776_v31 = vmax.f32 %v1774_v4, %v1775_v53  ;;  %v1782_v10 = vrot.slane %v1781_v8, 2  ;;  %v3030_v20 = vpack.c.bf16 %v2570_v27, %v2563_v12  ;;  %v1795_v21 = vmax.f32 %v1793_v7, %v1794_v38  ;;  %v378_v27 = vld [vmem:[%s3128_s17 + $0x678] sm:$0xff] }
 0x114   : > { %v1802_v32 = vmax.f32 %v1800_v6, %v1801_v23  ;;  %v1808_v33 = vrot.slane %v1807_v22, 4  ;;  %v1789_v25 = vrot.slane %v1788_v62, 2  ;;  %v1815_v39 = vrot.slane %v1814_v26, 4  ;;  %v377_v6 = vld [vmem:[%s3128_s17 + $0x670] sm:$0xff] }
 0x115   : > { %v1777_v34 = vrot.slane %v1776_v31, 1  ;;  %v1783_v54 = vmax.f32 %v1781_v8, %v1782_v10  ;;  %3031 = vmatpush3.bf16.msra.mxu0 %v3030_v20  ;;  %3059 = vmatpush3.bf16.msra.mxu1 %v3030_v20  ;;  %v1796_v52 = vrot.slane %v1795_v21, 2  ;;  %v1821_v16 = vsel %vm427_vm0, %v370_v55, -inf }
 0x116   : > { %v1803_v41 = vrot.slane %v1802_v32, 2  ;;  %v1809_v42 = vmax.f32 %v1807_v22, %v1808_v33  ;;  %v1790_v45 = vmax.f32 %v1788_v62, %v1789_v25  ;;  %v1816_v46 = vmax.f32 %v1814_v26, %v1815_v39 }
 0x117   : > { %v3656_v28 = vmax.f32 %v1776_v31, %v1777_v34  ;;  %v1784_v14 = vrot.slane %v1783_v54, 1  ;;  %v1797_v40 = vmax.f32 %v1795_v21, %v1796_v52  ;;  %v1822_v3 = vrot.slane %v1821_v16, 4 }
 0x118   : > { %v1804_v43 = vmax.f32 %v1802_v32, %v1803_v41  ;;  %v1810_v13 = vrot.slane %v1809_v42, 2  ;;  %v1791_v51 = vrot.slane %v1790_v45, 1  ;;  %v1817_v37 = vrot.slane %v1816_v46, 2 }
 0x119   : > { %v3659_v30 = vmax.f32 %v1783_v54, %v1784_v14  ;;  %v1828_v56 = vsel %vm427_vm0, %v371_v24, -inf  ;;  %v1798_v35 = vrot.slane %v1797_v40, 1  ;;  %v1823_v61 = vmax.f32 %v1821_v16, %v1822_v3 }
 0x11a   : > { %v1805_v29 = vrot.slane %v1804_v43, 1  ;;  %v1811_v57 = vmax.f32 %v1809_v42, %v1810_v13  ;;  %v3664_v19 = vmax.f32 %v1790_v45, %v1791_v51  ;;  %v1818_v0 = vmax.f32 %v1816_v46, %v1817_v37 }
 0x11b   : > { %v1829_v1 = vrot.slane %v1828_v56, 4  ;;  %v1835_v5 = vsel %vm427_vm0, %v372_v36, -inf  ;;  %v3667_v59 = vmax.f32 %v1797_v40, %v1798_v35  ;;  %v1824_v44 = vrot.slane %v1823_v61, 2 }
 0x11c   : > { %v3669_v9 = vmax.f32 %v1804_v43, %v1805_v29  ;;  %v1812_v11 = vrot.slane %v1811_v57, 1  ;;  %v1819_v12 = vrot.slane %v1818_v0, 1  ;;  %v1836_v17 = vrot.slane %v1835_v5, 4 }
 0x11d   : > { %v1830_v15 = vmax.f32 %v1828_v56, %v1829_v1  ;;  %v1842_v4 = vsel %vm427_vm0, %v373_v48, -inf  ;;  %v1825_v18 = vmax.f32 %v1823_v61, %v1824_v44  ;;  %v1849_v7 = vsel %vm427_vm0, %v374_v47, -inf  ;;  %v235_v61 = vld [vmem:[%s3128_s17 + $0x200] sm:$0xff] }
 0x11e   : > { %v3674_v58 = vmax.f32 %v1811_v57, %v1812_v11  ;;  %v1843_v50 = vrot.slane %v1842_v4, 4  ;;  %v1820_v63 = vmax.f32 %v1818_v0, %v1819_v12  ;;  %v1837_v8 = vmax.f32 %v1835_v5, %v1836_v17 }
 0x11f   : > { %v1831_v53 = vrot.slane %v1830_v15, 2  ;;  %v1850_v2 = vrot.slane %v1849_v7, 4  ;;  %v1826_v38 = vrot.slane %v1825_v18, 1  ;;  %v1856_v22 = vsel %vm427_vm0, %v375_v49, -inf }
 0x120   : > { %v1844_v23 = vmax.f32 %v1842_v4, %v1843_v50  ;;  %v1863_v26 = vsel %vm427_vm0, %v376_v60, -inf  ;;  %v1838_v31 = vrot.slane %v1837_v8, 2  ;;  %v1857_v62 = vrot.slane %v1856_v22, 4 }
 0x121   : > { %v1832_v55 = vmax.f32 %v1830_v15, %v1831_v53  ;;  %v1851_v10 = vmax.f32 %v1849_v7, %v1850_v2  ;;  %v1827_v20 = vmax.f32 %v1825_v18, %v1826_v38  ;;  %v1864_v32 = vrot.slane %v1863_v26, 4  ;;  %v237_v7 = vld [vmem:[%s3128_s17 + $0x210] sm:$0xff]  ;;  %v238_v53 = vld [vmem:[%s3128_s17 + $0x218] sm:$0xff] }
 0x122   : > { %v1845_v21 = vrot.slane %v1844_v23, 2  ;;  %v1870_v33 = vsel %vm427_vm0, %v377_v6, -inf  ;;  %v1839_v54 = vmax.f32 %v1837_v8, %v1838_v31  ;;  %v1858_v39 = vmax.f32 %v1856_v22, %v1857_v62 }
 0x123   : > { %v1833_v34 = vrot.slane %v1832_v55, 1  ;;  %v1852_v25 = vrot.slane %v1851_v10, 2  ;;  %v1865_v52 = vmax.f32 %v1863_v26, %v1864_v32  ;;  %v1871_v41 = vrot.slane %v1870_v33, 4  ;;  %v239_v26 = vld [vmem:[%s3128_s17 + $0x220] sm:$0xff] }
 0x124   : > { %v1846_v24 = vmax.f32 %v1844_v23, %v1845_v21  ;;  %v1877_v42 = vsel %vm427_vm0, %v378_v27, -inf  ;;  %v1840_v14 = vrot.slane %v1839_v54, 1  ;;  %v1859_v46 = vrot.slane %v1858_v39, 2 }
 0x125   : > { %v1834_v16 = vmax.f32 %v1832_v55, %v1833_v34  ;;  %v1853_v45 = vmax.f32 %v1851_v10, %v1852_v25  ;;  %v1866_v40 = vrot.slane %v1865_v52, 2  ;;  %v1872_v43 = vmax.f32 %v1870_v33, %v1871_v41  ;;  %v241_v33 = vld [vmem:[%s3128_s17 + $0x230] sm:$0xff] }
 0x126   : > { %v1847_v36 = vrot.slane %v1846_v24, 1  ;;  %v1878_v13 = vrot.slane %v1877_v42, 4  ;;  %v1841_v3 = vmax.f32 %v1839_v54, %v1840_v14  ;;  %v1860_v37 = vmax.f32 %v1858_v39, %v1859_v46 }
 0x127   : > { %v1854_v51 = vrot.slane %v1853_v45, 1  ;;  %v2683_v56 = vsel %vm2508_vm1, %v3659_v30, %v3656_v28  ;;  %v1867_v35 = vmax.f32 %v1865_v52, %v1866_v40  ;;  %v1873_v29 = vrot.slane %v1872_v43, 2  ;;  %v236_v30 = vld [vmem:[%s3128_s17 + $0x208] sm:$0xff] }
 0x128   : > { %v1848_v48 = vmax.f32 %v1846_v24, %v1847_v36  ;;  %v1879_v57 = vmax.f32 %v1877_v42, %v1878_v13  ;;  %v1861_v0 = vrot.slane %v1860_v37, 1  ;;  %v2684_v1 = vsel %vm2510_vm2, %v3664_v19, %v2683_v56 }
 0x129   : > { %v1855_v47 = vmax.f32 %v1853_v45, %v1854_v51  ;;  %v2690_v5 = vsel %vm2508_vm1, %v1841_v3, %v1834_v16  ;;  %v1868_v11 = vrot.slane %v1867_v35, 1  ;;  %v1874_v44 = vmax.f32 %v1872_v43, %v1873_v29  ;;  %v242_v16 = vld [vmem:[%s3128_s17 + $0x238] sm:$0xff] }
 0x12a   : > { %v1880_v49 = vrot.slane %v1879_v57, 2  ;;  %v2685_v28 = vsel %vm2512_vm3, %v3667_v59, %v2684_v1  ;;  %v1862_v60 = vmax.f32 %v1860_v37, %v1861_v0  ;;  %v2691_v15 = vsel %vm2510_vm2, %v1848_v48, %v2690_v5  ;;  %v243_v48 = vld [vmem:[%s3128_s17 + $0x240] sm:$0xff] }
 0x12b   : > { %v2686_v12 = vsel %vm2514_vm4, %v3669_v9, %v2685_v28  ;;  %v876_v17 = vsel %vm427_vm0, %v235_v61, -inf  ;;  %v1869_v19 = vmax.f32 %v1867_v35, %v1868_v11  ;;  %v1875_v4 = vrot.slane %v1874_v44, 1  ;;  %v244_v11 = vld [vmem:[%s3128_s17 + $0x248] sm:$0xff] }
 0x12c   : > { %v1881_v18 = vmax.f32 %v1879_v57, %v1880_v49  ;;  %v2687_v50 = vsel %vm2516_vm5, %v3674_v58, %v2686_v12  ;;  %v2692_v6 = vsel %vm2512_vm3, %v1855_v47, %v2691_v15  ;;  %v877_v8 = vrot.slane %v876_v17, 4  ;;  %v240_v58 = vld [vmem:[%s3128_s17 + $0x228] sm:$0xff] }
 0x12d   : > { %v2688_v59 = vsel %vm2518_vm6, %v1820_v63, %v2687_v50  ;;  %v883_v9 = vsel %vm427_vm0, %v236_v30, -inf  ;;  %v1876_v2 = vmax.f32 %v1874_v44, %v1875_v4  ;;  %v2693_v22 = vsel %vm2514_vm4, %v1862_v60, %v2692_v6  ;;  %v246_v4 = vld [vmem:[%s3128_s17 + $0x258] sm:$0xff] }
 0x12e   : > { %v1882_v38 = vrot.slane %v1881_v18, 1  ;;  %v2689_v23 = vsel %vm2520_vm7, %v1827_v20, %v2688_v59  ;;  %v2694_v27 = vsel %vm2516_vm5, %v1869_v19, %v2693_v22  ;;  %v878_v55 = vmax.f32 %v876_v17, %v877_v8  ;;  %v245_v19 = vld [vmem:[%s3128_s17 + $0x250] sm:$0xff] }
 0x12f   : > { %v884_v31 = vrot.slane %v883_v9, 4  ;;  %v890_v63 = vsel %vm427_vm0, %v237_v7, -inf  ;;  %v2695_v62 = vsel %vm2518_vm6, %v1876_v2, %v2694_v27  ;;  %v897_v32 = vsel %vm427_vm0, %v238_v53, -inf  ;;  %v247_v2 = vld [vmem:[%s3128_s17 + $0x260] sm:$0xff] }
 0x130   : > { %v1883_v10 = vmax.f32 %v1881_v18, %v1882_v38  ;;  %v891_v21 = vrot.slane %v890_v63, 4  ;;  %v879_v34 = vrot.slane %v878_v55, 2  ;;  %v898_v54 = vrot.slane %v897_v32, 4 }
 0x131   : > { %v885_v20 = vmax.f32 %v883_v9, %v884_v31  ;;  %v904_v25 = vsel %vm427_vm0, %v239_v26, -inf  ;;  %v911_v41 = vsel %vm427_vm0, %v240_v58, -inf  ;;  %v918_v13 = vsel %vm427_vm0, %v241_v33, -inf }
 0x132   : > { %v2696_v39 = vsel %vm2520_vm7, %v1883_v10, %v2695_v62  ;;  %v892_v24 = vmax.f32 %v890_v63, %v891_v21  ;;  %v905_v52 = vrot.slane %v904_v25, 4  ;;  %v880_v14 = vmax.f32 %v878_v55, %v879_v34  ;;  %v248_v63 = vld [vmem:[%s3128_s17 + $0x268] sm:$0xff]  ;;  %v249_v10 = vld [vmem:[%s3128_s17 + $0x270] sm:$0xff] }
 0x133   : > { %v3032_v42 = vpack.c.bf16 %v2696_v39, %v2689_v23  ;;  %v886_v45 = vrot.slane %v885_v20, 2  ;;  %v899_v46 = vmax.f32 %v897_v32, %v898_v54  ;;  %v912_v43 = vrot.slane %v911_v41, 4 }
 0x134   : > { %v893_v36 = vrot.slane %v892_v24, 2  ;;  %v906_v40 = vmax.f32 %v904_v25, %v905_v52  ;;  %v881_v3 = vrot.slane %v880_v14, 1  ;;  %v919_v56 = vrot.slane %v918_v13, 4 }
 0x135   : > { %3033 = vmatprep.subr.bf16.mxu0 %v3032_v42  ;;  %3052 = vmatprep.subr.bf16.mxu1 %v3032_v42  ;;  %v887_v51 = vmax.f32 %v885_v20, %v886_v45  ;;  %v900_v37 = vrot.slane %v899_v46, 2  ;;  %v913_v57 = vmax.f32 %v911_v41, %v912_v43  ;;  %v925_v61 = vsel %vm427_vm0, %v242_v16, -inf  ;;  %v250_v42 = vld [vmem:[%s3128_s17 + $0x278] sm:$0xff] }
 0x136   : > { %v894_v35 = vmax.f32 %v892_v24, %v893_v36  ;;  %v907_v29 = vrot.slane %v906_v40, 2  ;;  %v3720_v47 = vmax.f32 %v880_v14, %v881_v3  ;;  %v920_v5 = vmax.f32 %v918_v13, %v919_v56 }
 0x137   : > { %v888_v0 = vrot.slane %v887_v51, 1  ;;  %v901_v1 = vmax.f32 %v899_v46, %v900_v37  ;;  %v914_v28 = vrot.slane %v913_v57, 2  ;;  %v926_v30 = vrot.slane %v925_v61, 4 }
 0x138   : > { %v895_v44 = vrot.slane %v894_v35, 1  ;;  %v908_v49 = vmax.f32 %v906_v40, %v907_v29  ;;  %v921_v15 = vrot.slane %v920_v5, 2  ;;  %v932_v17 = vsel %vm427_vm0, %v243_v48, -inf }
 0x139   : > { %v3723_v60 = vmax.f32 %v887_v51, %v888_v0  ;;  %v902_v12 = vrot.slane %v901_v1, 1  ;;  %v915_v7 = vmax.f32 %v913_v57, %v914_v28  ;;  %v927_v59 = vmax.f32 %v925_v61, %v926_v30 }
 0x13a   : > { %v3728_v18 = vmax.f32 %v894_v35, %v895_v44  ;;  %v909_v50 = vrot.slane %v908_v49, 1  ;;  %v922_v53 = vmax.f32 %v920_v5, %v921_v15  ;;  %v933_v8 = vrot.slane %v932_v17, 4 }
 0x13b   : > { %v3730_v6 = vmax.f32 %v901_v1, %v902_v12  ;;  %v939_v9 = vsel %vm427_vm0, %v244_v11, -inf  ;;  %v916_v23 = vrot.slane %v915_v7, 1  ;;  %v928_v22 = vrot.slane %v927_v59, 2 }
 0x13c   : > { %v3734_v38 = vmax.f32 %v908_v49, %v909_v50  ;;  %v940_v26 = vrot.slane %v939_v9, 4  ;;  %v923_v27 = vrot.slane %v922_v53, 1  ;;  %v934_v58 = vmax.f32 %v932_v17, %v933_v8 }
 0x13d   : > { %v946_v55 = vsel %vm427_vm0, %v245_v19, -inf  ;;  %v953_v31 = vsel %vm427_vm0, %v246_v4, -inf  ;;  %v917_v62 = vmax.f32 %v915_v7, %v916_v23  ;;  %v929_v21 = vmax.f32 %v927_v59, %v928_v22 }
 0x13e   : > { %v941_v32 = vmax.f32 %v939_v9, %v940_v26  ;;  %v947_v33 = vrot.slane %v946_v55, 4  ;;  %v924_v34 = vmax.f32 %v922_v53, %v923_v27  ;;  %v935_v20 = vrot.slane %v934_v58, 2 }
 0x13f   : > { %v954_v54 = vrot.slane %v953_v31, 4  ;;  %v960_v25 = vsel %vm427_vm0, %v247_v2, -inf  ;;  %v930_v39 = vrot.slane %v929_v21, 1  ;;  %v967_v45 = vsel %vm427_vm0, %v248_v63, -inf  ;;  %v379_v2 = vld [vmem:[%s3128_s17 + $0x680] sm:$0xff] }
 0x140   : > { %v942_v24 = vrot.slane %v941_v32, 2  ;;  %v948_v52 = vmax.f32 %v946_v55, %v947_v33  ;;  %v961_v41 = vrot.slane %v960_v25, 4  ;;  %v936_v16 = vmax.f32 %v934_v58, %v935_v20  ;;  %v380_v55 = vld [vmem:[%s3128_s17 + $0x688] sm:$0xff] }
 0x141   : > { %v955_v14 = vmax.f32 %v953_v31, %v954_v54  ;;  %v974_v46 = vsel %vm427_vm0, %v249_v10, -inf  ;;  %v931_v36 = vmax.f32 %v929_v21, %v930_v39  ;;  %v968_v37 = vrot.slane %v967_v45, 4  ;;  %v381_v31 = vld [vmem:[%s3128_s17 + $0x690] sm:$0xff]  ;;  %v382_v21 = vld [vmem:[%s3128_s17 + $0x698] sm:$0xff]  ;;  %v384_v39 = vld [vmem:[%s3128_s17 + $0x6a8] sm:$0xff] }
 0x142   : > { %v943_v40 = vmax.f32 %v941_v32, %v942_v24  ;;  %v949_v43 = vrot.slane %v948_v52, 2  ;;  %v962_v13 = vmax.f32 %v960_v25, %v961_v41  ;;  %v937_v3 = vrot.slane %v936_v16, 1  ;;  %v383_v25 = vld [vmem:[%s3128_s17 + $0x6a0] sm:$0xff] }
 0x143   : > { %v956_v51 = vrot.slane %v955_v14, 2  ;;  %v975_v56 = vrot.slane %v974_v46, 4  ;;  %v981_v57 = vsel %vm427_vm0, %v250_v42, -inf  ;;  %v969_v1 = vmax.f32 %v967_v45, %v968_v37 }
 0x144   : > { %v944_v48 = vrot.slane %v943_v40, 1  ;;  %v950_v35 = vmax.f32 %v948_v52, %v949_v43  ;;  %v963_v29 = vrot.slane %v962_v13, 2  ;;  %v938_v61 = vmax.f32 %v936_v16, %v937_v3  ;;  %v385_v43 = vld [vmem:[%s3128_s17 + $0x6b0] sm:$0xff] }
 0x145   : > { %v957_v0 = vmax.f32 %v955_v14, %v956_v51  ;;  %v976_v5 = vmax.f32 %v974_v46, %v975_v56  ;;  %v982_v28 = vrot.slane %v981_v57, 4  ;;  %v970_v12 = vrot.slane %v969_v1, 2 }
 0x146   : > { %v945_v11 = vmax.f32 %v943_v40, %v944_v48  ;;  %v951_v44 = vrot.slane %v950_v35, 1  ;;  %v964_v49 = vmax.f32 %v962_v13, %v963_v29  ;;  %v2571_v17 = vsel %vm2508_vm1, %v3723_v60, %v3720_v47 }
 0x147   : > { %v958_v30 = vrot.slane %v957_v0, 1  ;;  %v977_v15 = vrot.slane %v976_v5, 2  ;;  %v983_v50 = vmax.f32 %v981_v57, %v982_v28  ;;  %v2572_v7 = vsel %vm2510_vm2, %v3728_v18, %v2571_v17 }
 0x148   : > { %v952_v19 = vmax.f32 %v950_v35, %v951_v44  ;;  %v965_v4 = vrot.slane %v964_v49, 1  ;;  %v971_v53 = vmax.f32 %v969_v1, %v970_v12  ;;  %v2573_v9 = vsel %vm2512_vm3, %v3730_v6, %v2572_v7 }
 0x149   : > { %v959_v59 = vmax.f32 %v957_v0, %v958_v30  ;;  %v978_v8 = vmax.f32 %v976_v5, %v977_v15  ;;  %v984_v22 = vrot.slane %v983_v50, 2  ;;  %v2574_v47 = vsel %vm2514_vm4, %v3734_v38, %v2573_v9 }
 0x14a   : > { %v966_v23 = vmax.f32 %v964_v49, %v965_v4  ;;  %v2578_v60 = vsel %vm2508_vm1, %v945_v11, %v938_v61  ;;  %v972_v26 = vrot.slane %v971_v53, 1  ;;  %v2575_v18 = vsel %vm2516_vm5, %v917_v62, %v2574_v47  ;;  %v386_v61 = vld [vmem:[%s3128_s17 + $0x6b8] sm:$0xff] }
 0x14b   : > { %v979_v27 = vrot.slane %v978_v8, 1  ;;  %v2579_v58 = vsel %vm2510_vm2, %v952_v19, %v2578_v60  ;;  %v985_v63 = vmax.f32 %v983_v50, %v984_v22  ;;  %v2576_v6 = vsel %vm2518_vm6, %v924_v34, %v2575_v18 }
 0x14c   : > { %v2580_v10 = vsel %vm2512_vm3, %v959_v59, %v2579_v58  ;;  %v1884_v38 = vsel %vm427_vm0, %v379_v2, -inf  ;;  %v973_v32 = vmax.f32 %v971_v53, %v972_v26  ;;  %v2577_v20 = vsel %vm2520_vm7, %v931_v36, %v2576_v6  ;;  %v387_v59 = vld [vmem:[%s3128_s17 + $0x6c0] sm:$0xff] }
 0x14d   : > { %v980_v33 = vmax.f32 %v978_v8, %v979_v27  ;;  %v2581_v54 = vsel %vm2514_vm4, %v966_v23, %v2580_v10  ;;  %v986_v62 = vrot.slane %v985_v63, 1  ;;  %v1885_v24 = vrot.slane %v1884_v38, 4  ;;  %v388_v23 = vld [vmem:[%s3128_s17 + $0x6c8] sm:$0xff]  ;;  %v389_v27 = vld [vmem:[%s3128_s17 + $0x6d0] sm:$0xff] }
 0x14e   : > { %v1891_v52 = vsel %vm427_vm0, %v380_v55, -inf  ;;  %v1898_v34 = vsel %vm427_vm0, %v381_v31, -inf  ;;  %v2582_v41 = vsel %vm2516_vm5, %v973_v32, %v2581_v54  ;;  %v1905_v14 = vsel %vm427_vm0, %v382_v21, -inf  ;;  %v391_v32 = vld [vmem:[%s3128_s17 + $0x6e0] sm:$0xff] }
 0x14f   : > { %v1892_v42 = vrot.slane %v1891_v52, 4  ;;  %v1899_v16 = vrot.slane %v1898_v34, 4  ;;  %v987_v45 = vmax.f32 %v985_v63, %v986_v62  ;;  %v2583_v46 = vsel %vm2518_vm6, %v980_v33, %v2582_v41 }
 0x150   : > { %v1886_v36 = vmax.f32 %v1884_v38, %v1885_v24  ;;  %v1906_v40 = vrot.slane %v1905_v14, 4  ;;  %v1912_v51 = vsel %vm427_vm0, %v383_v25, -inf  ;;  %v1919_v37 = vsel %vm427_vm0, %v384_v39, -inf  ;;  %v390_v38 = vld [vmem:[%s3128_s17 + $0x6d8] sm:$0xff] }
 0x151   : > { %v1893_v13 = vmax.f32 %v1891_v52, %v1892_v42  ;;  %v1900_v3 = vmax.f32 %v1898_v34, %v1899_v16  ;;  %v2584_v56 = vsel %vm2520_vm7, %v987_v45, %v2583_v46  ;;  %v1913_v29 = vrot.slane %v1912_v51, 4  ;;  %v392_v34 = vld [vmem:[%s3128_s17 + $0x6e8] sm:$0xff] }
 0x152   : > { %v1887_v48 = vrot.slane %v1886_v36, 2  ;;  %v1907_v35 = vmax.f32 %v1905_v14, %v1906_v40  ;;  %v3034_v57 = vpack.c.bf16 %v2584_v56, %v2577_v20  ;;  %v1920_v5 = vrot.slane %v1919_v37, 4 }
 0x153   : > { %v1894_v0 = vrot.slane %v1893_v13, 2  ;;  %v1901_v1 = vrot.slane %v1900_v3, 2  ;;  %v1914_v49 = vmax.f32 %v1912_v51, %v1913_v29  ;;  %v1926_v28 = vsel %vm427_vm0, %v385_v43, -inf  ;;  %v393_v43 = vld [vmem:[%s3128_s17 + $0x6f0] sm:$0xff] }
 0x154   : > { %v1888_v11 = vmax.f32 %v1886_v36, %v1887_v48  ;;  %v1908_v44 = vrot.slane %v1907_v35, 2  ;;  %3035 = vmatpush3.bf16.msra.mxu0 %v3034_v57  ;;  %3060 = vmatpush3.bf16.msra.mxu1 %v3034_v57  ;;  %v1921_v15 = vmax.f32 %v1919_v37, %v1920_v5  ;;  %v1927_v17 = vrot.slane %v1926_v28, 4  ;;  %v394_v57 = vld [vmem:[%s3128_s17 + $0x6f8] sm:$0xff] }
 0x155   : > { %v1895_v30 = vmax.f32 %v1893_v13, %v1894_v0  ;;  %v1902_v12 = vmax.f32 %v1900_v3, %v1901_v1  ;;  %v1915_v50 = vrot.slane %v1914_v49, 2  ;;  %v1933_v7 = vsel %vm427_vm0, %v386_v61, -inf }
 0x156   : > { %v1889_v19 = vrot.slane %v1888_v11, 1  ;;  %v1909_v4 = vmax.f32 %v1907_v35, %v1908_v44  ;;  %v1922_v9 = vrot.slane %v1921_v15, 2  ;;  %v1928_v2 = vmax.f32 %v1926_v28, %v1927_v17 }
 0x157   : > { %v1896_v53 = vrot.slane %v1895_v30, 1  ;;  %v1903_v8 = vrot.slane %v1902_v12, 1  ;;  %v1916_v60 = vmax.f32 %v1914_v49, %v1915_v50  ;;  %v1934_v26 = vrot.slane %v1933_v7, 4 }
 0x158   : > { %v3782_v22 = vmax.f32 %v1888_v11, %v1889_v19  ;;  %v1910_v47 = vrot.slane %v1909_v4, 1  ;;  %v1923_v55 = vmax.f32 %v1921_v15, %v1922_v9  ;;  %v1929_v31 = vrot.slane %v1928_v2, 2 }
 0x159   : > { %v3785_v18 = vmax.f32 %v1895_v30, %v1896_v53  ;;  %v3787_v58 = vmax.f32 %v1902_v12, %v1903_v8  ;;  %v1917_v6 = vrot.slane %v1916_v60, 1  ;;  %v1935_v10 = vmax.f32 %v1933_v7, %v1934_v26 }
 0x15a   : > { %v3789_v63 = vmax.f32 %v1909_v4, %v1910_v47  ;;  %v1940_v21 = vsel %vm427_vm0, %v387_v59, -inf  ;;  %v1924_v33 = vrot.slane %v1923_v55, 1  ;;  %v1930_v20 = vmax.f32 %v1928_v2, %v1929_v31 }
 0x15b   : > { %v1941_v54 = vrot.slane %v1940_v21, 4  ;;  %v1947_v62 = vsel %vm427_vm0, %v388_v23, -inf  ;;  %v3795_v25 = vmax.f32 %v1916_v60, %v1917_v6  ;;  %v1936_v39 = vrot.slane %v1935_v10, 2 }
 0x15c   : > { %v1948_v24 = vrot.slane %v1947_v62, 4  ;;  %v1954_v52 = vsel %vm427_vm0, %v389_v27, -inf  ;;  %v1925_v41 = vmax.f32 %v1923_v55, %v1924_v33  ;;  %v1931_v42 = vrot.slane %v1930_v20, 1 }
 0x15d   : > { %v1942_v16 = vmax.f32 %v1940_v21, %v1941_v54  ;;  %v1955_v14 = vrot.slane %v1954_v52, 4  ;;  %v1937_v45 = vmax.f32 %v1935_v10, %v1936_v39  ;;  %v1961_v36 = vsel %vm427_vm0, %v390_v38, -inf }
 0x15e   : > { %v1949_v46 = vmax.f32 %v1947_v62, %v1948_v24  ;;  %v1968_v40 = vsel %vm427_vm0, %v391_v32, -inf  ;;  %v1932_v13 = vmax.f32 %v1930_v20, %v1931_v42  ;;  %v1962_v37 = vrot.slane %v1961_v36, 4  ;;  %v251_v32 = vld [vmem:[%s3128_s17 + $0x280] sm:$0xff] }
 0x15f   : > { %v1943_v3 = vrot.slane %v1942_v16, 2  ;;  %v1956_v51 = vmax.f32 %v1954_v52, %v1955_v14  ;;  %v1938_v56 = vrot.slane %v1937_v45, 1  ;;  %v1969_v35 = vrot.slane %v1968_v40, 4  ;;  %v252_v52 = vld [vmem:[%s3128_s17 + $0x288] sm:$0xff] }
 0x160   : > { %v1950_v48 = vrot.slane %v1949_v46, 2  ;;  %v1975_v29 = vsel %vm427_vm0, %v392_v34, -inf  ;;  %v1963_v1 = vmax.f32 %v1961_v36, %v1962_v37  ;;  %v1982_v28 = vsel %vm427_vm0, %v393_v43, -inf  ;;  %v253_v36 = vld [vmem:[%s3128_s17 + $0x290] sm:$0xff]  ;;  %v255_v43 = vld [vmem:[%s3128_s17 + $0x2a0] sm:$0xff] }
 0x161   : > { %v1944_v61 = vmax.f32 %v1942_v16, %v1943_v3  ;;  %v1957_v0 = vrot.slane %v1956_v51, 2  ;;  %v1976_v5 = vrot.slane %v1975_v29, 4  ;;  %v1939_v11 = vmax.f32 %v1937_v45, %v1938_v56 }
 0x162   : > { %v1951_v44 = vmax.f32 %v1949_v46, %v1950_v48  ;;  %v1970_v49 = vmax.f32 %v1968_v40, %v1969_v35  ;;  %v1964_v15 = vrot.slane %v1963_v1, 2  ;;  %v1983_v50 = vrot.slane %v1982_v28, 4  ;;  %v254_v40 = vld [vmem:[%s3128_s17 + $0x298] sm:$0xff]  ;;  %v256_v35 = vld [vmem:[%s3128_s17 + $0x2a8] sm:$0xff] }
 0x163   : > { %v1945_v30 = vrot.slane %v1944_v61, 1  ;;  %v1958_v12 = vmax.f32 %v1956_v51, %v1957_v0  ;;  %v1977_v17 = vmax.f32 %v1975_v29, %v1976_v5  ;;  %v1989_v7 = vsel %vm427_vm0, %v394_v57, -inf }
 0x164   : > { %v1952_v19 = vrot.slane %v1951_v44, 1  ;;  %v1971_v4 = vrot.slane %v1970_v49, 2  ;;  %v1965_v8 = vmax.f32 %v1963_v1, %v1964_v15  ;;  %v1984_v47 = vmax.f32 %v1982_v28, %v1983_v50 }
 0x165   : > { %v1946_v59 = vmax.f32 %v1944_v61, %v1945_v30  ;;  %v1959_v53 = vrot.slane %v1958_v12, 1  ;;  %v1978_v9 = vrot.slane %v1977_v17, 2  ;;  %v1990_v60 = vrot.slane %v1989_v7, 4 }
 0x166   : > { %v1953_v2 = vmax.f32 %v1951_v44, %v1952_v19  ;;  %v1972_v23 = vmax.f32 %v1970_v49, %v1971_v4  ;;  %v1966_v27 = vrot.slane %v1965_v8, 1  ;;  %v2697_v31 = vsel %vm2508_vm1, %v3785_v18, %v3782_v22  ;;  %v257_v49 = vld [vmem:[%s3128_s17 + $0x2b0] sm:$0xff] }
 0x167   : > { %v1960_v26 = vmax.f32 %v1958_v12, %v1959_v53  ;;  %v1979_v55 = vmax.f32 %v1977_v17, %v1978_v9  ;;  %v1985_v10 = vrot.slane %v1984_v47, 2  ;;  %v1991_v21 = vmax.f32 %v1989_v7, %v1990_v60 }
 0x168   : > { %v1973_v6 = vrot.slane %v1972_v23, 1  ;;  %v2698_v38 = vsel %vm2510_vm2, %v3787_v58, %v2697_v31  ;;  %v1967_v33 = vmax.f32 %v1965_v8, %v1966_v27  ;;  %v2704_v62 = vsel %vm2508_vm1, %v1953_v2, %v1946_v59  ;;  %v258_v59 = vld [vmem:[%s3128_s17 + $0x2b8] sm:$0xff] }
 0x169   : > { %v1980_v20 = vrot.slane %v1979_v55, 1  ;;  %v2699_v54 = vsel %vm2512_vm3, %v3789_v63, %v2698_v38  ;;  %v1986_v24 = vmax.f32 %v1984_v47, %v1985_v10  ;;  %v1992_v22 = vrot.slane %v1991_v21, 2 }
 0x16a   : > { %v1974_v39 = vmax.f32 %v1972_v23, %v1973_v6  ;;  %v2700_v18 = vsel %vm2514_vm4, %v3795_v25, %v2699_v54  ;;  %v2705_v42 = vsel %vm2510_vm2, %v1960_v26, %v2704_v62  ;;  %v988_v16 = vsel %vm427_vm0, %v251_v32, -inf  ;;  %v259_v6 = vld [vmem:[%s3128_s17 + $0x2c0] sm:$0xff] }
 0x16b   : > { %v1981_v34 = vmax.f32 %v1979_v55, %v1980_v20  ;;  %v2701_v58 = vsel %vm2516_vm5, %v1925_v41, %v2700_v18  ;;  %v1987_v63 = vrot.slane %v1986_v24, 1  ;;  %v1993_v14 = vmax.f32 %v1991_v21, %v1992_v22 }
 0x16c   : > { %v2702_v45 = vsel %vm2518_vm6, %v1932_v13, %v2701_v58  ;;  %v2706_v46 = vsel %vm2512_vm3, %v1967_v33, %v2705_v42  ;;  %v989_v41 = vrot.slane %v988_v16, 4  ;;  %v995_v51 = vsel %vm427_vm0, %v252_v52, -inf }
 0x16d   : > { %v2703_v25 = vsel %vm2520_vm7, %v1939_v11, %v2702_v45  ;;  %v2707_v3 = vsel %vm2514_vm4, %v1974_v39, %v2706_v46  ;;  %v1988_v37 = vmax.f32 %v1986_v24, %v1987_v63  ;;  %v1994_v56 = vrot.slane %v1993_v14, 1  ;;  %v260_v39 = vld [vmem:[%s3128_s17 + $0x2c8] sm:$0xff]  ;;  %v261_v63 = vld [vmem:[%s3128_s17 + $0x2d0] sm:$0xff]  ;;  %v263_v45 = vld [vmem:[%s3128_s17 + $0x2e0] sm:$0xff] }
 0x16e   : > { %v2708_v48 = vsel %vm2516_vm5, %v1981_v34, %v2707_v3  ;;  %v996_v29 = vrot.slane %v995_v51, 4  ;;  %v990_v13 = vmax.f32 %v988_v16, %v989_v41  ;;  %v1002_v57 = vsel %vm427_vm0, %v253_v36, -inf }
 0x16f   : > { %v1009_v61 = vsel %vm427_vm0, %v254_v40, -inf  ;;  %v1016_v0 = vsel %vm427_vm0, %v255_v43, -inf  ;;  %v1995_v1 = vmax.f32 %v1993_v14, %v1994_v56  ;;  %v2709_v5 = vsel %vm2518_vm6, %v1988_v37, %v2708_v48  ;;  %v262_v14 = vld [vmem:[%s3128_s17 + $0x2d8] sm:$0xff]  ;;  %v264_v37 = vld [vmem:[%s3128_s17 + $0x2e8] sm:$0xff] }
 0x170   : > { %v997_v11 = vmax.f32 %v995_v51, %v996_v29  ;;  %v1003_v44 = vrot.slane %v1002_v57, 4  ;;  %v991_v28 = vrot.slane %v990_v13, 2  ;;  %v1010_v30 = vrot.slane %v1009_v61, 4 }
 0x171   : > { %v1017_v12 = vrot.slane %v1016_v0, 4  ;;  %v1023_v15 = vsel %vm427_vm0, %v256_v35, -inf  ;;  %v2710_v17 = vsel %vm2520_vm7, %v1995_v1, %v2709_v5  ;;  %v1030_v60 = vsel %vm427_vm0, %v257_v49, -inf  ;;  %v265_v1 = vld [vmem:[%s3128_s17 + $0x2f0] sm:$0xff] }
 0x172   : > { %v998_v19 = vrot.slane %v997_v11, 2  ;;  %v1004_v4 = vmax.f32 %v1002_v57, %v1003_v44  ;;  %v1024_v50 = vrot.slane %v1023_v15, 4  ;;  %v3036_v7 = vpack.c.bf16 %v2710_v17, %v2703_v25 }
 0x173   : > { %v992_v53 = vmax.f32 %v990_v13, %v991_v28  ;;  %v1011_v8 = vmax.f32 %v1009_v61, %v1010_v30  ;;  %v1018_v9 = vmax.f32 %v1016_v0, %v1017_v12  ;;  %v1031_v31 = vrot.slane %v1030_v60, 4 }
 0x174   : > { %v999_v2 = vmax.f32 %v997_v11, %v998_v19  ;;  %v1005_v23 = vrot.slane %v1004_v4, 2  ;;  %v1025_v47 = vmax.f32 %v1023_v15, %v1024_v50  ;;  %3037 = vmatprep.subr.bf16.mxu0 %v3036_v7  ;;  %3053 = vmatprep.subr.bf16.mxu1 %v3036_v7  ;;  %v1037_v32 = vsel %vm427_vm0, %v258_v59, -inf  ;;  %v266_v7 = vld [vmem:[%s3128_s17 + $0x2f8] sm:$0xff] }
 0x175   : > { %v993_v26 = vrot.slane %v992_v53, 1  ;;  %v1012_v27 = vrot.slane %v1011_v8, 2  ;;  %v1019_v55 = vrot.slane %v1018_v9, 2  ;;  %v1032_v62 = vmax.f32 %v1030_v60, %v1031_v31 }
 0x176   : > { %v1000_v10 = vrot.slane %v999_v2, 1  ;;  %v1006_v21 = vmax.f32 %v1004_v4, %v1005_v23  ;;  %v1026_v38 = vrot.slane %v1025_v47, 2  ;;  %v1038_v52 = vrot.slane %v1037_v32, 4 }
 0x177   : > { %v3842_v33 = vmax.f32 %v992_v53, %v993_v26  ;;  %v1013_v20 = vmax.f32 %v1011_v8, %v1012_v27  ;;  %v1020_v54 = vmax.f32 %v1018_v9, %v1019_v55  ;;  %v1033_v42 = vrot.slane %v1032_v62, 2 }
 0x178   : > { %v3845_v24 = vmax.f32 %v999_v2, %v1000_v10  ;;  %v1007_v22 = vrot.slane %v1006_v21, 1  ;;  %v1027_v18 = vmax.f32 %v1025_v47, %v1026_v38  ;;  %v1044_v16 = vsel %vm427_vm0, %v259_v6, -inf }
 0x179   : > { %v1014_v34 = vrot.slane %v1013_v20, 1  ;;  %v1021_v58 = vrot.slane %v1020_v54, 1  ;;  %v1039_v40 = vmax.f32 %v1037_v32, %v1038_v52  ;;  %v1045_v43 = vrot.slane %v1044_v16, 4 }
 0x17a   : > { %v3851_v46 = vmax.f32 %v1006_v21, %v1007_v22  ;;  %v1028_v36 = vrot.slane %v1027_v18, 1  ;;  %v1034_v41 = vmax.f32 %v1032_v62, %v1033_v42  ;;  %v1051_v51 = vsel %vm427_vm0, %v260_v39, -inf }
 0x17b   : > { %v3853_v25 = vmax.f32 %v1013_v20, %v1014_v34  ;;  %v3855_v3 = vmax.f32 %v1020_v54, %v1021_v58  ;;  %v1040_v48 = vrot.slane %v1039_v40, 2  ;;  %v1046_v35 = vmax.f32 %v1044_v16, %v1045_v43 }
 0x17c   : > { %v3859_v56 = vmax.f32 %v1027_v18, %v1028_v36  ;;  %v1052_v29 = vrot.slane %v1051_v51, 4  ;;  %v1035_v13 = vrot.slane %v1034_v41, 1  ;;  %v1058_v57 = vsel %vm427_vm0, %v261_v63, -inf  ;;  %v395_v63 = vld [vmem:[%s3128_s17 + $0x700] sm:$0xff] }
 0x17d   : > { %v1065_v61 = vsel %vm427_vm0, %v262_v14, -inf  ;;  %v1072_v0 = vsel %vm427_vm0, %v263_v45, -inf  ;;  %v1041_v5 = vmax.f32 %v1039_v40, %v1040_v48  ;;  %v1047_v11 = vrot.slane %v1046_v35, 2 }
 0x17e   : > { %v1053_v44 = vmax.f32 %v1051_v51, %v1052_v29  ;;  %v1059_v49 = vrot.slane %v1058_v57, 4  ;;  %v3865_v28 = vmax.f32 %v1034_v41, %v1035_v13  ;;  %v1066_v30 = vrot.slane %v1065_v61, 4 }
 0x17f   : > { %v1073_v12 = vrot.slane %v1072_v0, 4  ;;  %v1079_v15 = vsel %vm427_vm0, %v264_v37, -inf  ;;  %v1042_v17 = vrot.slane %v1041_v5, 1  ;;  %v1048_v19 = vmax.f32 %v1046_v35, %v1047_v11  ;;  %v396_v35 = vld [vmem:[%s3128_s17 + $0x708] sm:$0xff]  ;;  %v398_v11 = vld [vmem:[%s3128_s17 + $0x718] sm:$0xff] }
 0x180   : > { %v1054_v4 = vrot.slane %v1053_v44, 2  ;;  %v1060_v50 = vmax.f32 %v1058_v57, %v1059_v49  ;;  %v1067_v59 = vmax.f32 %v1065_v61, %v1066_v30  ;;  %v1080_v8 = vrot.slane %v1079_v15, 4 }
 0x181   : > { %v1074_v53 = vmax.f32 %v1072_v0, %v1073_v12  ;;  %v1086_v9 = vsel %vm427_vm0, %v265_v1, -inf  ;;  %v1043_v2 = vmax.f32 %v1041_v5, %v1042_v17  ;;  %v1049_v23 = vrot.slane %v1048_v19, 1  ;;  %v397_v5 = vld [vmem:[%s3128_s17 + $0x710] sm:$0xff] }
 0x182   : > { %v1055_v47 = vmax.f32 %v1053_v44, %v1054_v4  ;;  %v1061_v60 = vrot.slane %v1060_v50, 2  ;;  %v1068_v26 = vrot.slane %v1067_v59, 2  ;;  %v1081_v55 = vmax.f32 %v1079_v15, %v1080_v8  ;;  %v399_v44 = vld [vmem:[%s3128_s17 + $0x720] sm:$0xff]  ;;  %v400_v4 = vld [vmem:[%s3128_s17 + $0x728] sm:$0xff] }
 0x183   : > { %v1075_v27 = vrot.slane %v1074_v53, 2  ;;  %v1087_v31 = vrot.slane %v1086_v9, 4  ;;  %v1050_v6 = vmax.f32 %v1048_v19, %v1049_v23  ;;  %v1093_v38 = vsel %vm427_vm0, %v266_v7, -inf }
 0x184   : > { %v1056_v10 = vrot.slane %v1055_v47, 1  ;;  %v1062_v21 = vmax.f32 %v1060_v50, %v1061_v60  ;;  %v1069_v32 = vmax.f32 %v1067_v59, %v1068_v26  ;;  %v1082_v54 = vrot.slane %v1081_v55, 2  ;;  %v401_v50 = vld [vmem:[%s3128_s17 + $0x730] sm:$0xff] }
 0x185   : > { %v1076_v20 = vmax.f32 %v1074_v53, %v1075_v27  ;;  %v1088_v62 = vmax.f32 %v1086_v9, %v1087_v31  ;;  %v1094_v18 = vrot.slane %v1093_v38, 4  ;;  %v2585_v52 = vsel %vm2508_vm1, %v3845_v24, %v3842_v33 }
 0x186   : > { %v1057_v39 = vmax.f32 %v1055_v47, %v1056_v10  ;;  %v1063_v22 = vrot.slane %v1062_v21, 1  ;;  %v1070_v34 = vrot.slane %v1069_v32, 1  ;;  %v1083_v42 = vmax.f32 %v1081_v55, %v1082_v54 }
 0x187   : > { %v1077_v58 = vrot.slane %v1076_v20, 1  ;;  %v1089_v16 = vrot.slane %v1088_v62, 2  ;;  %v1095_v45 = vmax.f32 %v1093_v38, %v1094_v18  ;;  %v2586_v36 = vsel %vm2510_vm2, %v3851_v46, %v2585_v52 }
 0x188   : > { %v1064_v14 = vmax.f32 %v1062_v21, %v1063_v22  ;;  %v2592_v40 = vsel %vm2508_vm1, %v1057_v39, %v1050_v6  ;;  %v1071_v43 = vmax.f32 %v1069_v32, %v1070_v34  ;;  %v1084_v51 = vrot.slane %v1083_v42, 1  ;;  %v402_v6 = vld [vmem:[%s3128_s17 + $0x738] sm:$0xff]  ;;  %v2221_v34 = vld [vmem:[%s4198_s1 + $0x8] sm:$0xff] }
 0x189   : > { %v1078_v41 = vmax.f32 %v1076_v20, %v1077_v58  ;;  %v1090_v33 = vmax.f32 %v1088_v62, %v1089_v16  ;;  %v1096_v24 = vrot.slane %v1095_v45, 2  ;;  %v2587_v37 = vsel %vm2512_vm3, %v3853_v25, %v2586_v36  ;;  %v2225_v58 = vld [vmem:[%s4198_s1 + $0x28] sm:$0xff]  ;;  %2835 = vmatprep.mubr.f32.mxu0 %v2221_v34 }
 0x18a   : > { %v2593_v48 = vsel %vm2510_vm2, %v1064_v14, %v2592_v40  ;;  %v1996_v29 = vsel %vm427_vm0, %v395_v63, -inf  ;;  %v1085_v13 = vmax.f32 %v1083_v42, %v1084_v51  ;;  %v2588_v57 = vsel %vm2514_vm4, %v3855_v3, %v2587_v37  ;;  %v403_v42 = vld [vmem:[%s3128_s17 + $0x740] sm:$0xff]  ;;  %2845 = vmatprep.mubr.f32.mxu1 %v2225_v58  ;;  %v404_v51 = vld [vmem:[%s3128_s17 + $0x748] sm:$0xff] }
 0x18b   : > { %v1091_v46 = vrot.slane %v1090_v33, 1  ;;  %v2594_v61 = vsel %vm2512_vm3, %v1071_v43, %v2593_v48  ;;  %v1097_v0 = vmax.f32 %v1095_v45, %v1096_v24  ;;  %v2589_v1 = vsel %vm2516_vm5, %v3859_v56, %v2588_v57  ;;  %v405_v57 = vld [vmem:[%s3128_s17 + $0x750] sm:$0xff] }
 0x18c   : > { %v2595_v25 = vsel %vm2514_vm4, %v1078_v41, %v2594_v61  ;;  %v1997_v49 = vrot.slane %v1996_v29, 4  ;;  %v2590_v12 = vsel %vm2518_vm6, %v3865_v28, %v2589_v1  ;;  %v2003_v3 = vsel %vm427_vm0, %v396_v35, -inf }
 0x18d   : > { %v1092_v30 = vmax.f32 %v1090_v33, %v1091_v46  ;;  %v2596_v15 = vsel %vm2516_vm5, %v1085_v13, %v2595_v25  ;;  %v1098_v17 = vrot.slane %v1097_v0, 1  ;;  %v2591_v19 = vsel %vm2520_vm7, %v1043_v2, %v2590_v12 }
 0x18e   : > { %v1998_v56 = vmax.f32 %v1996_v29, %v1997_v49  ;;  %v2004_v7 = vrot.slane %v2003_v3, 4  ;;  %v2010_v53 = vsel %vm427_vm0, %v397_v5, -inf  ;;  %v2017_v8 = vsel %vm427_vm0, %v398_v11, -inf  ;;  %v406_v5 = vld [vmem:[%s3128_s17 + $0x758] sm:$0xff] }
 0x18f   : > { %v2597_v59 = vsel %vm2518_vm6, %v1092_v30, %v2596_v15  ;;  %v2024_v28 = vsel %vm427_vm0, %v399_v44, -inf  ;;  %v1099_v9 = vmax.f32 %v1097_v0, %v1098_v17  ;;  %v2011_v60 = vrot.slane %v2010_v53, 4 }
 0x190   : > { %v1999_v23 = vrot.slane %v1998_v56, 2  ;;  %v2005_v47 = vmax.f32 %v2003_v3, %v2004_v7  ;;  %v2018_v26 = vrot.slane %v2017_v8, 4  ;;  %v2025_v27 = vrot.slane %v2024_v28, 4 }
 0x191   : > { %v2031_v2 = vsel %vm427_vm0, %v400_v4, -inf  ;;  %v2038_v55 = vsel %vm427_vm0, %v401_v50, -inf  ;;  %v2598_v31 = vsel %vm2520_vm7, %v1099_v9, %v2597_v59  ;;  %v2012_v38 = vmax.f32 %v2010_v53, %v2011_v60  ;;  %v408_v4 = vld [vmem:[%s3128_s17 + $0x768] sm:$0xff] }
 0x192   : > { %v2000_v10 = vmax.f32 %v1998_v56, %v1999_v23  ;;  %v2006_v21 = vrot.slane %v2005_v47, 2  ;;  %v3038_v32 = vpack.c.bf16 %v2598_v31, %v2591_v19  ;;  %v2019_v20 = vmax.f32 %v2017_v8, %v2018_v26  ;;  %v407_v19 = vld [vmem:[%s3128_s17 + $0x760] sm:$0xff]  ;;  %v409_v23 = vld [vmem:[%s3128_s17 + $0x770] sm:$0xff] }
 0x193   : > { %v2026_v54 = vmax.f32 %v2024_v28, %v2025_v27  ;;  %v2032_v62 = vrot.slane %v2031_v2, 4  ;;  %v2013_v18 = vrot.slane %v2012_v38, 2  ;;  %v2039_v52 = vrot.slane %v2038_v55, 4 }
 0x194   : > { %v2001_v39 = vrot.slane %v2000_v10, 1  ;;  %v2007_v22 = vmax.f32 %v2005_v47, %v2006_v21  ;;  %3039 = vmatpush3.bf16.msra.mxu0 %v3038_v32  ;;  %3061 = vmatpush3.bf16.msra.mxu1 %v3038_v32  ;;  %v2020_v16 = vrot.slane %v2019_v20, 2  ;;  %v2045_v45 = vsel %vm427_vm0, %v402_v6, -inf }
 0x195   : > { %v2027_v63 = vrot.slane %v2026_v54, 2  ;;  %v2033_v14 = vmax.f32 %v2031_v2, %v2032_v62  ;;  %v2014_v43 = vmax.f32 %v2012_v38, %v2013_v18  ;;  %v2040_v41 = vmax.f32 %v2038_v55, %v2039_v52 }
 0x196   : > { %v3915_v36 = vmax.f32 %v2000_v10, %v2001_v39  ;;  %v2008_v40 = vrot.slane %v2007_v22, 1  ;;  %v2021_v33 = vmax.f32 %v2019_v20, %v2020_v16  ;;  %v2046_v48 = vrot.slane %v2045_v45, 4  ;;  %v410_v10 = vld [vmem:[%s3128_s17 + $0x778] sm:$0xff] }
 0x197   : > { %v2028_v24 = vmax.f32 %v2026_v54, %v2027_v63  ;;  %v2034_v37 = vrot.slane %v2033_v14, 2  ;;  %v2015_v29 = vrot.slane %v2014_v43, 1  ;;  %v2041_v13 = vrot.slane %v2040_v41, 2 }
 0x198   : > { %v3918_v35 = vmax.f32 %v2007_v22, %v2008_v40  ;;  %v2052_v46 = vsel %vm427_vm0, %v403_v42, -inf  ;;  %v2022_v61 = vrot.slane %v2021_v33, 1  ;;  %v2047_v25 = vmax.f32 %v2045_v45, %v2046_v48 }
 0x199   : > { %v2029_v0 = vrot.slane %v2028_v24, 1  ;;  %v2035_v1 = vmax.f32 %v2033_v14, %v2034_v37  ;;  %v3923_v11 = vmax.f32 %v2014_v43, %v2015_v29  ;;  %v2042_v44 = vmax.f32 %v2040_v41, %v2041_v13 }
 0x19a   : > { %v2053_v49 = vrot.slane %v2052_v46, 4  ;;  %v2059_v30 = vsel %vm427_vm0, %v404_v51, -inf  ;;  %v3926_v12 = vmax.f32 %v2021_v33, %v2022_v61  ;;  %v2048_v17 = vrot.slane %v2047_v25, 2 }
 0x19b   : > { %v3928_v15 = vmax.f32 %v2028_v24, %v2029_v0  ;;  %v2036_v3 = vrot.slane %v2035_v1, 1  ;;  %v2043_v50 = vrot.slane %v2042_v44, 1  ;;  %v2060_v7 = vrot.slane %v2059_v30, 4 }
 0x19c   : > { %v2054_v56 = vmax.f32 %v2052_v46, %v2053_v49  ;;  %v2066_v59 = vsel %vm427_vm0, %v405_v57, -inf  ;;  %v2049_v8 = vmax.f32 %v2047_v25, %v2048_v17  ;;  %v2073_v9 = vsel %vm427_vm0, %v406_v5, -inf  ;;  %v267_v25 = vld [vmem:[%s3128_s17 + $0x300] sm:$0xff] }
 0x19d   : > { %v3933_v53 = vmax.f32 %v2035_v1, %v2036_v3  ;;  %v2067_v28 = vrot.slane %v2066_v59, 4  ;;  %v2044_v47 = vmax.f32 %v2042_v44, %v2043_v50  ;;  %v2061_v26 = vmax.f32 %v2059_v30, %v2060_v7 }
 0x19e   : > { %v2055_v60 = vrot.slane %v2054_v56, 2  ;;  %v2074_v27 = vrot.slane %v2073_v9, 4  ;;  %v2050_v2 = vrot.slane %v2049_v8, 1  ;;  %v2080_v31 = vsel %vm427_vm0, %v407_v19, -inf }
 0x19f   : > { %v2068_v55 = vmax.f32 %v2066_v59, %v2067_v28  ;;  %v2087_v6 = vsel %vm427_vm0, %v408_v4, -inf  ;;  %v2062_v38 = vrot.slane %v2061_v26, 2  ;;  %v2081_v20 = vrot.slane %v2080_v31, 4 }
 0x1a0   : > { %v2056_v21 = vmax.f32 %v2054_v56, %v2055_v60  ;;  %v2075_v32 = vmax.f32 %v2073_v9, %v2074_v27  ;;  %v2051_v54 = vmax.f32 %v2049_v8, %v2050_v2  ;;  %v2088_v39 = vrot.slane %v2087_v6, 4  ;;  %v269_v9 = vld [vmem:[%s3128_s17 + $0x310] sm:$0xff]  ;;  %v270_v60 = vld [vmem:[%s3128_s17 + $0x318] sm:$0xff] }
 0x1a1   : > { %v2069_v62 = vrot.slane %v2068_v55, 2  ;;  %v2094_v22 = vsel %vm427_vm0, %v409_v23, -inf  ;;  %v2063_v52 = vmax.f32 %v2061_v26, %v2062_v38  ;;  %v2082_v58 = vmax.f32 %v2080_v31, %v2081_v20 }
 0x1a2   : > { %v2057_v18 = vrot.slane %v2056_v21, 1  ;;  %v2076_v34 = vrot.slane %v2075_v32, 2  ;;  %v2089_v16 = vmax.f32 %v2087_v6, %v2088_v39  ;;  %v2095_v63 = vrot.slane %v2094_v22, 4  ;;  %v271_v6 = vld [vmem:[%s3128_s17 + $0x320] sm:$0xff] }
 0x1a3   : > { %v2070_v42 = vmax.f32 %v2068_v55, %v2069_v62  ;;  %v2101_v14 = vsel %vm427_vm0, %v410_v10, -inf  ;;  %v2064_v40 = vrot.slane %v2063_v52, 1  ;;  %v2083_v41 = vrot.slane %v2082_v58, 2 }
 0x1a4   : > { %v2058_v45 = vmax.f32 %v2056_v21, %v2057_v18  ;;  %v2077_v43 = vmax.f32 %v2075_v32, %v2076_v34  ;;  %v2090_v33 = vrot.slane %v2089_v16, 2  ;;  %v2096_v24 = vmax.f32 %v2094_v22, %v2095_v63  ;;  %v273_v22 = vld [vmem:[%s3128_s17 + $0x330] sm:$0xff] }
 0x1a5   : > { %v2071_v51 = vrot.slane %v2070_v42, 1  ;;  %v2102_v37 = vrot.slane %v2101_v14, 4  ;;  %v2065_v48 = vmax.f32 %v2063_v52, %v2064_v40  ;;  %v2084_v13 = vmax.f32 %v2082_v58, %v2083_v41 }
 0x1a6   : > { %v2078_v29 = vrot.slane %v2077_v43, 1  ;;  %v2711_v46 = vsel %vm2508_vm1, %v3918_v35, %v3915_v36  ;;  %v2091_v61 = vmax.f32 %v2089_v16, %v2090_v33  ;;  %v2097_v0 = vrot.slane %v2096_v24, 2  ;;  %v268_v35 = vld [vmem:[%s3128_s17 + $0x308] sm:$0xff] }
 0x1a7   : > { %v2072_v57 = vmax.f32 %v2070_v42, %v2071_v51  ;;  %v2103_v1 = vmax.f32 %v2101_v14, %v2102_v37  ;;  %v2085_v44 = vrot.slane %v2084_v13, 1  ;;  %v2712_v49 = vsel %vm2510_vm2, %v3923_v11, %v2711_v46 }
 0x1a8   : > { %v2079_v5 = vmax.f32 %v2077_v43, %v2078_v29  ;;  %v2718_v30 = vsel %vm2508_vm1, %v2065_v48, %v2058_v45  ;;  %v2092_v3 = vrot.slane %v2091_v61, 1  ;;  %v2098_v17 = vmax.f32 %v2096_v24, %v2097_v0  ;;  %v274_v45 = vld [vmem:[%s3128_s17 + $0x338] sm:$0xff] }
 0x1a9   : > { %v2104_v19 = vrot.slane %v2103_v1, 2  ;;  %v2713_v36 = vsel %vm2512_vm3, %v3926_v12, %v2712_v49  ;;  %v2086_v4 = vmax.f32 %v2084_v13, %v2085_v44  ;;  %v2719_v56 = vsel %vm2510_vm2, %v2072_v57, %v2718_v30  ;;  %v275_v57 = vld [vmem:[%s3128_s17 + $0x340] sm:$0xff] }
 0x1aa   : > { %v2714_v50 = vsel %vm2514_vm4, %v3928_v15, %v2713_v36  ;;  %v1100_v7 = vsel %vm427_vm0, %v267_v25, -inf  ;;  %v2093_v11 = vmax.f32 %v2091_v61, %v2092_v3  ;;  %v2099_v59 = vrot.slane %v2098_v17, 1  ;;  %v276_v3 = vld [vmem:[%s3128_s17 + $0x348] sm:$0xff] }
 0x1ab   : > { %v2105_v8 = vmax.f32 %v2103_v1, %v2104_v19  ;;  %v2715_v28 = vsel %vm2516_vm5, %v3933_v53, %v2714_v50  ;;  %v2720_v23 = vsel %vm2512_vm3, %v2079_v5, %v2719_v56  ;;  %v1101_v26 = vrot.slane %v1100_v7, 4  ;;  %v272_v53 = vld [vmem:[%s3128_s17 + $0x328] sm:$0xff] }
 0x1ac   : > { %v2716_v12 = vsel %vm2518_vm6, %v2044_v47, %v2715_v28  ;;  %v1107_v15 = vsel %vm427_vm0, %v268_v35, -inf  ;;  %v2100_v27 = vmax.f32 %v2098_v17, %v2099_v59  ;;  %v2721_v31 = vsel %vm2514_vm4, %v2086_v4, %v2720_v23  ;;  %v278_v59 = vld [vmem:[%s3128_s17 + $0x358] sm:$0xff] }
 0x1ad   : > { %v2106_v2 = vrot.slane %v2105_v8, 1  ;;  %v2717_v55 = vsel %vm2520_vm7, %v2051_v54, %v2716_v12  ;;  %v2722_v10 = vsel %vm2516_vm5, %v2093_v11, %v2721_v31  ;;  %v1102_v21 = vmax.f32 %v1100_v7, %v1101_v26  ;;  %v277_v11 = vld [vmem:[%s3128_s17 + $0x350] sm:$0xff] }
 0x1ae   : > { %v1108_v38 = vrot.slane %v1107_v15, 4  ;;  %v1114_v47 = vsel %vm427_vm0, %v269_v9, -inf  ;;  %v2723_v20 = vsel %vm2518_vm6, %v2100_v27, %v2722_v10  ;;  %v1121_v39 = vsel %vm427_vm0, %v270_v60, -inf  ;;  %v279_v27 = vld [vmem:[%s3128_s17 + $0x360] sm:$0xff] }
 0x1af   : > { %v2107_v32 = vmax.f32 %v2105_v8, %v2106_v2  ;;  %v1115_v62 = vrot.slane %v1114_v47, 4  ;;  %v1103_v18 = vrot.slane %v1102_v21, 2  ;;  %v1122_v52 = vrot.slane %v1121_v39, 4 }
 0x1b0   : > { %v1109_v54 = vmax.f32 %v1107_v15, %v1108_v38  ;;  %v1128_v34 = vsel %vm427_vm0, %v271_v6, -inf  ;;  %v1135_v63 = vsel %vm427_vm0, %v272_v53, -inf  ;;  %v1142_v37 = vsel %vm427_vm0, %v273_v22, -inf }
 0x1b1   : > { %v2724_v58 = vsel %vm2520_vm7, %v2107_v32, %v2723_v20  ;;  %v1116_v42 = vmax.f32 %v1114_v47, %v1115_v62  ;;  %v1129_v16 = vrot.slane %v1128_v34, 4  ;;  %v1104_v40 = vmax.f32 %v1102_v21, %v1103_v18  ;;  %v280_v47 = vld [vmem:[%s3128_s17 + $0x368] sm:$0xff]  ;;  %v281_v32 = vld [vmem:[%s3128_s17 + $0x370] sm:$0xff] }
 0x1b2   : > { %v3040_v14 = vpack.c.bf16 %v2724_v58, %v2717_v55  ;;  %v1110_v43 = vrot.slane %v1109_v54, 2  ;;  %v1123_v41 = vmax.f32 %v1121_v39, %v1122_v52  ;;  %v1136_v24 = vrot.slane %v1135_v63, 4 }
 0x1b3   : > { %v1117_v51 = vrot.slane %v1116_v42, 2  ;;  %v1130_v33 = vmax.f32 %v1128_v34, %v1129_v16  ;;  %v1105_v48 = vrot.slane %v1104_v40, 1  ;;  %v1143_v46 = vrot.slane %v1142_v37, 4 }
 0x1b4   : > { %3041 = vmatprep.subr.bf16.mxu0 %v3040_v14  ;;  %3054 = vmatprep.subr.bf16.mxu1 %v3040_v14  ;;  %v1111_v29 = vmax.f32 %v1109_v54, %v1110_v43  ;;  %v1124_v13 = vrot.slane %v1123_v41, 2  ;;  %v1137_v1 = vmax.f32 %v1135_v63, %v1136_v24  ;;  %v1149_v25 = vsel %vm427_vm0, %v274_v45, -inf  ;;  %v282_v14 = vld [vmem:[%s3128_s17 + $0x378] sm:$0xff] }
 0x1b5   : > { %v1118_v61 = vmax.f32 %v1116_v42, %v1117_v51  ;;  %v1131_v0 = vrot.slane %v1130_v33, 2  ;;  %v3979_v5 = vmax.f32 %v1104_v40, %v1105_v48  ;;  %v1144_v30 = vmax.f32 %v1142_v37, %v1143_v46 }
 0x1b6   : > { %v1112_v44 = vrot.slane %v1111_v29, 1  ;;  %v1125_v49 = vmax.f32 %v1123_v41, %v1124_v13  ;;  %v1138_v36 = vrot.slane %v1137_v1, 2  ;;  %v1150_v35 = vrot.slane %v1149_v25, 4 }
 0x1b7   : > { %v1119_v17 = vrot.slane %v1118_v61, 1  ;;  %v1132_v19 = vmax.f32 %v1130_v33, %v1131_v0  ;;  %v1145_v56 = vrot.slane %v1144_v30, 2  ;;  %v1156_v7 = vsel %vm427_vm0, %v275_v57, -inf }
 0x1b8   : > { %v3982_v4 = vmax.f32 %v1111_v29, %v1112_v44  ;;  %v1126_v50 = vrot.slane %v1125_v49, 1  ;;  %v1139_v9 = vmax.f32 %v1137_v1, %v1138_v36  ;;  %v1151_v12 = vmax.f32 %v1149_v25, %v1150_v35 }
 0x1b9   : > { %v3987_v8 = vmax.f32 %v1118_v61, %v1119_v17  ;;  %v1133_v28 = vrot.slane %v1132_v19, 1  ;;  %v1146_v60 = vmax.f32 %v1144_v30, %v1145_v56  ;;  %v1157_v26 = vrot.slane %v1156_v7, 4 }
 0x1ba   : > { %v3989_v23 = vmax.f32 %v1125_v49, %v1126_v50  ;;  %v1163_v15 = vsel %vm427_vm0, %v276_v3, -inf  ;;  %v1140_v55 = vrot.slane %v1139_v9, 1  ;;  %v1152_v31 = vrot.slane %v1151_v12, 2 }
 0x1bb   : > { %v3993_v2 = vmax.f32 %v1132_v19, %v1133_v28  ;;  %v1164_v6 = vrot.slane %v1163_v15, 4  ;;  %v1147_v10 = vrot.slane %v1146_v60, 1  ;;  %v1158_v53 = vmax.f32 %v1156_v7, %v1157_v26 }
 0x1bc   : > { %v1170_v21 = vsel %vm427_vm0, %v277_v11, -inf  ;;  %v1177_v38 = vsel %vm427_vm0, %v278_v59, -inf  ;;  %v1141_v20 = vmax.f32 %v1139_v9, %v1140_v55  ;;  %v1153_v62 = vmax.f32 %v1151_v12, %v1152_v31 }
 0x1bd   : > { %v1165_v39 = vmax.f32 %v1163_v15, %v1164_v6  ;;  %v1171_v22 = vrot.slane %v1170_v21, 4  ;;  %v1148_v18 = vmax.f32 %v1146_v60, %v1147_v10  ;;  %v1159_v54 = vrot.slane %v1158_v53, 2 }
 0x1be   : > { %v1178_v52 = vrot.slane %v1177_v38, 4  ;;  %v1184_v34 = vsel %vm427_vm0, %v279_v27, -inf  ;;  %v1154_v58 = vrot.slane %v1153_v62, 1  ;;  %v1191_v43 = vsel %vm427_vm0, %v280_v47, -inf  ;;  %v411_v27 = vld [vmem:[%s3128_s17 + $0x780] sm:$0xff] }
 0x1bf   : > { %v1166_v42 = vrot.slane %v1165_v39, 2  ;;  %v1172_v16 = vmax.f32 %v1170_v21, %v1171_v22  ;;  %v1185_v63 = vrot.slane %v1184_v34, 4  ;;  %v1160_v45 = vmax.f32 %v1158_v53, %v1159_v54  ;;  %v412_v21 = vld [vmem:[%s3128_s17 + $0x788] sm:$0xff] }
 0x1c0   : > { %v1179_v40 = vmax.f32 %v1177_v38, %v1178_v52  ;;  %v1198_v41 = vsel %vm427_vm0, %v281_v32, -inf  ;;  %v1155_v51 = vmax.f32 %v1153_v62, %v1154_v58  ;;  %v1192_v13 = vrot.slane %v1191_v43, 4  ;;  %v413_v38 = vld [vmem:[%s3128_s17 + $0x790] sm:$0xff]  ;;  %v414_v62 = vld [vmem:[%s3128_s17 + $0x798] sm:$0xff]  ;;  %v416_v58 = vld [vmem:[%s3128_s17 + $0x7a8] sm:$0xff] }
 0x1c1   : > { %v1167_v33 = vmax.f32 %v1165_v39, %v1166_v42  ;;  %v1173_v24 = vrot.slane %v1172_v16, 2  ;;  %v1186_v37 = vmax.f32 %v1184_v34, %v1185_v63  ;;  %v1161_v48 = vrot.slane %v1160_v45, 1  ;;  %v415_v34 = vld [vmem:[%s3128_s17 + $0x7a0] sm:$0xff] }
 0x1c2   : > { %v1180_v29 = vrot.slane %v1179_v40, 2  ;;  %v1199_v46 = vrot.slane %v1198_v41, 4  ;;  %v1205_v1 = vsel %vm427_vm0, %v282_v14, -inf  ;;  %v1193_v49 = vmax.f32 %v1191_v43, %v1192_v13 }
 0x1c3   : > { %v1168_v57 = vrot.slane %v1167_v33, 1  ;;  %v1174_v61 = vmax.f32 %v1172_v16, %v1173_v24  ;;  %v1187_v0 = vrot.slane %v1186_v37, 2  ;;  %v1162_v25 = vmax.f32 %v1160_v45, %v1161_v48  ;;  %v417_v24 = vld [vmem:[%s3128_s17 + $0x7b0] sm:$0xff] }
 0x1c4   : > { %v1181_v44 = vmax.f32 %v1179_v40, %v1180_v29  ;;  %v1200_v30 = vmax.f32 %v1198_v41, %v1199_v46  ;;  %v1206_v36 = vrot.slane %v1205_v1, 4  ;;  %v1194_v50 = vrot.slane %v1193_v49, 2 }
 0x1c5   : > { %v1169_v3 = vmax.f32 %v1167_v33, %v1168_v57  ;;  %v1175_v17 = vrot.slane %v1174_v61, 1  ;;  %v1188_v19 = vmax.f32 %v1186_v37, %v1187_v0  ;;  %v2599_v7 = vsel %vm2508_vm1, %v3982_v4, %v3979_v5 }
 0x1c6   : > { %v1182_v35 = vrot.slane %v1181_v44, 1  ;;  %v1201_v56 = vrot.slane %v1200_v30, 2  ;;  %v1207_v28 = vmax.f32 %v1205_v1, %v1206_v36  ;;  %v2600_v9 = vsel %vm2510_vm2, %v3987_v8, %v2599_v7 }
 0x1c7   : > { %v1176_v11 = vmax.f32 %v1174_v61, %v1175_v17  ;;  %v1189_v59 = vrot.slane %v1188_v19, 1  ;;  %v1195_v60 = vmax.f32 %v1193_v49, %v1194_v50  ;;  %v2601_v15 = vsel %vm2512_vm3, %v3989_v23, %v2600_v9 }
 0x1c8   : > { %v1183_v12 = vmax.f32 %v1181_v44, %v1182_v35  ;;  %v1202_v26 = vmax.f32 %v1200_v30, %v1201_v56  ;;  %v1208_v31 = vrot.slane %v1207_v28, 2  ;;  %v2602_v5 = vsel %vm2514_vm4, %v3993_v2, %v2601_v15 }
 0x1c9   : > { %v1190_v55 = vmax.f32 %v1188_v19, %v1189_v59  ;;  %v2606_v4 = vsel %vm2508_vm1, %v1169_v3, %v1162_v25  ;;  %v1196_v6 = vrot.slane %v1195_v60, 1  ;;  %v2603_v8 = vsel %vm2516_vm5, %v1141_v20, %v2602_v5  ;;  %v418_v25 = vld [vmem:[%s3128_s17 + $0x7b8] sm:$0xff] }
 0x1ca   : > { %v1203_v10 = vrot.slane %v1202_v26, 1  ;;  %v2607_v53 = vsel %vm2510_vm2, %v1176_v11, %v2606_v4  ;;  %v1209_v47 = vmax.f32 %v1207_v28, %v1208_v31  ;;  %v2604_v23 = vsel %vm2518_vm6, %v1148_v18, %v2603_v8 }
 0x1cb   : > { %v2608_v32 = vsel %vm2512_vm3, %v1183_v12, %v2607_v53  ;;  %v2108_v2 = vsel %vm427_vm0, %v411_v27, -inf  ;;  %v1197_v39 = vmax.f32 %v1195_v60, %v1196_v6  ;;  %v2605_v54 = vsel %vm2520_vm7, %v1155_v51, %v2604_v23  ;;  %v419_v12 = vld [vmem:[%s3128_s17 + $0x7c0] sm:$0xff] }
 0x1cc   : > { %v1204_v22 = vmax.f32 %v1202_v26, %v1203_v10  ;;  %v2609_v52 = vsel %vm2514_vm4, %v1190_v55, %v2608_v32  ;;  %v1210_v20 = vrot.slane %v1209_v47, 1  ;;  %v2109_v42 = vrot.slane %v2108_v2, 4  ;;  %v420_v55 = vld [vmem:[%s3128_s17 + $0x7c8] sm:$0xff]  ;;  %v421_v10 = vld [vmem:[%s3128_s17 + $0x7d0] sm:$0xff] }
 0x1cd   : > { %v2115_v16 = vsel %vm427_vm0, %v412_v21, -inf  ;;  %v2122_v18 = vsel %vm427_vm0, %v413_v38, -inf  ;;  %v2610_v63 = vsel %vm2516_vm5, %v1197_v39, %v2609_v52  ;;  %v2129_v40 = vsel %vm427_vm0, %v414_v62, -inf  ;;  %v423_v39 = vld [vmem:[%s3128_s17 + $0x7e0] sm:$0xff] }
 0x1ce   : > { %v2116_v14 = vrot.slane %v2115_v16, 4  ;;  %v2123_v45 = vrot.slane %v2122_v18, 4  ;;  %v1211_v43 = vmax.f32 %v1209_v47, %v1210_v20  ;;  %v2611_v41 = vsel %vm2518_vm6, %v1204_v22, %v2610_v63 }
 0x1cf   : > { %v2110_v51 = vmax.f32 %v2108_v2, %v2109_v42  ;;  %v2130_v33 = vrot.slane %v2129_v40, 4  ;;  %v2136_v29 = vsel %vm427_vm0, %v415_v34, -inf  ;;  %v2143_v13 = vsel %vm427_vm0, %v416_v58, -inf  ;;  %v422_v2 = vld [vmem:[%s3128_s17 + $0x7d8] sm:$0xff] }
 0x1d0   : > { %v2117_v37 = vmax.f32 %v2115_v16, %v2116_v14  ;;  %v2124_v48 = vmax.f32 %v2122_v18, %v2123_v45  ;;  %v2612_v46 = vsel %vm2520_vm7, %v1211_v43, %v2611_v41  ;;  %v2137_v0 = vrot.slane %v2136_v29, 4  ;;  %v424_v18 = vld [vmem:[%s3128_s17 + $0x7e8] sm:$0xff] }
 0x1d1   : > { %v2111_v57 = vrot.slane %v2110_v51, 2  ;;  %v2131_v61 = vmax.f32 %v2129_v40, %v2130_v33  ;;  %v3042_v1 = vpack.c.bf16 %v2612_v46, %v2605_v54  ;;  %v2144_v30 = vrot.slane %v2143_v13, 4 }
 0x1d2   : > { %v2118_v44 = vrot.slane %v2117_v37, 2  ;;  %v2125_v49 = vrot.slane %v2124_v48, 2  ;;  %v2138_v19 = vmax.f32 %v2136_v29, %v2137_v0  ;;  %v2150_v36 = vsel %vm427_vm0, %v417_v24, -inf  ;;  %v425_v24 = vld [vmem:[%s3128_s17 + $0x7f0] sm:$0xff] }
 0x1d3   : > { %v2112_v3 = vmax.f32 %v2110_v51, %v2111_v57  ;;  %v2132_v17 = vrot.slane %v2131_v61, 2  ;;  %3043 = vmatpush3.bf16.msra.mxu0 %v3042_v1  ;;  %3062 = vmatpush3.bf16.msra.mxu1 %v3042_v1  ;;  %v2145_v56 = vmax.f32 %v2143_v13, %v2144_v30  ;;  %v2151_v7 = vrot.slane %v2150_v36, 4  ;;  %v426_v1 = vld [vmem:[%s3128_s17 + $0x7f8] sm:$0xff] }
 0x1d4   : > { %v2119_v35 = vmax.f32 %v2117_v37, %v2118_v44  ;;  %v2126_v50 = vmax.f32 %v2124_v48, %v2125_v49  ;;  %v2139_v28 = vrot.slane %v2138_v19, 2  ;;  %v2157_v9 = vsel %vm427_vm0, %v418_v25, -inf }
 0x1d5   : > { %v2113_v11 = vrot.slane %v2112_v3, 1  ;;  %v2133_v59 = vmax.f32 %v2131_v61, %v2132_v17  ;;  %v2146_v15 = vrot.slane %v2145_v56, 2  ;;  %v2152_v27 = vmax.f32 %v2150_v36, %v2151_v7 }
 0x1d6   : > { %v2120_v60 = vrot.slane %v2119_v35, 1  ;;  %v2127_v26 = vrot.slane %v2126_v50, 1  ;;  %v2140_v4 = vmax.f32 %v2138_v19, %v2139_v28  ;;  %v2158_v6 = vrot.slane %v2157_v9, 4 }
 0x1d7   : > { %v4041_v31 = vmax.f32 %v2112_v3, %v2113_v11  ;;  %v2134_v5 = vrot.slane %v2133_v59, 1  ;;  %v2147_v21 = vmax.f32 %v2145_v56, %v2146_v15  ;;  %v2153_v38 = vrot.slane %v2152_v27, 2 }
 0x1d8   : > { %v4044_v8 = vmax.f32 %v2119_v35, %v2120_v60  ;;  %v4046_v53 = vmax.f32 %v2126_v50, %v2127_v26  ;;  %v2141_v23 = vrot.slane %v2140_v4, 1  ;;  %v2159_v32 = vmax.f32 %v2157_v9, %v2158_v6 }
 0x1d9   : > { %v4048_v47 = vmax.f32 %v2133_v59, %v2134_v5  ;;  %v2164_v62 = vsel %vm427_vm0, %v419_v12, -inf  ;;  %v2148_v22 = vrot.slane %v2147_v21, 1  ;;  %v2154_v54 = vmax.f32 %v2152_v27, %v2153_v38 }
 0x1da   : > { %v2165_v52 = vrot.slane %v2164_v62, 4  ;;  %v2171_v20 = vsel %vm427_vm0, %v420_v55, -inf  ;;  %v4054_v34 = vmax.f32 %v2140_v4, %v2141_v23  ;;  %v2160_v58 = vrot.slane %v2159_v32, 2 }
 0x1db   : > { %v2172_v42 = vrot.slane %v2171_v20, 4  ;;  %v2178_v16 = vsel %vm427_vm0, %v421_v10, -inf  ;;  %v2149_v63 = vmax.f32 %v2147_v21, %v2148_v22  ;;  %v2155_v14 = vrot.slane %v2154_v54, 1 }
 0x1dc   : > { %v2166_v45 = vmax.f32 %v2164_v62, %v2165_v52  ;;  %v2179_v40 = vrot.slane %v2178_v16, 4  ;;  %v2161_v43 = vmax.f32 %v2159_v32, %v2160_v58  ;;  %v2185_v51 = vsel %vm427_vm0, %v422_v2, -inf }
 0x1dd   : > { %v2173_v41 = vmax.f32 %v2171_v20, %v2172_v42  ;;  %v2192_v33 = vsel %vm427_vm0, %v423_v39, -inf  ;;  %v2156_v37 = vmax.f32 %v2154_v54, %v2155_v14  ;;  %v2186_v13 = vrot.slane %v2185_v51, 4  ;;  %v283_v39 = vld [vmem:[%s3128_s17 + $0x380] sm:$0xff] }
 0x1de   : > { %v2167_v48 = vrot.slane %v2166_v45, 2  ;;  %v2180_v29 = vmax.f32 %v2178_v16, %v2179_v40  ;;  %v2162_v46 = vrot.slane %v2161_v43, 1  ;;  %v2193_v61 = vrot.slane %v2192_v33, 4  ;;  %v284_v16 = vld [vmem:[%s3128_s17 + $0x388] sm:$0xff] }
 0x1df   : > { %v2174_v57 = vrot.slane %v2173_v41, 2  ;;  %v2199_v0 = vsel %vm427_vm0, %v424_v18, -inf  ;;  %v2187_v49 = vmax.f32 %v2185_v51, %v2186_v13  ;;  %v2206_v36 = vsel %vm427_vm0, %v425_v24, -inf  ;;  %v285_v51 = vld [vmem:[%s3128_s17 + $0x390] sm:$0xff]  ;;  %v287_v24 = vld [vmem:[%s3128_s17 + $0x3a0] sm:$0xff] }
 0x1e0   : > { %v2168_v25 = vmax.f32 %v2166_v45, %v2167_v48  ;;  %v2181_v44 = vrot.slane %v2180_v29, 2  ;;  %v2200_v30 = vrot.slane %v2199_v0, 4  ;;  %v2163_v3 = vmax.f32 %v2161_v43, %v2162_v46 }
 0x1e1   : > { %v2175_v17 = vmax.f32 %v2173_v41, %v2174_v57  ;;  %v2194_v19 = vmax.f32 %v2192_v33, %v2193_v61  ;;  %v2188_v56 = vrot.slane %v2187_v49, 2  ;;  %v2207_v28 = vrot.slane %v2206_v36, 4  ;;  %v286_v33 = vld [vmem:[%s3128_s17 + $0x398] sm:$0xff]  ;;  %v288_v61 = vld [vmem:[%s3128_s17 + $0x3a8] sm:$0xff] }
 0x1e2   : > { %v2169_v35 = vrot.slane %v2168_v25, 1  ;;  %v2182_v50 = vmax.f32 %v2180_v29, %v2181_v44  ;;  %v2201_v7 = vmax.f32 %v2199_v0, %v2200_v30  ;;  %v2213_v9 = vsel %vm427_vm0, %v426_v1, -inf }
 0x1e3   : > { %v2176_v11 = vrot.slane %v2175_v17, 1  ;;  %v2195_v59 = vrot.slane %v2194_v19, 2  ;;  %v2189_v26 = vmax.f32 %v2187_v49, %v2188_v56  ;;  %v2208_v5 = vmax.f32 %v2206_v36, %v2207_v28 }
 0x1e4   : > { %v2170_v12 = vmax.f32 %v2168_v25, %v2169_v35  ;;  %v2183_v60 = vrot.slane %v2182_v50, 1  ;;  %v2202_v15 = vrot.slane %v2201_v7, 2  ;;  %v2214_v4 = vrot.slane %v2213_v9, 4 }
 0x1e5   : > { %v2177_v27 = vmax.f32 %v2175_v17, %v2176_v11  ;;  %v2196_v55 = vmax.f32 %v2194_v19, %v2195_v59  ;;  %v2190_v10 = vrot.slane %v2189_v26, 1  ;;  %v2725_v38 = vsel %vm2508_vm1, %v4044_v8, %v4041_v31  ;;  %v289_v19 = vld [vmem:[%s3128_s17 + $0x3b0] sm:$0xff] }
 0x1e6   : > { %v2184_v6 = vmax.f32 %v2182_v50, %v2183_v60  ;;  %v2203_v21 = vmax.f32 %v2201_v7, %v2202_v15  ;;  %v2209_v32 = vrot.slane %v2208_v5, 2  ;;  %v2215_v62 = vmax.f32 %v2213_v9, %v2214_v4 }
 0x1e7   : > { %v2197_v23 = vrot.slane %v2196_v55, 1  ;;  %v2726_v2 = vsel %vm2510_vm2, %v4046_v53, %v2725_v38  ;;  %v2191_v22 = vmax.f32 %v2189_v26, %v2190_v10  ;;  %v2732_v20 = vsel %vm2508_vm1, %v2177_v27, %v2170_v12  ;;  %v290_v12 = vld [vmem:[%s3128_s17 + $0x3b8] sm:$0xff] }
 0x1e8   : > { %v2204_v54 = vrot.slane %v2203_v21, 1  ;;  %v2727_v52 = vsel %vm2512_vm3, %v4048_v47, %v2726_v2  ;;  %v2210_v42 = vmax.f32 %v2208_v5, %v2209_v32  ;;  %v2216_v31 = vrot.slane %v2215_v62, 2 }
 0x1e9   : > { %v2198_v58 = vmax.f32 %v2196_v55, %v2197_v23  ;;  %v2728_v8 = vsel %vm2514_vm4, %v4054_v34, %v2727_v52  ;;  %v2733_v14 = vsel %vm2510_vm2, %v2184_v6, %v2732_v20  ;;  %v1212_v45 = vsel %vm427_vm0, %v283_v39, -inf  ;;  %v291_v23 = vld [vmem:[%s3128_s17 + $0x3c0] sm:$0xff] }
 0x1ea   : > { %v2205_v18 = vmax.f32 %v2203_v21, %v2204_v54  ;;  %v2729_v53 = vsel %vm2516_vm5, %v2149_v63, %v2728_v8  ;;  %v2211_v47 = vrot.slane %v2210_v42, 1  ;;  %v2217_v40 = vmax.f32 %v2215_v62, %v2216_v31 }
 0x1eb   : > { %v2730_v43 = vsel %vm2518_vm6, %v2156_v37, %v2729_v53  ;;  %v2734_v41 = vsel %vm2512_vm3, %v2191_v22, %v2733_v14  ;;  %v1213_v63 = vrot.slane %v1212_v45, 4  ;;  %v1219_v29 = vsel %vm427_vm0, %v284_v16, -inf }
 0x1ec   : > { %v2731_v34 = vsel %vm2520_vm7, %v2163_v3, %v2730_v43  ;;  %v2735_v48 = vsel %vm2514_vm4, %v2198_v58, %v2734_v41  ;;  %v2212_v13 = vmax.f32 %v2210_v42, %v2211_v47  ;;  %v2218_v46 = vrot.slane %v2217_v40, 1  ;;  %v292_v58 = vld [vmem:[%s3128_s17 + $0x3c8] sm:$0xff]  ;;  %v293_v47 = vld [vmem:[%s3128_s17 + $0x3d0] sm:$0xff]  ;;  %v295_v43 = vld [vmem:[%s3128_s17 + $0x3e0] sm:$0xff] }
 0x1ed   : > { %v2736_v57 = vsel %vm2516_vm5, %v2205_v18, %v2735_v48  ;;  %v1220_v0 = vrot.slane %v1219_v29, 4  ;;  %v1214_v37 = vmax.f32 %v1212_v45, %v1213_v63  ;;  %v1226_v1 = vsel %vm427_vm0, %v285_v51, -inf }
 0x1ee   : > { %v1233_v25 = vsel %vm427_vm0, %v286_v33, -inf  ;;  %v1240_v44 = vsel %vm427_vm0, %v287_v24, -inf  ;;  %v2219_v49 = vmax.f32 %v2217_v40, %v2218_v46  ;;  %v2737_v30 = vsel %vm2518_vm6, %v2212_v13, %v2736_v57  ;;  %v294_v40 = vld [vmem:[%s3128_s17 + $0x3d8] sm:$0xff]  ;;  %v296_v13 = vld [vmem:[%s3128_s17 + $0x3e8] sm:$0xff] }
 0x1ef   : > { %v1221_v3 = vmax.f32 %v1219_v29, %v1220_v0  ;;  %v1227_v17 = vrot.slane %v1226_v1, 4  ;;  %v1215_v36 = vrot.slane %v1214_v37, 2  ;;  %v1234_v35 = vrot.slane %v1233_v25, 4 }
 0x1f0   : > { %v1241_v50 = vrot.slane %v1240_v44, 4  ;;  %v1247_v56 = vsel %vm427_vm0, %v288_v61, -inf  ;;  %v2738_v7 = vsel %vm2520_vm7, %v2219_v49, %v2737_v30  ;;  %v1254_v4 = vsel %vm427_vm0, %v289_v19, -inf  ;;  %v297_v49 = vld [vmem:[%s3128_s17 + $0x3f0] sm:$0xff] }
 0x1f1   : > { %v1222_v11 = vrot.slane %v1221_v3, 2  ;;  %v1228_v59 = vmax.f32 %v1226_v1, %v1227_v17  ;;  %v1248_v28 = vrot.slane %v1247_v56, 4  ;;  %v3044_v9 = vpack.c.bf16 %v2738_v7, %v2731_v34 }
 0x1f2   : > { %v1216_v60 = vmax.f32 %v1214_v37, %v1215_v36  ;;  %v1235_v26 = vmax.f32 %v1233_v25, %v1234_v35  ;;  %v1242_v15 = vmax.f32 %v1240_v44, %v1241_v50  ;;  %v1255_v38 = vrot.slane %v1254_v4, 4 }
 0x1f3   : > { %v1223_v27 = vmax.f32 %v1221_v3, %v1222_v11  ;;  %v1229_v55 = vrot.slane %v1228_v59, 2  ;;  %v1249_v5 = vmax.f32 %v1247_v56, %v1248_v28  ;;  %3045 = vmatprep.subr.bf16.mxu0 %v3044_v9  ;;  %3055 = vmatprep.subr.bf16.mxu1 %v3044_v9  ;;  %v1261_v39 = vsel %vm427_vm0, %v290_v12, -inf  ;;  %v298_v9 = vld [vmem:[%s3128_s17 + $0x3f8] sm:$0xff]  ;;  %s2971_s17 = sshll.u32 %s4202_s13, 5 }
 0x1f4   : > { %v1217_v6 = vrot.slane %v1216_v60, 1  ;;  %v1236_v10 = vrot.slane %v1235_v26, 2  ;;  %v1243_v21 = vrot.slane %v1242_v15, 2  ;;  %v1256_v20 = vmax.f32 %v1254_v4, %v1255_v38  ;;  %s170_s20 = scalar_lea.vmem %s4200_s3, %s2971_s17 }
 0x1f5   : > { %v1224_v32 = vrot.slane %v1223_v27, 1  ;;  %v1230_v62 = vmax.f32 %v1228_v59, %v1229_v55  ;;  %v1250_v2 = vrot.slane %v1249_v5, 2  ;;  %v1262_v16 = vrot.slane %v1261_v39, 4 }
 0x1f6   : > { %v4101_v22 = vmax.f32 %v1216_v60, %v1217_v6  ;;  %v1237_v54 = vmax.f32 %v1235_v26, %v1236_v10  ;;  %v1244_v52 = vmax.f32 %v1242_v15, %v1243_v21  ;;  %v1257_v14 = vrot.slane %v1256_v20, 2 }
 0x1f7   : > { %v4104_v42 = vmax.f32 %v1223_v27, %v1224_v32  ;;  %v1231_v31 = vrot.slane %v1230_v62, 1  ;;  %v1251_v8 = vmax.f32 %v1249_v5, %v1250_v2  ;;  %v1268_v45 = vsel %vm427_vm0, %v291_v23, -inf }
 0x1f8   : > { %v1238_v18 = vrot.slane %v1237_v54, 1  ;;  %v1245_v53 = vrot.slane %v1244_v52, 1  ;;  %v1263_v33 = vmax.f32 %v1261_v39, %v1262_v16  ;;  %v1269_v24 = vrot.slane %v1268_v45, 4 }
 0x1f9   : > { %v1232_v41 = vmax.f32 %v1230_v62, %v1231_v31  ;;  %v1252_v51 = vrot.slane %v1251_v8, 1  ;;  %v1258_v63 = vmax.f32 %v1256_v20, %v1257_v14  ;;  %v1275_v29 = vsel %vm427_vm0, %v292_v58, -inf }
 0x1fa   : > { %v4110_v34 = vmax.f32 %v1237_v54, %v1238_v18  ;;  %v4112_v48 = vmax.f32 %v1244_v52, %v1245_v53  ;;  %v1264_v57 = vrot.slane %v1263_v33, 2  ;;  %v1270_v61 = vmax.f32 %v1268_v45, %v1269_v24 }
 0x1fb   : > { %v4116_v46 = vmax.f32 %v1251_v8, %v1252_v51  ;;  %v1276_v0 = vrot.slane %v1275_v29, 4  ;;  %v1259_v37 = vrot.slane %v1258_v63, 1  ;;  %v1282_v1 = vsel %vm427_vm0, %v293_v47, -inf }
 0x1fc   : > { %v1289_v25 = vsel %vm427_vm0, %v294_v40, -inf  ;;  %v1296_v44 = vsel %vm427_vm0, %v295_v43, -inf  ;;  %v1265_v30 = vmax.f32 %v1263_v33, %v1264_v57  ;;  %v1271_v3 = vrot.slane %v1270_v61, 2 }
 0x1fd   : > { %v1277_v17 = vmax.f32 %v1275_v29, %v1276_v0  ;;  %v1283_v19 = vrot.slane %v1282_v1, 4  ;;  %v4122_v36 = vmax.f32 %v1258_v63, %v1259_v37  ;;  %v1290_v35 = vrot.slane %v1289_v25, 4 }
 0x1fe   : > { %v1297_v50 = vrot.slane %v1296_v44, 4  ;;  %v1303_v56 = vsel %vm427_vm0, %v296_v13, -inf  ;;  %v1266_v7 = vrot.slane %v1265_v30, 1  ;;  %v1272_v11 = vmax.f32 %v1270_v61, %v1271_v3  ;;  %v2230_v13 = vld [vmem:[%s4199_s2 + $0x10] sm:$0xff] }
 0x1ff   : > { %v1278_v59 = vrot.slane %v1277_v17, 2  ;;  %v1284_v28 = vmax.f32 %v1282_v1, %v1283_v19  ;;  %v1291_v12 = vmax.f32 %v1289_v25, %v1290_v35  ;;  %v1304_v26 = vrot.slane %v1303_v56, 4  ;;  %v2229_v19 = vld [vmem:[%s4199_s2 + $0x8] sm:$0xff] }
 0x200   : > { %v1298_v60 = vmax.f32 %v1296_v44, %v1297_v50  ;;  %v1310_v15 = vsel %vm427_vm0, %v297_v49, -inf  ;;  %v1267_v27 = vmax.f32 %v1265_v30, %v1266_v7  ;;  %v1273_v55 = vrot.slane %v1272_v11, 1 }
 0x201   : > { %v1279_v5 = vmax.f32 %v1277_v17, %v1278_v59  ;;  %v1285_v4 = vrot.slane %v1284_v28, 2  ;;  %v1292_v6 = vrot.slane %v1291_v12, 2  ;;  %v1305_v21 = vmax.f32 %v1303_v56, %v1304_v26  ;;  %v2224_v59 = vld [vmem:[%s4198_s1 + $0x20] sm:$0xff] }
 0x202   : > { %v1299_v10 = vrot.slane %v1298_v60, 2  ;;  %v1311_v38 = vrot.slane %v1310_v15, 4  ;;  %v1274_v23 = vmax.f32 %v1272_v11, %v1273_v55  ;;  %v1317_v2 = vsel %vm427_vm0, %v298_v9, -inf  ;;  %v2220_v11 = vld [vmem:[%s4198_s1] sm:$0xff]  ;;  %v2227_v9 = vld [vmem:[%s4198_s1 + $0x38] sm:$0xff] }
 0x203   : > { %v1280_v32 = vrot.slane %v1279_v5, 1  ;;  %v1286_v62 = vmax.f32 %v1284_v28, %v1285_v4  ;;  %v1293_v39 = vmax.f32 %v1291_v12, %v1292_v6  ;;  %v1306_v52 = vrot.slane %v1305_v21, 2  ;;  %v2223_v28 = vld [vmem:[%s4198_s1 + $0x18] sm:$0xff]  ;;  %v2222_v12 = vld [vmem:[%s4198_s1 + $0x10] sm:$0xff] }
 0x204   : > { %v1300_v54 = vmax.f32 %v1298_v60, %v1299_v10  ;;  %v1312_v20 = vmax.f32 %v1310_v15, %v1311_v38  ;;  %v1318_v8 = vrot.slane %v1317_v2, 4  ;;  %v2613_v16 = vsel %vm2508_vm1, %v4104_v42, %v4101_v22  ;;  %v2228_v22 = vld [vmem:[%s4199_s2] sm:$0xff]  ;;  %v2226_v60 = vld [vmem:[%s4198_s1 + $0x30] sm:$0xff] }
 0x205   : > { %v1281_v58 = vmax.f32 %v1279_v5, %v1280_v32  ;;  %v1287_v31 = vrot.slane %v1286_v62, 1  ;;  %v1294_v18 = vrot.slane %v1293_v39, 1  ;;  %v1307_v14 = vmax.f32 %v1305_v21, %v1306_v52 }
 0x206   : > { %v1301_v53 = vrot.slane %v1300_v54, 1  ;;  %v1313_v45 = vrot.slane %v1312_v20, 2  ;;  %v1319_v40 = vmax.f32 %v1317_v2, %v1318_v8  ;;  %v2614_v43 = vsel %vm2510_vm2, %v1232_v41, %v2613_v16 }
 0x207   : > { %v1288_v47 = vmax.f32 %v1286_v62, %v1287_v31  ;;  %v2620_v51 = vsel %vm2508_vm1, %v1281_v58, %v1274_v23  ;;  %v1295_v33 = vmax.f32 %v1293_v39, %v1294_v18  ;;  %v1308_v63 = vrot.slane %v1307_v14, 1 }
 0x208   : > { %v1302_v24 = vmax.f32 %v1300_v54, %v1301_v53  ;;  %v1314_v29 = vmax.f32 %v1312_v20, %v1313_v45  ;;  %v1320_v42 = vrot.slane %v1319_v40, 2  ;;  %v2615_v57 = vsel %vm2512_vm3, %v4110_v34, %v2614_v43 }
 0x209   : > { %v2621_v41 = vsel %vm2510_vm2, %v1288_v47, %v2620_v51  ;;  %v1309_v61 = vmax.f32 %v1307_v14, %v1308_v63  ;;  %v2616_v37 = vsel %vm2514_vm4, %v4112_v48, %v2615_v57  ;;  %v3093_v25 = vmov 0   ;;  %v2231_v48 = vld [vmem:[%s4199_s2 + $0x18] sm:$0xff] }
 0x20a   : > { %v1315_v0 = vrot.slane %v1314_v29, 1  ;;  %v2622_v1 = vsel %vm2512_vm3, %v1295_v33, %v2621_v41  ;;  %3074 = vset.pattern.permute.xlu1 %v3093_v25  ;;  %3073 = vset.pattern.permute.xlu0 %v3093_v25  ;;  %v1321_v44 = vmax.f32 %v1319_v40, %v1320_v42  ;;  %v2617_v49 = vsel %vm2516_vm5, %v4116_v46, %v2616_v37 }
 0x20b   : > { %v2623_v30 = vsel %vm2514_vm4, %v1302_v24, %v2622_v1  ;;  %2244 = vperm.xlu1 %3074, %v2230_v13   ;;  %2234 = vperm.xlu0 %3073, %v2228_v22   ;;  %v2618_v3 = vsel %vm2518_vm6, %v4122_v36, %v2617_v49 }
 0x20c   : > { %v1316_v34 = vmax.f32 %v1314_v29, %v1315_v0  ;;  %v2624_v17 = vsel %vm2516_vm5, %v1309_v61, %v2623_v30  ;;  %v1322_v35 = vrot.slane %v1321_v44, 1  ;;  %v2619_v56 = vsel %vm2520_vm7, %v1267_v27, %v2618_v3 }
 0x20e   : > { %v2625_v46 = vsel %vm2518_vm6, %v1316_v34, %v2624_v17  ;;  %v1323_v50 = vmax.f32 %v1321_v44, %v1322_v35 }
 0x20f   : > { %2249 = vperm.xlu1 %3074, %v2231_v48   ;;  %2239 = vperm.xlu0 %3073, %v2229_v19  }
 0x210   : > { %v2626_v36 = vsel %vm2520_vm7, %v1323_v50, %v2625_v46 }
 0x211   : > { %v3046_v7 = vpack.c.bf16 %v2626_v36, %v2619_v56 }
 0x213   : > { %3047 = vmatpush3.bf16.msra.mxu0 %v3046_v7  ;;  %3063 = vmatpush3.bf16.msra.mxu1 %v3046_v7 }
 0x216   : > { %2836 = vmatmul.mubr.f32.vlgmr.msra.gmra.mrb[0].mxu0 %v2220_v11  ;;  %2846 = vmatmul.mubr.f32.vlgmr.msra.gmra.mrb[0].mxu1 %v2224_v59 }
 0x217   : > { %2840 = vmatprep.mubr.f32.mxu0 %v2223_v28  ;;  %2850 = vmatprep.mubr.f32.mxu1 %v2227_v9 }
 0x21a   : > { %2841 = vmatmul.mubr.f32.gmra.mrb[2].mxu0 %v2222_v12  ;;  %2851 = vmatmul.mubr.f32.gmra.mrb[2].mxu1 %v2226_v60 }
 0x28a   : > { %v2245_v26 = vpop.permute.xlu1 %2244  ;;  %v2235_v15 = vpop.permute.xlu0 %2234 }
 0x28e   : > { %v2250_v52 = vpop.permute.xlu1 %2249  ;;  %v2240_v20 = vpop.permute.xlu0 %2239 }
 0x2e9   : > { %v3004_v27 = vpop.f32.mrb[0].mxu0  ;;  %v3010_v55 = vpop.f32.mrb[0].mxu1 }
 0x2ea   : > { %v3005_v5 = vpop.f32.mrb[1].mxu0  ;;  %v3011_v4 = vpop.f32.mrb[1].mxu1 }
 0x2eb   : > { %v3006_v6 = vadd.f32 %v3005_v5, %v3004_v27  ;;  %v3012_v10 = vadd.f32 %v3011_v4, %v3010_v55 }
 0x2ed   : > { %v3007_v21 = vpop.f32.mrb[2].mxu0  ;;  %v3013_v38 = vpop.f32.mrb[2].mxu1  ;;  %v2838_v62 = vadd.f32 %v3006_v6, %v2235_v15  ;;  %v2848_v2 = vadd.f32 %v3012_v10, %v2245_v26 }
 0x2ee   : > { %v3008_v23 = vpop.f32.mrb[3].mxu0  ;;  %v3014_v32 = vpop.f32.mrb[3].mxu1 }
 0x2ef   : > { %v3009_v39 = vadd.f32 %v3008_v23, %v3007_v21  ;;  %v3015_v54 = vadd.f32 %v3014_v32, %v3013_v38  ;;  %v2856_v8 = vsel %vm427_vm0, %v2838_v62, -inf  ;;  %v2858_v16 = vsel %vm427_vm0, %v2848_v2, -inf }
 0x2f1   : > { %v2843_v58 = vadd.f32 %v3009_v39, %v2240_v20  ;;  %v2853_v31 = vadd.f32 %v3015_v54, %v2250_v52 }
 0x2f3   : > { %v2857_v18 = vsel %vm427_vm0, %v2843_v58, -inf  ;;  %v2859_v53 = vsel %vm427_vm0, %v2853_v31, -inf }
 0x2f4   : > { %v2860_v14 = vmax.f32 %v2856_v8, %v2857_v18  ;;  %v2861_v45 = vmax.f32 %v2858_v16, %v2859_v53 }
 0x2f6   : > { %v2862_v47 = vmax.f32 %v2860_v14, %v2861_v45 }
 0x2f8   : > { %v2863_v40 = vrot.slane %v2862_v47, 4 }
 0x2fa   : > { %v2864_v43 = vmax.f32 %v2862_v47, %v2863_v40 }
 0x2fc   : > { %v2865_v51 = vrot.slane %v2864_v43, 2 }
 0x2fe   : > { %v2866_v33 = vmax.f32 %v2864_v43, %v2865_v51 }
 0x300   : > { %v2867_v24 = vrot.slane %v2866_v33, 1 }
 0x302   : > { %v2868_v63 = vmax.f32 %v2866_v33, %v2867_v24 }
 0x304   : > { %v2869_v29 = vsub.f32 %v2838_v62, %v2868_v63  ;;  %v2870_v13 = vsub.f32 %v2843_v58, %v2868_v63  ;;  %v2871_v22 = vsub.f32 %v2848_v2, %v2868_v63  ;;  %v2872_v42 = vsub.f32 %v2853_v31, %v2868_v63 }
 0x306   : > { %v2873_v57 = vmul.f32 1.442695, %v2869_v29  ;;  %v2875_v41 = vmul.f32 1.442695, %v2870_v13  ;;  %v2877_v61 = vmul.f32 1.442695, %v2871_v22 }
 0x307   : > { %v2879_v0 = vmul.f32 1.442695, %v2872_v42 }
 0x308   : > { %3075 = vpow2.f32 %v2873_v57 }
 0x309   : > { %3077 = vpow2.f32 %v2875_v41 }
 0x30a   : > { %3079 = vpow2.f32 %v2877_v61 }
 0x30b   : > { %3081 = vpow2.f32 %v2879_v0 }
 0x312   : > { %v3076_v37 = vpop.eup %3075 }
 0x313   : > { %v3078_v1 = vpop.eup %3077  ;;  %v2881_v25 = vsel %vm427_vm0, %v3076_v37, 0.0 }
 0x314   : > { %v3080_v44 = vpop.eup %3079  ;;  %v2882_v49 = vsel %vm427_vm0, %v3078_v1, 0.0 }
 0x315   : > { %v3082_v30 = vpop.eup %3081  ;;  %v2883_v34 = vadd.f32 %v2882_v49, %v2881_v25  ;;  %v2884_v3 = vsel %vm427_vm0, %v3080_v44, 0.0 }
 0x316   : > { %v2886_v48 = vsel %vm427_vm0, %v3082_v30, 0.0 }
 0x317   : > { %v2885_v17 = vadd.f32 %v2884_v3, %v2883_v34 }
 0x319   : > { %v2887_v19 = vadd.f32 %v2886_v48, %v2885_v17 }
 0x31b   : > { %v2888_v35 = vrot.slane %v2887_v19, 4 }
 0x31d   : > { %v2889_v46 = vadd.f32 %v2888_v35, %v2887_v19 }
 0x31f   : > { %v2890_v50 = vrot.slane %v2889_v46, 2 }
 0x321   : > { %v2891_v56 = vadd.f32 %v2890_v50, %v2889_v46 }
 0x323   : > { %v2892_v36 = vrot.slane %v2891_v56, 1 }
 0x325   : > { %v2893_v7 = vadd.f32 %v2892_v36, %v2891_v56 }
 0x327   : > { %3083 = vlog2.f32 %v2893_v7 }
 0x331   : > { %v3084_v11 = vpop.eup %3083 }
 0x332   : > { %v2895_v59 = vmul.f32 0.6931472, %v3084_v11 }
 0x334   : > { %v2896_v28 = vsub.f32 %v2869_v29, %v2895_v59  ;;  %v2897_v9 = vsub.f32 %v2870_v13, %v2895_v59  ;;  %v2898_v12 = vsub.f32 %v2871_v22, %v2895_v59  ;;  %v2899_v60 = vsub.f32 %v2872_v42, %v2895_v59 }
 0x336   : > { %2900 = vst.msk [vmem:[%s170_s20] sm:$0xff] %vm427_vm0, %v2896_v28  ;;  %2901 = vst.msk [vmem:[%s170_s20 + $0x8] sm:$0xff] %vm427_vm0, %v2897_v9 }
 0x337   : > { %2902 = vst.msk [vmem:[%s170_s20 + $0x10] sm:$0xff] %vm427_vm0, %v2898_v12  ;;  %2903 = vst.msk [vmem:[%s170_s20 + $0x18] sm:$0xff] %vm427_vm0, %v2899_v60 }
 0x338 PF: > { %s13_s12 = sadd.s32 1, %s3091_s12  }
 0x339   : > { %p10_p4 = scmp.ge.s32.totalorder %s13_s12, 4  }
 0x33b   :  { %12 = sbr.rel (!%p10_p4) target bundleno = 1 (0x1), region = 62 }

</bundles_post_ra>
